<compile_context>
chip_gen: v6e
topology: v6e:2x2x1
jax: 0.10.0
libtpu: 0.0.40
codegen_flags: <defaults>
</compile_context>

<pallas_src>
import functools
import math

import jax
import jax.numpy as jnp
from jax import lax
from jax.experimental import pallas as pl
from jax.experimental.pallas import tpu as pltpu

_TM_MAX = 512          # per-tile row cap (VMEM-safe on v5e/v6e/v7x)
_MIN_GRID = 2          # >=2 parallel grid steps so v7x's 2 TensorCores are used
_LN_EPS = 1e-5
_VMEM_LIMIT = 32 * 1024 * 1024   # explicit scoped-VMEM guard (v7x physical = 64 MiB)

_COMPILER_PARAMS = pltpu.CompilerParams(
    dimension_semantics=("parallel",),
    vmem_limit_bytes=_VMEM_LIMIT,
)


def _cdiv(a, b):
    return -(-a // b)


def _round_up(x, m):
    return _cdiv(x, m) * m


def _m_tiling(m):
    """Pick (tile_rows, padded_rows): balanced tiles, <=_TM_MAX rows, 8-aligned,
    at least _MIN_GRID tiles when m allows (keeps both v7x cores busy)."""
    n_tiles = max(_cdiv(m, _TM_MAX), _MIN_GRID if m >= 8 * _MIN_GRID else 1)
    tm = _round_up(_cdiv(m, n_tiles), 8)
    return tm, tm * n_tiles


def _pad_rows(x2d, mp):
    m = x2d.shape[0]
    return x2d if mp == m else jnp.pad(x2d, ((0, mp - m), (0, 0)))


# ----------------------------- Pallas kernels ------------------------------

def _linear_kernel(x_ref, w_ref, b_ref, o_ref):
    acc = jnp.dot(x_ref[...].astype(jnp.bfloat16), w_ref[...],
                  preferred_element_type=jnp.float32)
    o_ref[...] = (acc + b_ref[...]).astype(o_ref.dtype)


def _add_linear_kernel(x_ref, y_ref, w_ref, b_ref, o_ref):
    xs = (x_ref[...] + y_ref[...]).astype(jnp.bfloat16)   # pos-add folded in
    acc = jnp.dot(xs, w_ref[...], preferred_element_type=jnp.float32)
    o_ref[...] = (acc + b_ref[...]).astype(o_ref.dtype)


def _qkv_pos_kernel(x_ref, pos_ref, wqk_ref, bqk_ref, wv_ref, bv_ref, o_ref):
    """Fused QKV projection: q,k from (x+pos), v from x. Output [q|k|v]."""
    x = x_ref[...]
    xq = (x + pos_ref[...]).astype(jnp.bfloat16)
    qk = jnp.dot(xq, wqk_ref[...], preferred_element_type=jnp.float32) + bqk_ref[...]
    v = jnp.dot(x.astype(jnp.bfloat16), wv_ref[...],
                preferred_element_type=jnp.float32) + bv_ref[...]
    n_qk = wqk_ref.shape[1]                                 # static, 128-aligned
    o_ref[:, :n_qk] = qk.astype(o_ref.dtype)
    o_ref[:, n_qk:] = v.astype(o_ref.dtype)


def _out_ln_kernel(ctx_ref, res_ref, w_ref, b_ref, g_ref, be_ref, o_ref, *, eps):
    """Fused attention out-proj + residual add + LayerNorm."""
    y = jnp.dot(ctx_ref[...].astype(jnp.bfloat16), w_ref[...],
                preferred_element_type=jnp.float32)
    y = y + b_ref[...] + res_ref[...]
    mu = jnp.mean(y, axis=-1, keepdims=True)
    var = jnp.mean(jnp.square(y - mu), axis=-1, keepdims=True)
    o_ref[...] = ((y - mu) * lax.rsqrt(var + eps) * g_ref[...] + be_ref[...]
                  ).astype(o_ref.dtype)


def _ffn_kernel(x_ref, w1_ref, b1_ref, w2_ref, b2_ref, g_ref, be_ref, o_ref, *, eps):
    """Fused linear1 + ReLU + linear2 + residual + LayerNorm(norm3)."""
    x = x_ref[...]
    h = jnp.dot(x.astype(jnp.bfloat16), w1_ref[...],
                preferred_element_type=jnp.float32)
    h = jnp.maximum(h + b1_ref[...], 0.0)
    y = jnp.dot(h.astype(jnp.bfloat16), w2_ref[...],
                preferred_element_type=jnp.float32)
    y = y + b2_ref[...] + x
    mu = jnp.mean(y, axis=-1, keepdims=True)
    var = jnp.mean(jnp.square(y - mu), axis=-1, keepdims=True)
    o_ref[...] = ((y - mu) * lax.rsqrt(var + eps) * g_ref[...] + be_ref[...]
                  ).astype(o_ref.dtype)


# ----------------------------- Pallas wrappers -----------------------------

def _call_rowwise(kernel, row_inputs, const_inputs, n_out):
    """Run `kernel` tiled over the row axis of `row_inputs` (each (M, K_i));
    `const_inputs` are resident in VMEM (constant index_map). Output (M, n_out) f32."""
    m = row_inputs[0].shape[0]
    tm, mp = _m_tiling(m)
    padded = [_pad_rows(a, mp) for a in row_inputs]
    row_specs = [pl.BlockSpec((tm, a.shape[1]), lambda i: (i, 0)) for a in row_inputs]
    const_specs = [pl.BlockSpec(a.shape, lambda i: (0, 0)) for a in const_inputs]
    out = pl.pallas_call(
        kernel,
        out_shape=jax.ShapeDtypeStruct((mp, n_out), jnp.float32),
        grid_spec=pltpu.PrefetchScalarGridSpec(
            num_scalar_prefetch=0,
            grid=(mp // tm,),
            in_specs=row_specs + const_specs,
            out_specs=pl.BlockSpec((tm, n_out), lambda i: (i, 0)),
        ),
        compiler_params=_COMPILER_PARAMS,
    )(*padded, *const_inputs)
    return out if mp == m else out[:m]


def linear_pallas(x2d, w, b):
    n = w.shape[1]
    return _call_rowwise(_linear_kernel, [x2d], [w, b.reshape(1, n)], n)


def add_linear_pallas(x2d, y2d, w, b):
    n = w.shape[1]
    return _call_rowwise(_add_linear_kernel, [x2d, y2d], [w, b.reshape(1, n)], n)


def qkv_pos_pallas(x2d, pos2d, wqk, bqk, wv, bv):
    n = wqk.shape[1] + wv.shape[1]
    return _call_rowwise(_qkv_pos_kernel, [x2d, pos2d],
                         [wqk, bqk.reshape(1, -1), wv, bv.reshape(1, -1)], n)


def out_ln_pallas(ctx2d, res2d, w, b, g, be):
    c = w.shape[1]
    return _call_rowwise(functools.partial(_out_ln_kernel, eps=_LN_EPS),
                         [ctx2d, res2d],
                         [w, b.reshape(1, c), g.reshape(1, c), be.reshape(1, c)], c)


def ffn_pallas(x2d, p):
    c = p["w2"].shape[1]
    dff = p["w1"].shape[1]
    return _call_rowwise(functools.partial(_ffn_kernel, eps=_LN_EPS),
                         [x2d],
                         [p["w1"], p["b1"].reshape(1, dff),
                          p["w2"], p["b2"].reshape(1, c),
                          p["g"].reshape(1, c), p["b"].reshape(1, c)], c)


# -------------------------- pure-JAX reference impls ------------------------

def _ln_ref(y, g, b):
    mu = jnp.mean(y, axis=-1, keepdims=True)
    var = jnp.mean(jnp.square(y - mu), axis=-1, keepdims=True)
    return (y - mu) * lax.rsqrt(var + _LN_EPS) * g + b


def linear_ref(x2d, w, b):
    return jnp.dot(x2d.astype(jnp.bfloat16), w, preferred_element_type=jnp.float32) + b


def add_linear_ref(x2d, y2d, w, b):
    return jnp.dot((x2d + y2d).astype(jnp.bfloat16), w,
                   preferred_element_type=jnp.float32) + b


def qkv_pos_ref(x2d, pos2d, wqk, bqk, wv, bv):
    qk = jnp.dot((x2d + pos2d).astype(jnp.bfloat16), wqk,
                 preferred_element_type=jnp.float32) + bqk
    v = jnp.dot(x2d.astype(jnp.bfloat16), wv,
                preferred_element_type=jnp.float32) + bv
    return jnp.concatenate([qk, v], axis=-1)


def out_ln_ref(ctx2d, res2d, w, b, g, be):
    y = jnp.dot(ctx2d.astype(jnp.bfloat16), w,
                preferred_element_type=jnp.float32) + b + res2d
    return _ln_ref(y, g, be)


def ffn_ref(x2d, p):
    h = jnp.dot(x2d.astype(jnp.bfloat16), p["w1"],
                preferred_element_type=jnp.float32) + p["b1"]
    h = jnp.maximum(h, 0.0)
    y = jnp.dot(h.astype(jnp.bfloat16), p["w2"],
                preferred_element_type=jnp.float32) + p["b2"] + x2d
    return _ln_ref(y, p["g"], p["b"])


# ----------------------- MSDeformAttn sampling cores ------------------------

def _bilinear_sample_zeros(img, grid):
    """img: (H, W, D); grid: (Lq, P, 2) in [-1, 1] (grid_sample, align_corners=False,
    padding_mode='zeros'). Reference (gather-based) implementation."""
    h, w, _ = img.shape
    gx = grid[..., 0]
    gy = grid[..., 1]
    x = ((gx + 1.0) * w - 1.0) * 0.5
    y = ((gy + 1.0) * h - 1.0) * 0.5
    x0 = jnp.floor(x)
    y0 = jnp.floor(y)
    x1 = x0 + 1.0
    y1 = y0 + 1.0
    wx1 = x - x0
    wx0 = 1.0 - wx1
    wy1 = y - y0
    wy0 = 1.0 - wy1

    def gather(ix, iy):
        valid = (ix >= 0) & (ix <= w - 1) & (iy >= 0) & (iy <= h - 1)
        ii = jnp.clip(ix, 0, w - 1).astype(jnp.int32)
        jj = jnp.clip(iy, 0, h - 1).astype(jnp.int32)
        vals = img[jj, ii]
        return jnp.where(valid[..., None], vals, 0.0)

    return (gather(x0, y0) * (wx0 * wy0)[..., None]
            + gather(x1, y0) * (wx1 * wy0)[..., None]
            + gather(x0, y1) * (wx0 * wy1)[..., None]
            + gather(x1, y1) * (wx1 * wy1)[..., None])


def _ms_deform_core_gather(value, spatial_shapes, sampling_locations, attention_weights):
    """Reference core: nested-vmap bilinear gather (slow on TPU)."""
    b, _, nh, hd = value.shape
    lq = sampling_locations.shape[1]
    out = jnp.zeros((b, lq, nh, hd), jnp.float32)
    start = 0
    for lid, (hh, ww) in enumerate(spatial_shapes):
        v_l = value[:, start:start + hh * ww]
        start += hh * ww
        v_l = v_l.reshape(b, hh, ww, nh, hd).transpose(0, 3, 1, 2, 4)     # (B,nH,H,W,hd)
        grid = 2.0 * sampling_locations[:, :, :, lid] - 1.0                # (B,Lq,nH,P,2)
        grid = grid.transpose(0, 2, 1, 3, 4)                               # (B,nH,Lq,P,2)
        samp = jax.vmap(jax.vmap(_bilinear_sample_zeros))(v_l, grid)       # (B,nH,Lq,P,hd)
        w_l = attention_weights[:, :, :, lid].transpose(0, 2, 1, 3)        # (B,nH,Lq,P)
        out = out + (samp * w_l[..., None]).sum(axis=3).transpose(0, 2, 1, 3)
    return out.reshape(b, lq, nh * hd)


def _ms_deform_core_matmul(value, spatial_shapes, sampling_locations, attention_weights):
    """Deployment core: the 4-tap bilinear sample (with the per-point attention
    weight folded in) is expressed per level as a dense (Lq, H*W) weight matrix
    built from one-hot compares, then contracted against the level's values via
    a batched matmul. Avoids XLA gathers entirely (VPU compares + MXU matmuls).
    # TODO(synk): a dedicated Pallas kernel with the level's value resident in
    # VMEM and scalar-indexed gathers would remove the one-hot construction."""
    b, _, nh, hd = value.shape
    lq = sampling_locations.shape[1]
    out = jnp.zeros((b, lq, nh, hd), jnp.float32)
    start = 0
    for lid, (hh, ww) in enumerate(spatial_shapes):
        s = hh * ww
        v_l = value[:, start:start + s].transpose(0, 2, 1, 3)              # (B,nH,S,hd)
        start += s
        loc = sampling_locations[:, :, :, lid]                             # (B,Lq,nH,P,2)
        x = loc[..., 0] * ww - 0.5                                         # grid_sample coords
        y = loc[..., 1] * hh - 0.5                                         # (align_corners=False)
        x0 = jnp.floor(x)
        y0 = jnp.floor(y)
        aw_l = attention_weights[:, :, :, lid]                             # (B,Lq,nH,P)
        col_ids = lax.broadcasted_iota(jnp.int32, (1, 1, 1, 1, s), 4)
        wmat = jnp.zeros((b, lq, nh, s), jnp.float32)
        for dx in (0, 1):
            for dy in (0, 1):
                xi = x0 + dx
                yi = y0 + dy
                wgt = (1.0 - jnp.abs(x - xi)) * (1.0 - jnp.abs(y - yi))
                valid = (xi >= 0) & (xi <= ww - 1) & (yi >= 0) & (yi <= hh - 1)
                wgt = jnp.where(valid, wgt * aw_l, 0.0)                    # (B,Lq,nH,P)
                idx = (jnp.clip(yi, 0, hh - 1).astype(jnp.int32) * ww
                       + jnp.clip(xi, 0, ww - 1).astype(jnp.int32))        # (B,Lq,nH,P)
                tap = jnp.where(idx[..., None] == col_ids, wgt[..., None], 0.0)
                wmat = wmat + tap.sum(axis=3)                              # (B,Lq,nH,S)
        out = out + jnp.einsum("bqhs,bhsd->bqhd", wmat, v_l,
                               preferred_element_type=jnp.float32)
    return out.reshape(b, lq, nh * hd)


# ------------------------------ shared model math ---------------------------

def decoder_forward(params, tgt, query_pos, reference_points, src, *,
                    spatial_shapes, n_heads, n_levels, n_points, ops):
    b, np_, npt, c = tgt.shape
    hd = c // n_heads
    scale = 1.0 / math.sqrt(hd)

    def attention_core(qkv, bn, l):
        # TODO(synk): tiny (L<=8) softmax attention core stays in jnp; fusing the
        # whole MHA into one pallas_call is the next structural win.
        q = qkv[:, :c].reshape(bn, l, n_heads, hd)
        k = qkv[:, c:2 * c].reshape(bn, l, n_heads, hd)
        v = qkv[:, 2 * c:].reshape(bn, l, n_heads, hd)
        logits = jnp.einsum("bqhd,bkhd->bhqk", q, k,
                            preferred_element_type=jnp.float32) * scale
        attn = jax.nn.softmax(logits, axis=-1)
        ctx = jnp.einsum("bhqk,bkhd->bqhd", attn, v,
                         preferred_element_type=jnp.float32)
        return ctx.reshape(bn * l, c)

    pos2d = query_pos.reshape(-1, c)

    # ---- intra self-attention (over the points of each proposal) ----
    pa = params["attn_intra"]
    x2d = tgt.reshape(-1, c)
    qkv = ops["qkv_pos"](x2d, pos2d, pa["w_qk"], pa["b_qk"], pa["w_v"], pa["b_v"])
    ctx = attention_core(qkv, b * np_, npt)
    tgt = ops["out_ln"](ctx, x2d, pa["w_o"], pa["b_o"], pa["g"], pa["b"]
                        ).reshape(b, np_, npt, c)

    # ---- inter self-attention (over proposals, per point index; no pos embed) ----
    pb = params["attn_inter"]
    ti = jnp.swapaxes(tgt, 1, 2)                               # (B, NPt, NP, C)
    ti2d = ti.reshape(-1, c)
    qkv = ops["linear"](ti2d, pb["w_qkv"], pb["b_qkv"])
    ctx = attention_core(qkv, b * npt, np_)
    ti = ops["out_ln"](ctx, ti2d, pb["w_o"], pb["b_o"], pb["g"], pb["b"]
                       ).reshape(b, npt, np_, c)
    tgt_inter = jnp.swapaxes(ti, 1, 2)                          # (B, NP, NPt, C)

    # ---- cross multi-scale deformable attention ----
    pc = params["cross"]
    lq = np_ * npt
    lin = src.shape[1]
    ti2d = tgt_inter.reshape(-1, c)
    value = ops["linear"](src.reshape(-1, c), pc["value_w"], pc["value_b"]
                          ).reshape(b, lin, n_heads, hd)
    offaw = ops["add_linear"](ti2d, pos2d, pc["offaw_w"], pc["offaw_b"])
    n_off = n_heads * n_levels * n_points * 2
    off = offaw[:, :n_off].reshape(b, lq, n_heads, n_levels, n_points, 2)
    aw = offaw[:, n_off:].reshape(b, lq, n_heads, n_levels * n_points)
    aw = jax.nn.softmax(aw, axis=-1).reshape(b, lq, n_heads, n_levels, n_points)
    offset_normalizer = jnp.array([[ww, hh] for (hh, ww) in spatial_shapes], jnp.float32)
    ref_loc = jnp.broadcast_to(reference_points[:, :, None, :, :],
                               (b, np_, npt, n_levels, 2)).reshape(b, lq, n_levels, 2)
    loc = (ref_loc[:, :, None, :, None, :]
           + off / offset_normalizer[None, None, None, :, None, :])
    sampled = ops["deform_core"](value, spatial_shapes, loc, aw)            # (B, Lq, C)
    tgt = ops["out_ln"](sampled.reshape(-1, c), ti2d,
                        pc["out_w"], pc["out_b"], pc["g"], pc["b"]
                        ).reshape(b, np_, npt, c)

    # ---- FFN (fused linear1 + ReLU + linear2 + residual + LayerNorm) ----
    tgt = ops["ffn"](tgt.reshape(-1, c), params["ffn"]).reshape(b, np_, npt, c)
    return tgt


# ------------------------------ parameter init ------------------------------

def _init_linear_params(key, fan_in, fan_out):
    kw, kb = jax.random.split(key)
    bound = 1.0 / math.sqrt(fan_in)
    w = jax.random.uniform(kw, (fan_in, fan_out), jnp.float32, -bound, bound
                           ).astype(jnp.bfloat16)
    b = jax.random.uniform(kb, (fan_out,), jnp.float32, -bound, bound)
    return w, b


def init_decoder_params(key, d_model, d_ffn, n_heads, n_levels, n_points):
    keys = jax.random.split(key, 5)

    def ln():
        return (jnp.ones((d_model,), jnp.float32), jnp.zeros((d_model,), jnp.float32))

    def intra_params(k):
        k0, k1, k2, k3 = jax.random.split(k, 4)
        wq, bq = _init_linear_params(k0, d_model, d_model)
        wk, bk = _init_linear_params(k1, d_model, d_model)
        wv, bv = _init_linear_params(k2, d_model, d_model)
        wo, bo = _init_linear_params(k3, d_model, d_model)
        g, bt = ln()
        return dict(w_qk=jnp.concatenate([wq, wk], axis=1),
                    b_qk=jnp.concatenate([bq, bk]),
                    w_v=wv, b_v=bv, w_o=wo, b_o=bo, g=g, b=bt)

    def inter_params(k):
        k0, k1, k2, k3 = jax.random.split(k, 4)
        wq, bq = _init_linear_params(k0, d_model, d_model)
        wk, bk = _init_linear_params(k1, d_model, d_model)
        wv, bv = _init_linear_params(k2, d_model, d_model)
        wo, bo = _init_linear_params(k3, d_model, d_model)
        g, bt = ln()
        return dict(w_qkv=jnp.concatenate([wq, wk, wv], axis=1),
                    b_qkv=jnp.concatenate([bq, bk, bv]),
                    w_o=wo, b_o=bo, g=g, b=bt)

    kv, ko, ka, kout = jax.random.split(keys[2], 4)
    value_w, value_b = _init_linear_params(kv, d_model, d_model)
    off_w, off_b = _init_linear_params(ko, d_model, n_heads * n_levels * n_points * 2)
    aw_w, aw_b = _init_linear_params(ka, d_model, n_heads * n_levels * n_points)
    out_w, out_b = _init_linear_params(kout, d_model, d_model)
    gc, bc = ln()
    w1, b1 = _init_linear_params(keys[3], d_model, d_ffn)
    w2, b2 = _init_linear_params(keys[4], d_ffn, d_model)
    gf, bf = ln()

    return dict(
        attn_intra=intra_params(keys[0]),
        attn_inter=inter_params(keys[1]),
        cross=dict(value_w=value_w, value_b=value_b,
                   offaw_w=jnp.concatenate([off_w, aw_w], axis=1),
                   offaw_b=jnp.concatenate([off_b, aw_b]),
                   out_w=out_w, out_b=out_b, g=gc, b=bc),
        ffn=dict(w1=w1, b1=b1, w2=w2, b2=b2, g=gf, b=bf),
    )


# ----------------------------------- main -----------------------------------

if __name__ == "__main__":
    d_model, d_ffn, n_heads, n_levels, n_points = 256, 1024, 8, 4, 4
    bs, n_prop, n_pts = 2, 4, 8
    spatial_shapes = ((16, 16), (8, 8), (4, 4), (2, 2))
    len_in = sum(h * w for h, w in spatial_shapes)

    root = jax.random.PRNGKey(0)
    kp, kt, kq, kr, ks = jax.random.split(root, 5)
    params = init_decoder_params(kp, d_model, d_ffn, n_heads, n_levels, n_points)

    tgt = jax.random.normal(kt, (bs, n_prop, n_pts, d_model), jnp.float32)
    query_pos = jax.random.normal(kq, (bs, n_prop, n_pts, d_model), jnp.float32)
    reference_points = jax.random.uniform(kr, (bs, n_prop, n_levels, 2), jnp.float32)
    src = jax.random.normal(ks, (bs, len_in, d_model), jnp.float32)

    cfg = dict(spatial_shapes=spatial_shapes, n_heads=n_heads,
               n_levels=n_levels, n_points=n_points)
    ops_pallas = dict(linear=linear_pallas, add_linear=add_linear_pallas,
                      qkv_pos=qkv_pos_pallas, out_ln=out_ln_pallas, ffn=ffn_pallas,
                      deform_core=_ms_deform_core_matmul)
    ops_ref = dict(linear=linear_ref, add_linear=add_linear_ref,
                   qkv_pos=qkv_pos_ref, out_ln=out_ln_ref, ffn=ffn_ref,
                   deform_core=_ms_deform_core_gather)

    fwd_pallas = jax.jit(functools.partial(decoder_forward, params, **cfg, ops=ops_pallas))
    fwd_ref = jax.jit(functools.partial(decoder_forward, params, **cfg, ops=ops_ref))

    out = jax.block_until_ready(fwd_pallas(tgt, query_pos, reference_points, src))
    ref = jax.block_until_ready(fwd_ref(tgt, query_pos, reference_points, src))

    assert out.shape == (bs, n_prop, n_pts, d_model), out.shape
    max_err = float(jnp.max(jnp.abs(out - ref)))
    assert jnp.allclose(out, ref, atol=5e-3, rtol=5e-3), f"mismatch vs reference: {max_err}"

    print("KERNEL_OK")
</pallas_src>

<mosaic_0001>
module attributes {stable_mosaic.version = 11 : i64} {
  func.func @_qkv_pos_kernel(%arg0: i32, %arg1: memref<32x256xf32, #tpu.memory_space<vmem>>, %arg2: memref<32x256xf32, #tpu.memory_space<vmem>>, %arg3: memref<256x512xbf16, #tpu.memory_space<vmem>>, %arg4: memref<1x512xf32, #tpu.memory_space<vmem>>, %arg5: memref<256x256xbf16, #tpu.memory_space<vmem>>, %arg6: memref<1x256xf32, #tpu.memory_space<vmem>>, %arg7: memref<32x768xf32, #tpu.memory_space<vmem>>) attributes {dimension_semantics = [#tpu.dimension_semantics<parallel>], iteration_bounds = array<i64: 2>, scalar_prefetch = 0 : i64, scratch_operands = 0 : i64, tpu.core_type = #tpu.core_type<tc>, window_params = [{transform_indices = @transform_0, window_bounds = array<i64: 32, 256>}, {transform_indices = @transform_1, window_bounds = array<i64: 32, 256>}, {pipeline_mode = #tpu.pipeline_mode<synchronous>, transform_indices = @transform_2, window_bounds = array<i64: 256, 512>}, {pipeline_mode = #tpu.pipeline_mode<synchronous>, transform_indices = @transform_3, window_bounds = array<i64: 1, 512>}, {pipeline_mode = #tpu.pipeline_mode<synchronous>, transform_indices = @transform_4, window_bounds = array<i64: 256, 256>}, {pipeline_mode = #tpu.pipeline_mode<synchronous>, transform_indices = @transform_5, window_bounds = array<i64: 1, 256>}, {transform_indices = @transform_6, window_bounds = array<i64: 32, 768>}]} {
    %c0 = arith.constant 0 : index
    %c0_0 = arith.constant 0 : index
    %0 = vector.load %arg1[%c0, %c0_0] : memref<32x256xf32, #tpu.memory_space<vmem>>, vector<32x256xf32>
    %c0_1 = arith.constant 0 : index
    %c0_2 = arith.constant 0 : index
    %1 = vector.load %arg2[%c0_1, %c0_2] : memref<32x256xf32, #tpu.memory_space<vmem>>, vector<32x256xf32>
    %2 = arith.addf %0, %1 : vector<32x256xf32>
    %3 = arith.truncf %2 : vector<32x256xf32> to vector<32x256xbf16>
    %c0_3 = arith.constant 0 : index
    %c0_4 = arith.constant 0 : index
    %4 = vector.load %arg3[%c0_3, %c0_4] : memref<256x512xbf16, #tpu.memory_space<vmem>>, vector<256x512xbf16>
    %cst = arith.constant dense<0.000000e+00> : vector<32x512xf32>
    %5 = tpu.matmul %3, %4, %cst {dimension_numbers = #tpu.dot_dimension_numbers<[1], [0], [0], [1], [0, 0, 1, 1], [], []>} : vector<32x256xbf16>, vector<256x512xbf16>, vector<32x512xf32> -> vector<32x512xf32>
    %c0_5 = arith.constant 0 : index
    %c0_6 = arith.constant 0 : index
    %6 = vector.load %arg4[%c0_5, %c0_6] : memref<1x512xf32, #tpu.memory_space<vmem>>, vector<1x512xf32>
    %7 = vector.broadcast %6 : vector<1x512xf32> to vector<32x512xf32>
    %8 = arith.addf %5, %7 : vector<32x512xf32>
    %9 = arith.truncf %0 : vector<32x256xf32> to vector<32x256xbf16>
    %c0_7 = arith.constant 0 : index
    %c0_8 = arith.constant 0 : index
    %10 = vector.load %arg5[%c0_7, %c0_8] : memref<256x256xbf16, #tpu.memory_space<vmem>>, vector<256x256xbf16>
    %cst_9 = arith.constant dense<0.000000e+00> : vector<32x256xf32>
    %11 = tpu.matmul %9, %10, %cst_9 {dimension_numbers = #tpu.dot_dimension_numbers<[1], [0], [0], [1], [0, 0, 1, 1], [], []>} : vector<32x256xbf16>, vector<256x256xbf16>, vector<32x256xf32> -> vector<32x256xf32>
    %c0_10 = arith.constant 0 : index
    %c0_11 = arith.constant 0 : index
    %12 = vector.load %arg6[%c0_10, %c0_11] : memref<1x256xf32, #tpu.memory_space<vmem>>, vector<1x256xf32>
    %13 = vector.broadcast %12 : vector<1x256xf32> to vector<32x256xf32>
    %14 = arith.addf %11, %13 : vector<32x256xf32>
    %c0_12 = arith.constant 0 : index
    %c0_13 = arith.constant 0 : index
    %15 = vector.load %arg7[%c0_12, %c0_13] : memref<32x768xf32, #tpu.memory_space<vmem>>, vector<32x512xf32>
    tpu.vector_store %arg7[%c0_12, %c0_13], %8 {strides = array<i32>} : memref<32x768xf32, #tpu.memory_space<vmem>>, vector<32x512xf32>,
    %c0_14 = arith.constant 0 : index
    %c512 = arith.constant 512 : index
    %16 = vector.load %arg7[%c0_14, %c512] : memref<32x768xf32, #tpu.memory_space<vmem>>, vector<32x256xf32>
    tpu.vector_store %arg7[%c0_14, %c512], %14 {strides = array<i32>} : memref<32x768xf32, #tpu.memory_space<vmem>>, vector<32x256xf32>,
    return
  }
  func.func @transform_0(%arg0: i32) -> (i32, i32) {
    %c0_i32 = arith.constant 0 : i32
    %c0_i32_0 = arith.constant 0 : i32
    return %arg0, %c0_i32 : i32, i32
  }
  func.func @transform_1(%arg0: i32) -> (i32, i32) {
    %c0_i32 = arith.constant 0 : i32
    %c0_i32_0 = arith.constant 0 : i32
    return %arg0, %c0_i32 : i32, i32
  }
  func.func @transform_2(%arg0: i32) -> (i32, i32) {
    %c0_i32 = arith.constant 0 : i32
    %c0_i32_0 = arith.constant 0 : i32
    %c0_i32_1 = arith.constant 0 : i32
    return %c0_i32, %c0_i32_0 : i32, i32
  }
  func.func @transform_3(%arg0: i32) -> (i32, i32) {
    %c0_i32 = arith.constant 0 : i32
    %c0_i32_0 = arith.constant 0 : i32
    %c0_i32_1 = arith.constant 0 : i32
    return %c0_i32, %c0_i32_0 : i32, i32
  }
  func.func @transform_4(%arg0: i32) -> (i32, i32) {
    %c0_i32 = arith.constant 0 : i32
    %c0_i32_0 = arith.constant 0 : i32
    %c0_i32_1 = arith.constant 0 : i32
    return %c0_i32, %c0_i32_0 : i32, i32
  }
  func.func @transform_5(%arg0: i32) -> (i32, i32) {
    %c0_i32 = arith.constant 0 : i32
    %c0_i32_0 = arith.constant 0 : i32
    %c0_i32_1 = arith.constant 0 : i32
    return %c0_i32, %c0_i32_0 : i32, i32
  }
  func.func @transform_6(%arg0: i32) -> (i32, i32) {
    %c0_i32 = arith.constant 0 : i32
    %c0_i32_0 = arith.constant 0 : i32
    return %arg0, %c0_i32 : i32, i32
  }
}

module attributes {stable_mosaic.version = 11 : i64} {
  func.func @_out_ln_kernel(%arg0: i32, %arg1: memref<32x256xf32, #tpu.memory_space<vmem>>, %arg2: memref<32x256xf32, #tpu.memory_space<vmem>>, %arg3: memref<256x256xbf16, #tpu.memory_space<vmem>>, %arg4: memref<1x256xf32, #tpu.memory_space<vmem>>, %arg5: memref<1x256xf32, #tpu.memory_space<vmem>>, %arg6: memref<1x256xf32, #tpu.memory_space<vmem>>, %arg7: memref<32x256xf32, #tpu.memory_space<vmem>>) attributes {dimension_semantics = [#tpu.dimension_semantics<parallel>], iteration_bounds = array<i64: 2>, scalar_prefetch = 0 : i64, scratch_operands = 0 : i64, tpu.core_type = #tpu.core_type<tc>, window_params = [{transform_indices = @transform_0, window_bounds = array<i64: 32, 256>}, {transform_indices = @transform_1, window_bounds = array<i64: 32, 256>}, {pipeline_mode = #tpu.pipeline_mode<synchronous>, transform_indices = @transform_2, window_bounds = array<i64: 256, 256>}, {pipeline_mode = #tpu.pipeline_mode<synchronous>, transform_indices = @transform_3, window_bounds = array<i64: 1, 256>}, {pipeline_mode = #tpu.pipeline_mode<synchronous>, transform_indices = @transform_4, window_bounds = array<i64: 1, 256>}, {pipeline_mode = #tpu.pipeline_mode<synchronous>, transform_indices = @transform_5, window_bounds = array<i64: 1, 256>}, {transform_indices = @transform_6, window_bounds = array<i64: 32, 256>}]} {
    %c0 = arith.constant 0 : index
    %c0_0 = arith.constant 0 : index
    %0 = vector.load %arg1[%c0, %c0_0] : memref<32x256xf32, #tpu.memory_space<vmem>>, vector<32x256xf32>
    %1 = arith.truncf %0 : vector<32x256xf32> to vector<32x256xbf16>
    %c0_1 = arith.constant 0 : index
    %c0_2 = arith.constant 0 : index
    %2 = vector.load %arg3[%c0_1, %c0_2] : memref<256x256xbf16, #tpu.memory_space<vmem>>, vector<256x256xbf16>
    %cst = arith.constant dense<0.000000e+00> : vector<32x256xf32>
    %3 = tpu.matmul %1, %2, %cst {dimension_numbers = #tpu.dot_dimension_numbers<[1], [0], [0], [1], [0, 0, 1, 1], [], []>} : vector<32x256xbf16>, vector<256x256xbf16>, vector<32x256xf32> -> vector<32x256xf32>
    %c0_3 = arith.constant 0 : index
    %c0_4 = arith.constant 0 : index
    %4 = vector.load %arg4[%c0_3, %c0_4] : memref<1x256xf32, #tpu.memory_space<vmem>>, vector<1x256xf32>
    %5 = vector.broadcast %4 : vector<1x256xf32> to vector<32x256xf32>
    %6 = arith.addf %3, %5 : vector<32x256xf32>
    %c0_5 = arith.constant 0 : index
    %c0_6 = arith.constant 0 : index
    %7 = vector.load %arg2[%c0_5, %c0_6] : memref<32x256xf32, #tpu.memory_space<vmem>>, vector<32x256xf32>
    %8 = arith.addf %6, %7 : vector<32x256xf32>
    %cst_7 = arith.constant dense<0.000000e+00> : vector<32xf32>
    %9 = vector.multi_reduction <add>, %8, %cst_7 [1] : vector<32x256xf32> to vector<32xf32>
    %10 = vector.shape_cast %9 : vector<32xf32> to vector<32x1xf32>
    %cst_8 = arith.constant 2.560000e+02 : f32
    %11 = vector.broadcast %cst_8 : f32 to vector<32x1xf32>
    %12 = arith.divf %10, %11 : vector<32x1xf32>
    %13 = vector.broadcast %12 : vector<32x1xf32> to vector<32x256xf32>
    %14 = arith.subf %8, %13 : vector<32x256xf32>
    %15 = arith.mulf %14, %14 : vector<32x256xf32>
    %cst_9 = arith.constant dense<0.000000e+00> : vector<32xf32>
    %16 = vector.multi_reduction <add>, %15, %cst_9 [1] : vector<32x256xf32> to vector<32xf32>
    %17 = vector.shape_cast %16 : vector<32xf32> to vector<32x1xf32>
    %cst_10 = arith.constant 2.560000e+02 : f32
    %18 = vector.broadcast %cst_10 : f32 to vector<32x1xf32>
    %19 = arith.divf %17, %18 : vector<32x1xf32>
    %20 = vector.broadcast %12 : vector<32x1xf32> to vector<32x256xf32>
    %21 = arith.subf %8, %20 : vector<32x256xf32>
    %cst_11 = arith.constant 9.99999974E-6 : f32
    %22 = vector.broadcast %cst_11 : f32 to vector<32x1xf32>
    %23 = arith.addf %19, %22 : vector<32x1xf32>
    %24 = math.rsqrt %23 : vector<32x1xf32>
    %25 = vector.broadcast %24 : vector<32x1xf32> to vector<32x256xf32>
    %26 = arith.mulf %21, %25 : vector<32x256xf32>
    %c0_12 = arith.constant 0 : index
    %c0_13 = arith.constant 0 : index
    %27 = vector.load %arg5[%c0_12, %c0_13] : memref<1x256xf32, #tpu.memory_space<vmem>>, vector<1x256xf32>
    %28 = vector.broadcast %27 : vector<1x256xf32> to vector<32x256xf32>
    %29 = arith.mulf %26, %28 : vector<32x256xf32>
    %c0_14 = arith.constant 0 : index
    %c0_15 = arith.constant 0 : index
    %30 = vector.load %arg6[%c0_14, %c0_15] : memref<1x256xf32, #tpu.memory_space<vmem>>, vector<1x256xf32>
    %31 = vector.broadcast %30 : vector<1x256xf32> to vector<32x256xf32>
    %32 = arith.addf %29, %31 : vector<32x256xf32>
    %c0_16 = arith.constant 0 : index
    %c0_17 = arith.constant 0 : index
    %33 = vector.load %arg7[%c0_16, %c0_17] : memref<32x256xf32, #tpu.memory_space<vmem>>, vector<32x256xf32>
    tpu.vector_store %arg7[%c0_16, %c0_17], %32 {strides = array<i32>} : memref<32x256xf32, #tpu.memory_space<vmem>>, vector<32x256xf32>,
    return
  }
  func.func @transform_0(%arg0: i32) -> (i32, i32) {
    %c0_i32 = arith.constant 0 : i32
    %c0_i32_0 = arith.constant 0 : i32
    return %arg0, %c0_i32 : i32, i32
  }
  func.func @transform_1(%arg0: i32) -> (i32, i32) {
    %c0_i32 = arith.constant 0 : i32
    %c0_i32_0 = arith.constant 0 : i32
    return %arg0, %c0_i32 : i32, i32
  }
  func.func @transform_2(%arg0: i32) -> (i32, i32) {
    %c0_i32 = arith.constant 0 : i32
    %c0_i32_0 = arith.constant 0 : i32
    %c0_i32_1 = arith.constant 0 : i32
    return %c0_i32, %c0_i32_0 : i32, i32
  }
  func.func @transform_3(%arg0: i32) -> (i32, i32) {
    %c0_i32 = arith.constant 0 : i32
    %c0_i32_0 = arith.constant 0 : i32
    %c0_i32_1 = arith.constant 0 : i32
    return %c0_i32, %c0_i32_0 : i32, i32
  }
  func.func @transform_4(%arg0: i32) -> (i32, i32) {
    %c0_i32 = arith.constant 0 : i32
    %c0_i32_0 = arith.constant 0 : i32
    %c0_i32_1 = arith.constant 0 : i32
    return %c0_i32, %c0_i32_0 : i32, i32
  }
  func.func @transform_5(%arg0: i32) -> (i32, i32) {
    %c0_i32 = arith.constant 0 : i32
    %c0_i32_0 = arith.constant 0 : i32
    %c0_i32_1 = arith.constant 0 : i32
    return %c0_i32, %c0_i32_0 : i32, i32
  }
  func.func @transform_6(%arg0: i32) -> (i32, i32) {
    %c0_i32 = arith.constant 0 : i32
    %c0_i32_0 = arith.constant 0 : i32
    return %arg0, %c0_i32 : i32, i32
  }
}

module attributes {stable_mosaic.version = 11 : i64} {
  func.func @_linear_kernel(%arg0: i32, %arg1: memref<32x256xf32, #tpu.memory_space<vmem>>, %arg2: memref<256x768xbf16, #tpu.memory_space<vmem>>, %arg3: memref<1x768xf32, #tpu.memory_space<vmem>>, %arg4: memref<32x768xf32, #tpu.memory_space<vmem>>) attributes {dimension_semantics = [#tpu.dimension_semantics<parallel>], iteration_bounds = array<i64: 2>, scalar_prefetch = 0 : i64, scratch_operands = 0 : i64, tpu.core_type = #tpu.core_type<tc>, window_params = [{transform_indices = @transform_0, window_bounds = array<i64: 32, 256>}, {pipeline_mode = #tpu.pipeline_mode<synchronous>, transform_indices = @transform_1, window_bounds = array<i64: 256, 768>}, {pipeline_mode = #tpu.pipeline_mode<synchronous>, transform_indices = @transform_2, window_bounds = array<i64: 1, 768>}, {transform_indices = @transform_3, window_bounds = array<i64: 32, 768>}]} {
    %c0 = arith.constant 0 : index
    %c0_0 = arith.constant 0 : index
    %0 = vector.load %arg1[%c0, %c0_0] : memref<32x256xf32, #tpu.memory_space<vmem>>, vector<32x256xf32>
    %1 = arith.truncf %0 : vector<32x256xf32> to vector<32x256xbf16>
    %c0_1 = arith.constant 0 : index
    %c0_2 = arith.constant 0 : index
    %2 = vector.load %arg2[%c0_1, %c0_2] : memref<256x768xbf16, #tpu.memory_space<vmem>>, vector<256x768xbf16>
    %cst = arith.constant dense<0.000000e+00> : vector<32x768xf32>
    %3 = tpu.matmul %1, %2, %cst {dimension_numbers = #tpu.dot_dimension_numbers<[1], [0], [0], [1], [0, 0, 1, 1], [], []>} : vector<32x256xbf16>, vector<256x768xbf16>, vector<32x768xf32> -> vector<32x768xf32>
    %c0_3 = arith.constant 0 : index
    %c0_4 = arith.constant 0 : index
    %4 = vector.load %arg3[%c0_3, %c0_4] : memref<1x768xf32, #tpu.memory_space<vmem>>, vector<1x768xf32>
    %5 = vector.broadcast %4 : vector<1x768xf32> to vector<32x768xf32>
    %6 = arith.addf %3, %5 : vector<32x768xf32>
    %c0_5 = arith.constant 0 : index
    %c0_6 = arith.constant 0 : index
    %7 = vector.load %arg4[%c0_5, %c0_6] : memref<32x768xf32, #tpu.memory_space<vmem>>, vector<32x768xf32>
    tpu.vector_store %arg4[%c0_5, %c0_6], %6 {strides = array<i32>} : memref<32x768xf32, #tpu.memory_space<vmem>>, vector<32x768xf32>,
    return
  }
  func.func @transform_0(%arg0: i32) -> (i32, i32) {
    %c0_i32 = arith.constant 0 : i32
    %c0_i32_0 = arith.constant 0 : i32
    return %arg0, %c0_i32 : i32, i32
  }
  func.func @transform_1(%arg0: i32) -> (i32, i32) {
    %c0_i32 = arith.constant 0 : i32
    %c0_i32_0 = arith.constant 0 : i32
    %c0_i32_1 = arith.constant 0 : i32
    return %c0_i32, %c0_i32_0 : i32, i32
  }
  func.func @transform_2(%arg0: i32) -> (i32, i32) {
    %c0_i32 = arith.constant 0 : i32
    %c0_i32_0 = arith.constant 0 : i32
    %c0_i32_1 = arith.constant 0 : i32
    return %c0_i32, %c0_i32_0 : i32, i32
  }
  func.func @transform_3(%arg0: i32) -> (i32, i32) {
    %c0_i32 = arith.constant 0 : i32
    %c0_i32_0 = arith.constant 0 : i32
    return %arg0, %c0_i32 : i32, i32
  }
}

module attributes {stable_mosaic.version = 11 : i64} {
  func.func @_add_linear_kernel(%arg0: i32, %arg1: memref<32x256xf32, #tpu.memory_space<vmem>>, %arg2: memref<32x256xf32, #tpu.memory_space<vmem>>, %arg3: memref<256x384xbf16, #tpu.memory_space<vmem>>, %arg4: memref<1x384xf32, #tpu.memory_space<vmem>>, %arg5: memref<32x384xf32, #tpu.memory_space<vmem>>) attributes {dimension_semantics = [#tpu.dimension_semantics<parallel>], iteration_bounds = array<i64: 2>, scalar_prefetch = 0 : i64, scratch_operands = 0 : i64, tpu.core_type = #tpu.core_type<tc>, window_params = [{transform_indices = @transform_0, window_bounds = array<i64: 32, 256>}, {transform_indices = @transform_1, window_bounds = array<i64: 32, 256>}, {pipeline_mode = #tpu.pipeline_mode<synchronous>, transform_indices = @transform_2, window_bounds = array<i64: 256, 384>}, {pipeline_mode = #tpu.pipeline_mode<synchronous>, transform_indices = @transform_3, window_bounds = array<i64: 1, 384>}, {transform_indices = @transform_4, window_bounds = array<i64: 32, 384>}]} {
    %c0 = arith.constant 0 : index
    %c0_0 = arith.constant 0 : index
    %0 = vector.load %arg1[%c0, %c0_0] : memref<32x256xf32, #tpu.memory_space<vmem>>, vector<32x256xf32>
    %c0_1 = arith.constant 0 : index
    %c0_2 = arith.constant 0 : index
    %1 = vector.load %arg2[%c0_1, %c0_2] : memref<32x256xf32, #tpu.memory_space<vmem>>, vector<32x256xf32>
    %2 = arith.addf %0, %1 : vector<32x256xf32>
    %3 = arith.truncf %2 : vector<32x256xf32> to vector<32x256xbf16>
    %c0_3 = arith.constant 0 : index
    %c0_4 = arith.constant 0 : index
    %4 = vector.load %arg3[%c0_3, %c0_4] : memref<256x384xbf16, #tpu.memory_space<vmem>>, vector<256x384xbf16>
    %cst = arith.constant dense<0.000000e+00> : vector<32x384xf32>
    %5 = tpu.matmul %3, %4, %cst {dimension_numbers = #tpu.dot_dimension_numbers<[1], [0], [0], [1], [0, 0, 1, 1], [], []>} : vector<32x256xbf16>, vector<256x384xbf16>, vector<32x384xf32> -> vector<32x384xf32>
    %c0_5 = arith.constant 0 : index
    %c0_6 = arith.constant 0 : index
    %6 = vector.load %arg4[%c0_5, %c0_6] : memref<1x384xf32, #tpu.memory_space<vmem>>, vector<1x384xf32>
    %7 = vector.broadcast %6 : vector<1x384xf32> to vector<32x384xf32>
    %8 = arith.addf %5, %7 : vector<32x384xf32>
    %c0_7 = arith.constant 0 : index
    %c0_8 = arith.constant 0 : index
    %9 = vector.load %arg5[%c0_7, %c0_8] : memref<32x384xf32, #tpu.memory_space<vmem>>, vector<32x384xf32>
    tpu.vector_store %arg5[%c0_7, %c0_8], %8 {strides = array<i32>} : memref<32x384xf32, #tpu.memory_space<vmem>>, vector<32x384xf32>,
    return
  }
  func.func @transform_0(%arg0: i32) -> (i32, i32) {
    %c0_i32 = arith.constant 0 : i32
    %c0_i32_0 = arith.constant 0 : i32
    return %arg0, %c0_i32 : i32, i32
  }
  func.func @transform_1(%arg0: i32) -> (i32, i32) {
    %c0_i32 = arith.constant 0 : i32
    %c0_i32_0 = arith.constant 0 : i32
    return %arg0, %c0_i32 : i32, i32
  }
  func.func @transform_2(%arg0: i32) -> (i32, i32) {
    %c0_i32 = arith.constant 0 : i32
    %c0_i32_0 = arith.constant 0 : i32
    %c0_i32_1 = arith.constant 0 : i32
    return %c0_i32, %c0_i32_0 : i32, i32
  }
  func.func @transform_3(%arg0: i32) -> (i32, i32) {
    %c0_i32 = arith.constant 0 : i32
    %c0_i32_0 = arith.constant 0 : i32
    %c0_i32_1 = arith.constant 0 : i32
    return %c0_i32, %c0_i32_0 : i32, i32
  }
  func.func @transform_4(%arg0: i32) -> (i32, i32) {
    %c0_i32 = arith.constant 0 : i32
    %c0_i32_0 = arith.constant 0 : i32
    return %arg0, %c0_i32 : i32, i32
  }
}

module attributes {stable_mosaic.version = 11 : i64} {
  func.func @_linear_kernel(%arg0: i32, %arg1: memref<344x256xf32, #tpu.memory_space<vmem>>, %arg2: memref<256x256xbf16, #tpu.memory_space<vmem>>, %arg3: memref<1x256xf32, #tpu.memory_space<vmem>>, %arg4: memref<344x256xf32, #tpu.memory_space<vmem>>) attributes {dimension_semantics = [#tpu.dimension_semantics<parallel>], iteration_bounds = array<i64: 2>, scalar_prefetch = 0 : i64, scratch_operands = 0 : i64, tpu.core_type = #tpu.core_type<tc>, window_params = [{transform_indices = @transform_0, window_bounds = array<i64: 344, 256>}, {pipeline_mode = #tpu.pipeline_mode<synchronous>, transform_indices = @transform_1, window_bounds = array<i64: 256, 256>}, {pipeline_mode = #tpu.pipeline_mode<synchronous>, transform_indices = @transform_2, window_bounds = array<i64: 1, 256>}, {transform_indices = @transform_3, window_bounds = array<i64: 344, 256>}]} {
    %c0 = arith.constant 0 : index
    %c0_0 = arith.constant 0 : index
    %0 = vector.load %arg1[%c0, %c0_0] : memref<344x256xf32, #tpu.memory_space<vmem>>, vector<344x256xf32>
    %1 = arith.truncf %0 : vector<344x256xf32> to vector<344x256xbf16>
    %c0_1 = arith.constant 0 : index
    %c0_2 = arith.constant 0 : index
    %2 = vector.load %arg2[%c0_1, %c0_2] : memref<256x256xbf16, #tpu.memory_space<vmem>>, vector<256x256xbf16>
    %cst = arith.constant dense<0.000000e+00> : vector<344x256xf32>
    %3 = tpu.matmul %1, %2, %cst {dimension_numbers = #tpu.dot_dimension_numbers<[1], [0], [0], [1], [0, 0, 1, 1], [], []>} : vector<344x256xbf16>, vector<256x256xbf16>, vector<344x256xf32> -> vector<344x256xf32>
    %c0_3 = arith.constant 0 : index
    %c0_4 = arith.constant 0 : index
    %4 = vector.load %arg3[%c0_3, %c0_4] : memref<1x256xf32, #tpu.memory_space<vmem>>, vector<1x256xf32>
    %5 = vector.broadcast %4 : vector<1x256xf32> to vector<344x256xf32>
    %6 = arith.addf %3, %5 : vector<344x256xf32>
    %c0_5 = arith.constant 0 : index
    %c0_6 = arith.constant 0 : index
    %7 = vector.load %arg4[%c0_5, %c0_6] : memref<344x256xf32, #tpu.memory_space<vmem>>, vector<344x256xf32>
    tpu.vector_store %arg4[%c0_5, %c0_6], %6 {strides = array<i32>} : memref<344x256xf32, #tpu.memory_space<vmem>>, vector<344x256xf32>,
    return
  }
  func.func @transform_0(%arg0: i32) -> (i32, i32) {
    %c0_i32 = arith.constant 0 : i32
    %c0_i32_0 = arith.constant 0 : i32
    return %arg0, %c0_i32 : i32, i32
  }
  func.func @transform_1(%arg0: i32) -> (i32, i32) {
    %c0_i32 = arith.constant 0 : i32
    %c0_i32_0 = arith.constant 0 : i32
    %c0_i32_1 = arith.constant 0 : i32
    return %c0_i32, %c0_i32_0 : i32, i32
  }
  func.func @transform_2(%arg0: i32) -> (i32, i32) {
    %c0_i32 = arith.constant 0 : i32
    %c0_i32_0 = arith.constant 0 : i32
    %c0_i32_1 = arith.constant 0 : i32
    return %c0_i32, %c0_i32_0 : i32, i32
  }
  func.func @transform_3(%arg0: i32) -> (i32, i32) {
    %c0_i32 = arith.constant 0 : i32
    %c0_i32_0 = arith.constant 0 : i32
    return %arg0, %c0_i32 : i32, i32
  }
}

module attributes {stable_mosaic.version = 11 : i64} {
  func.func @_ffn_kernel(%arg0: i32, %arg1: memref<32x256xf32, #tpu.memory_space<vmem>>, %arg2: memref<256x1024xbf16, #tpu.memory_space<vmem>>, %arg3: memref<1x1024xf32, #tpu.memory_space<vmem>>, %arg4: memref<1024x256xbf16, #tpu.memory_space<vmem>>, %arg5: memref<1x256xf32, #tpu.memory_space<vmem>>, %arg6: memref<1x256xf32, #tpu.memory_space<vmem>>, %arg7: memref<1x256xf32, #tpu.memory_space<vmem>>, %arg8: memref<32x256xf32, #tpu.memory_space<vmem>>) attributes {dimension_semantics = [#tpu.dimension_semantics<parallel>], iteration_bounds = array<i64: 2>, scalar_prefetch = 0 : i64, scratch_operands = 0 : i64, tpu.core_type = #tpu.core_type<tc>, window_params = [{transform_indices = @transform_0, window_bounds = array<i64: 32, 256>}, {pipeline_mode = #tpu.pipeline_mode<synchronous>, transform_indices = @transform_1, window_bounds = array<i64: 256, 1024>}, {pipeline_mode = #tpu.pipeline_mode<synchronous>, transform_indices = @transform_2, window_bounds = array<i64: 1, 1024>}, {pipeline_mode = #tpu.pipeline_mode<synchronous>, transform_indices = @transform_3, window_bounds = array<i64: 1024, 256>}, {pipeline_mode = #tpu.pipeline_mode<synchronous>, transform_indices = @transform_4, window_bounds = array<i64: 1, 256>}, {pipeline_mode = #tpu.pipeline_mode<synchronous>, transform_indices = @transform_5, window_bounds = array<i64: 1, 256>}, {pipeline_mode = #tpu.pipeline_mode<synchronous>, transform_indices = @transform_6, window_bounds = array<i64: 1, 256>}, {transform_indices = @transform_7, window_bounds = array<i64: 32, 256>}]} {
    %c0 = arith.constant 0 : index
    %c0_0 = arith.constant 0 : index
    %0 = vector.load %arg1[%c0, %c0_0] : memref<32x256xf32, #tpu.memory_space<vmem>>, vector<32x256xf32>
    %1 = arith.truncf %0 : vector<32x256xf32> to vector<32x256xbf16>
    %c0_1 = arith.constant 0 : index
    %c0_2 = arith.constant 0 : index
    %2 = vector.load %arg2[%c0_1, %c0_2] : memref<256x1024xbf16, #tpu.memory_space<vmem>>, vector<256x1024xbf16>
    %cst = arith.constant dense<0.000000e+00> : vector<32x1024xf32>
    %3 = tpu.matmul %1, %2, %cst {dimension_numbers = #tpu.dot_dimension_numbers<[1], [0], [0], [1], [0, 0, 1, 1], [], []>} : vector<32x256xbf16>, vector<256x1024xbf16>, vector<32x1024xf32> -> vector<32x1024xf32>
    %c0_3 = arith.constant 0 : index
    %c0_4 = arith.constant 0 : index
    %4 = vector.load %arg3[%c0_3, %c0_4] : memref<1x1024xf32, #tpu.memory_space<vmem>>, vector<1x1024xf32>
    %5 = vector.broadcast %4 : vector<1x1024xf32> to vector<32x1024xf32>
    %6 = arith.addf %3, %5 : vector<32x1024xf32>
    %cst_5 = arith.constant 0.000000e+00 : f32
    %7 = vector.broadcast %cst_5 : f32 to vector<32x1024xf32>
    %8 = arith.maximumf %6, %7 : vector<32x1024xf32>
    %9 = arith.truncf %8 : vector<32x1024xf32> to vector<32x1024xbf16>
    %c0_6 = arith.constant 0 : index
    %c0_7 = arith.constant 0 : index
    %10 = vector.load %arg4[%c0_6, %c0_7] : memref<1024x256xbf16, #tpu.memory_space<vmem>>, vector<1024x256xbf16>
    %cst_8 = arith.constant dense<0.000000e+00> : vector<32x256xf32>
    %11 = tpu.matmul %9, %10, %cst_8 {dimension_numbers = #tpu.dot_dimension_numbers<[1], [0], [0], [1], [0, 0, 1, 1], [], []>} : vector<32x1024xbf16>, vector<1024x256xbf16>, vector<32x256xf32> -> vector<32x256xf32>
    %c0_9 = arith.constant 0 : index
    %c0_10 = arith.constant 0 : index
    %12 = vector.load %arg5[%c0_9, %c0_10] : memref<1x256xf32, #tpu.memory_space<vmem>>, vector<1x256xf32>
    %13 = vector.broadcast %12 : vector<1x256xf32> to vector<32x256xf32>
    %14 = arith.addf %11, %13 : vector<32x256xf32>
    %15 = arith.addf %14, %0 : vector<32x256xf32>
    %cst_11 = arith.constant dense<0.000000e+00> : vector<32xf32>
    %16 = vector.multi_reduction <add>, %15, %cst_11 [1] : vector<32x256xf32> to vector<32xf32>
    %17 = vector.shape_cast %16 : vector<32xf32> to vector<32x1xf32>
    %cst_12 = arith.constant 2.560000e+02 : f32
    %18 = vector.broadcast %cst_12 : f32 to vector<32x1xf32>
    %19 = arith.divf %17, %18 : vector<32x1xf32>
    %20 = vector.broadcast %19 : vector<32x1xf32> to vector<32x256xf32>
    %21 = arith.subf %15, %20 : vector<32x256xf32>
    %22 = arith.mulf %21, %21 : vector<32x256xf32>
    %cst_13 = arith.constant dense<0.000000e+00> : vector<32xf32>
    %23 = vector.multi_reduction <add>, %22, %cst_13 [1] : vector<32x256xf32> to vector<32xf32>
    %24 = vector.shape_cast %23 : vector<32xf32> to vector<32x1xf32>
    %cst_14 = arith.constant 2.560000e+02 : f32
    %25 = vector.broadcast %cst_14 : f32 to vector<32x1xf32>
    %26 = arith.divf %24, %25 : vector<32x1xf32>
    %27 = vector.broadcast %19 : vector<32x1xf32> to vector<32x256xf32>
    %28 = arith.subf %15, %27 : vector<32x256xf32>
    %cst_15 = arith.constant 9.99999974E-6 : f32
    %29 = vector.broadcast %cst_15 : f32 to vector<32x1xf32>
    %30 = arith.addf %26, %29 : vector<32x1xf32>
    %31 = math.rsqrt %30 : vector<32x1xf32>
    %32 = vector.broadcast %31 : vector<32x1xf32> to vector<32x256xf32>
    %33 = arith.mulf %28, %32 : vector<32x256xf32>
    %c0_16 = arith.constant 0 : index
    %c0_17 = arith.constant 0 : index
    %34 = vector.load %arg6[%c0_16, %c0_17] : memref<1x256xf32, #tpu.memory_space<vmem>>, vector<1x256xf32>
    %35 = vector.broadcast %34 : vector<1x256xf32> to vector<32x256xf32>
    %36 = arith.mulf %33, %35 : vector<32x256xf32>
    %c0_18 = arith.constant 0 : index
    %c0_19 = arith.constant 0 : index
    %37 = vector.load %arg7[%c0_18, %c0_19] : memref<1x256xf32, #tpu.memory_space<vmem>>, vector<1x256xf32>
    %38 = vector.broadcast %37 : vector<1x256xf32> to vector<32x256xf32>
    %39 = arith.addf %36, %38 : vector<32x256xf32>
    %c0_20 = arith.constant 0 : index
    %c0_21 = arith.constant 0 : index
    %40 = vector.load %arg8[%c0_20, %c0_21] : memref<32x256xf32, #tpu.memory_space<vmem>>, vector<32x256xf32>
    tpu.vector_store %arg8[%c0_20, %c0_21], %39 {strides = array<i32>} : memref<32x256xf32, #tpu.memory_space<vmem>>, vector<32x256xf32>,
    return
  }
  func.func @transform_0(%arg0: i32) -> (i32, i32) {
    %c0_i32 = arith.constant 0 : i32
    %c0_i32_0 = arith.constant 0 : i32
    return %arg0, %c0_i32 : i32, i32
  }
  func.func @transform_1(%arg0: i32) -> (i32, i32) {
    %c0_i32 = arith.constant 0 : i32
    %c0_i32_0 = arith.constant 0 : i32
    %c0_i32_1 = arith.constant 0 : i32
    return %c0_i32, %c0_i32_0 : i32, i32
  }
  func.func @transform_2(%arg0: i32) -> (i32, i32) {
    %c0_i32 = arith.constant 0 : i32
    %c0_i32_0 = arith.constant 0 : i32
    %c0_i32_1 = arith.constant 0 : i32
    return %c0_i32, %c0_i32_0 : i32, i32
  }
  func.func @transform_3(%arg0: i32) -> (i32, i32) {
    %c0_i32 = arith.constant 0 : i32
    %c0_i32_0 = arith.constant 0 : i32
    %c0_i32_1 = arith.constant 0 : i32
    return %c0_i32, %c0_i32_0 : i32, i32
  }
  func.func @transform_4(%arg0: i32) -> (i32, i32) {
    %c0_i32 = arith.constant 0 : i32
    %c0_i32_0 = arith.constant 0 : i32
    %c0_i32_1 = arith.constant 0 : i32
    return %c0_i32, %c0_i32_0 : i32, i32
  }
  func.func @transform_5(%arg0: i32) -> (i32, i32) {
    %c0_i32 = arith.constant 0 : i32
    %c0_i32_0 = arith.constant 0 : i32
    %c0_i32_1 = arith.constant 0 : i32
    return %c0_i32, %c0_i32_0 : i32, i32
  }
  func.func @transform_6(%arg0: i32) -> (i32, i32) {
    %c0_i32 = arith.constant 0 : i32
    %c0_i32_0 = arith.constant 0 : i32
    %c0_i32_1 = arith.constant 0 : i32
    return %c0_i32, %c0_i32_0 : i32, i32
  }
  func.func @transform_7(%arg0: i32) -> (i32, i32) {
    %c0_i32 = arith.constant 0 : i32
    %c0_i32_0 = arith.constant 0 : i32
    return %arg0, %c0_i32 : i32, i32
  }
}

</mosaic_0001>

<bundles_post_ra>
// kernel: decoder_forward.8
= control target key start
LH: loop header
LB: loop body
LE: loop exit
PB: predicated region body
PF: predicated region fallthrough
CT: control target
= control target key end

     0   :  { %s2271_s0 = inlined_call_operand.hbm [shape: f32[64,256], index: 0, kind: input, shape index: {}]   ;;  %s2272_s1 = inlined_call_operand.hbm [shape: f32[64,256], index: 1, kind: input, shape index: {}]   ;;  %s2273_s2 = inlined_call_operand.hbm [shape: bf16[256,512], index: 2, kind: input, shape index: {}]   ;;  %s2274_s3 = inlined_call_operand.hbm [shape: f32[1,512], index: 3, kind: input, shape index: {}]   ;;  %s2275_s4 = inlined_call_operand.hbm [shape: bf16[256,256], index: 4, kind: input, shape index: {}]   ;;  %s2276_s5 = inlined_call_operand.hbm [shape: f32[1,256], index: 5, kind: input, shape index: {}]   ;;  %s2277_s6 = inlined_call_operand.vmem [shape: f32[64,768], index: 6, kind: output, shape index: {}]  }
   0x1   :  { %2284 = sst [smem:[#allocation17_spill]] %s2271_s0 }
   0x2   :  { %2285 = sst [smem:[#allocation18_spill]] %s2273_s2 }
   0x3   :  { %11 = vsyncpa [#allocation3], 0 }
   0x4   :  { %13 = vsyncpa [#allocation3 + $0x1], 0 }
   0x5   :  { %14 = vsyncpa [#allocation5], 0 }
   0x6   :  { %16 = vsyncpa [#allocation5 + $0x1], 0 }
   0x7   :  { %17 = vsyncpa [#allocation8], 0 }
   0x8   :  { %18 = vsyncpa [#allocation11], 0  ;;  %s1978_s21 = smov 0   ;;  %s1980_s22 = smov 0  }
   0x9   :  { %s1982_s23 = smov 0   ;;  %s1984_s24 = smov 0  }
   0xa LB: > { %s1997_s25 = sadd.s32 4294967295, %s1931_s24   ;;  %p44_p0 = scmp.ne.s32.totalorder %s1923_s22, %s1919_s21  ;;  %s1931_s24 = sphi %s1984_s24, %s2304_s24   ;;  %s1927_s23 = sphi %s1982_s23, %s2303_s23   ;;  %s1923_s22 = sphi %s1980_s22, %s2302_s22   ;;  %s1919_s21 = sphi %s1978_s21, %s2301_s21  }
   0xb   : > { %p2278_p1 = scmp.eq.s32.totalorder %s1997_s25, 0  ;;  %p1330_p2 = scmp.ge.s32.totalorder %s1931_s24, 1 }
   0xc   : > { %p191_p3 = scmp.lt.s32.totalorder %s1931_s24, 3  ;;  %s1933_s28 = smov [#allocation6]  }
   0xd   : > { %p2005_p4 = por %p2278_p1, %p44_p0  ;;  %s203_s29 = sshll.u32 %s1933_s28, 4  ;;  %s204_s29 = int_to_ptr.vmem [resolvable:$true] %s203_s29 }
   0xe   : > { %p2009_p5 = pnand %p1330_p2, %p191_p3  ;;  %s1934_s7 = smov [#allocation7]  }
   0xf   : > { %s2286_s26 = scalar_select %p2005_p4, 1, 0 }
  0x10   : > { %p1508_p6 = pneg %p2009_p5  ;;  %s217_s8 = sshll.u32 %s1934_s7, 4  ;;  %s218_s8 = int_to_ptr.vmem [resolvable:$true] %s217_s8 }
  0x11   : > { %s1935_s9 = smov [#allocation9]   ;;  %s1732_s11 = scalar_lea.vmem %s204_s29, 8192 }
  0x12   : > { %p2017_p7 = pnand %p1508_p6, %p2278_p1  ;;  %s227_s10 = sshll.u32 %s1935_s9, 4  ;;  %s228_s10 = int_to_ptr.vmem [resolvable:$true] %s227_s10 }
  0x13   : > { %p1733_p9 = scmp.ne.s32.totalorder %s204_s29, %s1732_s11  ;;  %p1740_p12 = scmp.lt.s32.totalorder %s204_s29, %s204_s29 }
  0x14   : > { %p1723_p8 = pneg %p2017_p7  ;;  %p1741_p13 = scmp.lt.s32.totalorder %s1732_s11, %s1732_s11 }
  0x16   : > { %p1735_p10 = pnand %p1733_p9, %p1723_p8  ;;  %p1742_p0 = por %p1741_p13, %p1740_p12 }
  0x18   : > { %p1736_p11 = pneg %p1735_p10 }
  0x1a   : > { %p1743_p2 = pnand %p1742_p0, %p1736_p11 }
  0x1c   : > { %1746 = shalt.err (!%p1743_p2)
}
  0x1d   : > { %s2280_s12 = smov 256   ;;  %s2282_s13 = smov 16  }
  0x1e   : > { %s2289_s2 = sld [smem:[#allocation18_spill]]  ;;  %s1758_s16 = scalar_lea.vmem %s218_s8, 64 }
  0x1f   : > { %p1759_p3 = scmp.ne.s32.totalorder %s218_s8, %s1758_s16  ;;  %p1766_p10 = scmp.lt.s32.totalorder %s218_s8, %s218_s8 }
  0x20   : > { %p1767_p11 = scmp.lt.s32.totalorder %s1758_s16, %s1758_s16 }
  0x21   : > { %p1761_p6 = pnand %p1759_p3, %p1723_p8 }
  0x22   : > { %p1768_p12 = por %p1767_p11, %p1766_p10 }
  0x23   : > { %p1762_p9 = pneg %p1761_p6 }
  0x24   : > { %1511 = dma.hbm_to_vmem [thread:$0]  (!%p2017_p7), %s2289_s2, 8192, %s204_s29, [#allocation5], %s2280_s12, %s2280_s12, %s2282_s13  }
  0x25   : > { %p1769_p13 = pnand %p1768_p12, %p1762_p9 }
  0x27   : > { %1772 = shalt.err (!%p1769_p13)
}
  0x28   : > { %1514 = dma.hbm_to_vmem [thread:$0]  (!%p2017_p7), %s2274_s3, 64, %s218_s8, [#allocation8]  }
  0x29   : > { %s1784_s19 = scalar_lea.vmem %s228_s10, 4096  ;;  %p1792_p6 = scmp.lt.s32.totalorder %s228_s10, %s228_s10 }
  0x2a   : > { %p1785_p0 = scmp.ne.s32.totalorder %s228_s10, %s1784_s19  ;;  %p1793_p1 = scmp.lt.s32.totalorder %s1784_s19, %s1784_s19 }
  0x2c   : > { %p1787_p2 = pnand %p1785_p0, %p1723_p8  ;;  %p1794_p4 = por %p1793_p1, %p1792_p6 }
  0x2e   : > { %p1788_p3 = pneg %p1787_p2 }
  0x30   : > { %p1795_p10 = pnand %p1794_p4, %p1788_p3 }
  0x32   : > { %1798 = shalt.err (!%p1795_p10)
}
  0x33   : > { %s1938_s20 = smov 128   ;;  %s1939_s21 = smov 8  }
  0x34   : > { %1517 = dma.hbm_to_vmem [thread:$0]  (!%p2017_p7), %s2275_s4, 4096, %s228_s10, [#allocation8], %s1938_s20, %s1938_s20, %s1939_s21  }
  0x35   : > { %s1940_s7 = smov [#allocation10]  }
  0x36   : > { %s241_s8 = sshll.u32 %s1940_s7, 4  ;;  %s242_s8 = int_to_ptr.vmem [resolvable:$true] %s241_s8 }
  0x37   : > { %s1810_s9 = scalar_lea.vmem %s242_s8, 32  ;;  %p1818_p4 = scmp.lt.s32.totalorder %s242_s8, %s242_s8 }
  0x38   : > { %p1811_p9 = scmp.ne.s32.totalorder %s242_s8, %s1810_s9  ;;  %p1819_p12 = scmp.lt.s32.totalorder %s1810_s9, %s1810_s9 }
  0x3a   : > { %p1813_p11 = pnand %p1811_p9, %p1723_p8  ;;  %p1820_p13 = por %p1819_p12, %p1818_p4 }
  0x3c   : > { %p1814_p1 = pneg %p1813_p11 }
  0x3e   : > { %p1821_p0 = pnand %p1820_p13, %p1814_p1 }
  0x40   : > { %1824 = shalt.err (!%p1821_p0)
}
  0x41   : > { %1520 = dma.hbm_to_vmem [thread:$0]  (!%p2017_p7), %s2276_s5, 32, %s242_s8, [#allocation11]  }
  0x42   : > { %s2059_s10 = sadd.s32 1, %s1931_s24   ;;  %s31_s15 = sadd.s32 1, %s1927_s23 }
  0x43   : > { %s28_s16 = ssub.s32 %s1931_s24, %s2059_s10  ;;  %p38_p8 = scmp.ne.s32.totalorder %s1927_s23, %s1923_s22 }
  0x44   : > { %p29_p2 = scmp.eq.s32.totalorder %s28_s16, 0  ;;  %p39_p3 = scmp.eq.s32.totalorder %s1931_s24, 0 }
  0x45   : > { %p1532_p6 = scmp.lt.s32.totalorder %s1931_s24, 2  ;;  %s252_s30 = sand.u32 1, %s1927_s23  }
  0x46   : > { %s2070_s17 = scalar_select %p29_p2, %s1927_s23, %s31_s15  }
  0x47   : > { %p40_p10 = por %p39_p3, %p38_p8  ;;  %s2072_s18 = sshll.u32 %s252_s30, 6 }
  0x48   : > { %s1452_s19 = sshll.u32 %s1931_s24, 10  ;;  %s2290_s0 = sld [smem:[#allocation17_spill]] }
  0x49   : > { %s256_s29 = scalar_lea.vmem [#allocation2], %s2072_s18  ;;  %p2081_p7 = pnand %p1532_p6, %p40_p10 }
  0x4a   : > { %s264_s7 = sshll.u32 %s256_s29, 4  ;;  %s2090_s14 = scalar_lea.hbm %s2272_s1, %s1452_s19  ;;  %s2085_s7 = int_to_ptr.vmem [resolvable:$true] %s264_s7 }
  0x4b   : > { %s2092_s15 = scalar_lea.sflag [#allocation3], %s252_s30  ;;  %p1827_p11 = pneg %p2081_p7 }
  0x4e   : > { %s2078_s28 = scalar_lea.hbm %s2290_s0, %s1452_s19  ;;  %s1830_s29 = scalar_lea.hbm %s2290_s0, 2048 }
  0x4f   : > { %s1825_s16 = scalar_lea.hbm %s2078_s28, 1024  ;;  %p1831_p12 = scmp.lt.s32.totalorder %s2078_s28, %s2290_s0 }
  0x50   : > { %p1826_p9 = scmp.ne.s32.totalorder %s2078_s28, %s1825_s16  ;;  %p1832_p13 = scmp.lt.s32.totalorder %s1830_s29, %s1825_s16 }
  0x52   : > { %p1828_p1 = pnand %p1827_p11, %p1826_p9  ;;  %p1833_p0 = por %p1832_p13, %p1831_p12 }
  0x54   : > { %p1829_p4 = pneg %p1828_p1 }
  0x56   : > { %p1834_p8 = pnand %p1833_p0, %p1829_p4 }
  0x58   : > { %1837 = shalt.err (!%p1834_p8)
}
  0x59   : > { %s1838_s30 = scalar_lea.vmem %s2085_s7, 1024  ;;  %s1941_s19 = smov [#allocation2]  }
  0x5a   : > { %p1839_p2 = scmp.ne.s32.totalorder %s2085_s7, %s1838_s30  ;;  %s1843_s9 = sshll.u32 %s1941_s19, 4  ;;  %s1844_s9 = int_to_ptr.vmem [resolvable:$false] %s1843_s9 }
  0x5b   : > { %s1845_s11 = scalar_lea.vmem %s1844_s9, 2048  ;;  %p1846_p10 = scmp.lt.s32.totalorder %s2085_s7, %s1844_s9 }
  0x5c   : > { %p1841_p3 = pnand %p1839_p2, %p1827_p11  ;;  %p1847_p9 = scmp.lt.s32.totalorder %s1845_s11, %s1838_s30 }
  0x5e   : > { %p1842_p6 = pneg %p1841_p3  ;;  %p1848_p1 = por %p1847_p9, %p1846_p10 }
  0x60   : > { %p1849_p12 = pnand %p1848_p1, %p1842_p6 }
  0x62   : > { %1852 = shalt.err (!%p1849_p12)
}
  0x63   : > { %s2292_s12 = smov 16   ;;  %s2293_s13 = smov 256  }
  0x64   : > { %1524 = dma.hbm_to_vmem [thread:$0]  (!%p2081_p7), %s2078_s28, 1024, %s2085_s7, %s2092_s15, %s2293_s13, %s2293_s13, %s2292_s12  }
  0x65   : > { %s278_s16 = scalar_lea.vmem [#allocation4], %s2072_s18  ;;  %s274_s21 = sand.u32 1, %s1931_s24  }
  0x66   : > { %s286_s20 = sshll.u32 %s278_s16, 4  ;;  %s275_s29 = scalar_lea.sflag [#allocation5], %s274_s21  ;;  %s2124_s20 = int_to_ptr.vmem [resolvable:$true] %s286_s20 }
  0x67   : > { %s1853_s30 = scalar_lea.hbm %s2090_s14, 1024  ;;  %s1858_s11 = scalar_lea.hbm %s2272_s1, 2048 }
  0x68   : > { %p1854_p4 = scmp.ne.s32.totalorder %s2090_s14, %s1853_s30  ;;  %p1859_p8 = scmp.lt.s32.totalorder %s2090_s14, %s2272_s1 }
  0x69   : > { %p1860_p2 = scmp.lt.s32.totalorder %s1858_s11, %s1853_s30 }
  0x6a   : > { %p1856_p13 = pnand %p1854_p4, %p1827_p11 }
  0x6b   : > { %p1861_p3 = por %p1860_p2, %p1859_p8 }
  0x6c   : > { %p1857_p0 = pneg %p1856_p13 }
  0x6e   : > { %p1862_p6 = pnand %p1861_p3, %p1857_p0 }
  0x70   : > { %1865 = shalt.err (!%p1862_p6)
}
  0x71   : > { %s1866_s24 = scalar_lea.vmem %s2124_s20, 1024  ;;  %s1942_s18 = smov [#allocation4]  }
  0x72   : > { %p1867_p10 = scmp.ne.s32.totalorder %s2124_s20, %s1866_s24  ;;  %s1871_s28 = sshll.u32 %s1942_s18, 4  ;;  %s1872_s28 = int_to_ptr.vmem [resolvable:$false] %s1871_s28 }
  0x73   : > { %s1873_s7 = scalar_lea.vmem %s1872_s28, 2048  ;;  %p1874_p12 = scmp.lt.s32.totalorder %s2124_s20, %s1872_s28 }
  0x74   : > { %p1869_p9 = pnand %p1867_p10, %p1827_p11  ;;  %p1875_p4 = scmp.lt.s32.totalorder %s1873_s7, %s1866_s24 }
  0x76   : > { %p1870_p1 = pneg %p1869_p9  ;;  %p1876_p13 = por %p1875_p4, %p1874_p12 }
  0x78   : > { %p1877_p8 = pnand %p1876_p13, %p1870_p1 }
  0x7a   : > { %1880 = shalt.err (!%p1877_p8)
}
  0x7b   : > { %1527 = dma.hbm_to_vmem [thread:$0]  (!%p2081_p7), %s2090_s14, 1024, %s2124_s20, %s275_s29, %s2293_s13, %s2293_s13, %s2292_s12  }
  0x7c   : > { %298 = sbr.rel (%p2009_p5) target bundleno = 473 (0x1d9), region = 44  ;;  %s300_s0 = sand.u32 (!%p2009_p5), 1, %s1923_s22  }
  0x7d   : > { %s1345_s2 = sshll.u32 (!%p2009_p5), %s300_s0, 6  ;;  %s301_s15 = scalar_lea.sflag (!%p2009_p5), [#allocation3], %s300_s0 }
  0x7e   : > { %s2154_s16 = scalar_lea.vmem (!%p2009_p5), [#allocation2], %s1345_s2  ;;  %p2294_p11 = scmp.ne.s32.totalorder (!%p2009_p5), %s2286_s26, 0 }
  0x81   : > { %1898 = dma.done.wait (%p2294_p11), %s301_s15, 1024  }
  0x82   : > { %1900 = vsyncadd (%p2294_p11), %s301_s15, 4294966272  ;;  %s309_s8 = sand.u32 1, %s1997_s25   ;;  %s2161_s14 = scalar_lea.vmem [#allocation4], %s1345_s2 }
  0x83   : > { %s310_s21 = scalar_lea.sflag [#allocation5], %s309_s8 }
  0x84   : > { %1902 = dma.done.wait (%p2294_p11), %s310_s21, 1024  }
  0x85   : > { %1904 = vsyncadd (%p2294_p11), %s310_s21, 4294966272  ;;  %p2295_p5 = scmp.eq.s32.totalorder %s1997_s25, 0 }
  0x87   : > { %1906 = dma.done.wait (%p2295_p5), [#allocation5], 8192   ;;  %p2296_p7 = pmov %p2295_p5 }
  0x88   : > { %p2297_p0 = pmov %p2295_p5 }
  0x89   : > { %1908 = vsyncadd (%p2296_p7), [#allocation5], 4294959104 }
  0x8a   : > { %1910 = dma.done.wait (%p2297_p0), [#allocation8], 4160   ;;  %p2298_p2 = pmov %p2297_p0 }
  0x8b   : > { %p2299_p3 = pmov %p2297_p0 }
  0x8c   : > { %1912 = vsyncadd (%p2298_p2), [#allocation8], 4294963136 }
  0x8d   : > { %1914 = dma.done.wait (%p2299_p3), [#allocation11], 32   ;;  %p2300_p6 = pmov %p2297_p0 }
  0x8e   : > { %v1577_v0 = vld [vmem:[#allocation6 + $0xe4] ss:$16 sps:$4 sm:$0xff]   ;;  %v1579_v1 = vld [vmem:[#allocation6 + $0xec] ss:$16 sps:$4 sm:$0xff]   ;;  %v1581_v2 = vld [vmem:[#allocation6 + $0xe0] ss:$16 sps:$4 sm:$0xff]  }
  0x8f   : > { %1916 = vsyncadd (%p2300_p6), [#allocation11], 4294967264  ;;  %807 = vmatprep.subr.bf16.mxu0 %v1577_v0  ;;  %v1582_v3 = vld [vmem:[#allocation6 + $0xe8] ss:$16 sps:$4 sm:$0xff]   ;;  %860 = vmatprep.subr.bf16.mxu1 %v1579_v1  ;;  %v1583_v4 = vld [vmem:[#allocation6 + $0xc4] ss:$16 sps:$4 sm:$0xff]  }
  0x90   : > { %808 = vmatpush1.bf16.msra.mxu0 %v1581_v2  ;;  %861 = vmatpush1.bf16.msra.mxu1 %v1582_v3  ;;  %v1585_v5 = vld [vmem:[#allocation6 + $0xcc] ss:$16 sps:$4 sm:$0xff]   ;;  %v1587_v6 = vld [vmem:[#allocation6 + $0xc0] ss:$16 sps:$4 sm:$0xff]   ;;  %v1588_v7 = vld [vmem:[#allocation6 + $0xc8] ss:$16 sps:$4 sm:$0xff]  }
  0x91   : > { %809 = vmatprep.subr.bf16.mxu0 %v1583_v4  ;;  %862 = vmatprep.subr.bf16.mxu1 %v1585_v5  ;;  %v1589_v8 = vld [vmem:[#allocation6 + $0xa4] ss:$16 sps:$4 sm:$0xff]   ;;  %v1591_v9 = vld [vmem:[#allocation6 + $0xac] ss:$16 sps:$4 sm:$0xff]   ;;  %v1593_v10 = vld [vmem:[#allocation6 + $0xa0] ss:$16 sps:$4 sm:$0xff]  }
  0x92   : > { %v1594_v11 = vld [vmem:[#allocation6 + $0xa8] ss:$16 sps:$4 sm:$0xff]   ;;  %v1595_v12 = vld [vmem:[#allocation6 + $0x84] ss:$16 sps:$4 sm:$0xff]   ;;  %v1597_v13 = vld [vmem:[#allocation6 + $0x8c] ss:$16 sps:$4 sm:$0xff]  }
  0x93   : > { %v1599_v14 = vld [vmem:[#allocation6 + $0x80] ss:$16 sps:$4 sm:$0xff]   ;;  %v1600_v15 = vld [vmem:[#allocation6 + $0x88] ss:$16 sps:$4 sm:$0xff]   ;;  %v1601_v16 = vld [vmem:[#allocation6 + $0x64] ss:$16 sps:$4 sm:$0xff]  }
  0x94   : > { %810 = vmatpush1.bf16.msra.mxu0 %v1587_v6  ;;  %863 = vmatpush1.bf16.msra.mxu1 %v1588_v7  ;;  %v1603_v17 = vld [vmem:[#allocation6 + $0x6c] ss:$16 sps:$4 sm:$0xff]   ;;  %v1605_v18 = vld [vmem:[#allocation6 + $0x60] ss:$16 sps:$4 sm:$0xff]   ;;  %v1606_v19 = vld [vmem:[#allocation6 + $0x68] ss:$16 sps:$4 sm:$0xff]  }
  0x95   : > { %811 = vmatprep.subr.bf16.mxu0 %v1589_v8  ;;  %864 = vmatprep.subr.bf16.mxu1 %v1591_v9  ;;  %v1607_v20 = vld [vmem:[#allocation6 + $0x44] ss:$16 sps:$4 sm:$0xff]   ;;  %v1609_v21 = vld [vmem:[#allocation6 + $0x4c] ss:$16 sps:$4 sm:$0xff]   ;;  %v1611_v22 = vld [vmem:[#allocation6 + $0x40] ss:$16 sps:$4 sm:$0xff]  }
  0x96   : > { %v1612_v23 = vld [vmem:[#allocation6 + $0x48] ss:$16 sps:$4 sm:$0xff]   ;;  %v1613_v24 = vld [vmem:[#allocation6 + $0x24] ss:$16 sps:$4 sm:$0xff]   ;;  %v1615_v25 = vld [vmem:[#allocation6 + $0x2c] ss:$16 sps:$4 sm:$0xff]  }
  0x97   : > { %v1617_v26 = vld [vmem:[#allocation6 + $0x20] ss:$16 sps:$4 sm:$0xff]   ;;  %v1618_v27 = vld [vmem:[#allocation6 + $0x28] ss:$16 sps:$4 sm:$0xff]   ;;  %v1619_v28 = vld [vmem:[#allocation6 + $0x4] ss:$16 sps:$4 sm:$0xff]  }
  0x98   : > { %812 = vmatpush1.bf16.msra.mxu0 %v1593_v10  ;;  %865 = vmatpush1.bf16.msra.mxu1 %v1594_v11  ;;  %v1621_v29 = vld [vmem:[#allocation6 + $0xc] ss:$16 sps:$4 sm:$0xff]   ;;  %v1623_v30 = vld [vmem:[#allocation6] ss:$16 sps:$4 sm:$0xff]   ;;  %v1624_v31 = vld [vmem:[#allocation6 + $0x8] ss:$16 sps:$4 sm:$0xff]  }
  0x99   : > { %813 = vmatprep.subr.bf16.mxu0 %v1595_v12  ;;  %866 = vmatprep.subr.bf16.mxu1 %v1597_v13  ;;  %v1625_v32 = vld [vmem:[#allocation6 + $0x1e4] ss:$16 sps:$4 sm:$0xff]   ;;  %v1627_v33 = vld [vmem:[#allocation6 + $0x1ec] ss:$16 sps:$4 sm:$0xff]   ;;  %v1629_v34 = vld [vmem:[#allocation6 + $0x1e0] ss:$16 sps:$4 sm:$0xff]  }
  0x9a   : > { %v1630_v35 = vld [vmem:[#allocation6 + $0x1e8] ss:$16 sps:$4 sm:$0xff]   ;;  %v1631_v36 = vld [vmem:[#allocation6 + $0x1c4] ss:$16 sps:$4 sm:$0xff]   ;;  %v1633_v37 = vld [vmem:[#allocation6 + $0x1cc] ss:$16 sps:$4 sm:$0xff]  }
  0x9b   : > { %v1635_v38 = vld [vmem:[#allocation6 + $0x1c0] ss:$16 sps:$4 sm:$0xff]   ;;  %v1636_v39 = vld [vmem:[#allocation6 + $0x1c8] ss:$16 sps:$4 sm:$0xff]   ;;  %v1637_v40 = vld [vmem:[#allocation6 + $0x1a4] ss:$16 sps:$4 sm:$0xff]  }
  0x9c   : > { %814 = vmatpush1.bf16.msra.mxu0 %v1599_v14  ;;  %867 = vmatpush1.bf16.msra.mxu1 %v1600_v15  ;;  %v1639_v41 = vld [vmem:[#allocation6 + $0x1ac] ss:$16 sps:$4 sm:$0xff]   ;;  %v1641_v42 = vld [vmem:[#allocation6 + $0x1a0] ss:$16 sps:$4 sm:$0xff]   ;;  %v1642_v43 = vld [vmem:[#allocation6 + $0x1a8] ss:$16 sps:$4 sm:$0xff]  }
  0x9d   : > { %815 = vmatprep.subr.bf16.mxu0 %v1601_v16  ;;  %868 = vmatprep.subr.bf16.mxu1 %v1603_v17  ;;  %v1643_v44 = vld [vmem:[#allocation6 + $0x184] ss:$16 sps:$4 sm:$0xff]   ;;  %v1645_v45 = vld [vmem:[#allocation6 + $0x18c] ss:$16 sps:$4 sm:$0xff]   ;;  %v1647_v46 = vld [vmem:[#allocation6 + $0x180] ss:$16 sps:$4 sm:$0xff]  }
  0x9e   : > { %v1648_v47 = vld [vmem:[#allocation6 + $0x188] ss:$16 sps:$4 sm:$0xff]   ;;  %v1649_v52 = vld [vmem:[#allocation6 + $0x164] ss:$16 sps:$4 sm:$0xff]   ;;  %v1651_v57 = vld [vmem:[#allocation6 + $0x16c] ss:$16 sps:$4 sm:$0xff]  }
  0x9f   : > { %v2180_v48 = vld [vmem:[%s2154_s16 + $0x8] sm:$0xff]  ;;  %v2183_v49 = vld [vmem:[%s2154_s16 + $0x18] sm:$0xff]  ;;  %v2190_v55 = vld [vmem:[%s2154_s16] sm:$0xff]  ;;  %s1351_s26 = sshll.u32 %s1997_s25, 2 }
  0xa0   : > { %816 = vmatpush1.bf16.msra.mxu0 %v1605_v18  ;;  %869 = vmatpush1.bf16.msra.mxu1 %v1606_v19  ;;  %v382_v50 = vld [vmem:[%s2161_s14 + $0x8] sm:$0xff]  ;;  %v384_v51 = vld [vmem:[%s2161_s14 + $0x18] sm:$0xff]  ;;  %v2193_v56 = vld [vmem:[%s2154_s16 + $0x10] sm:$0xff]  ;;  %p367_p10 = scmp.lt.s32.totalorder %s1351_s26, 7 }
  0xa1   : > { %817 = vmatprep.subr.bf16.mxu0 %v1607_v20  ;;  %870 = vmatprep.subr.bf16.mxu1 %v1609_v21  ;;  %v390_v53 = vadd.f32 %v382_v50, %v2180_v48  ;;  %v392_v54 = vadd.f32 %v384_v51, %v2183_v49  ;;  %v913_v58 = vpack.c.bf16 %v2193_v56, %v2190_v55  ;;  %v1653_v60 = vld [vmem:[#allocation6 + $0x160] ss:$16 sps:$4 sm:$0xff]   ;;  %v1654_v61 = vld [vmem:[#allocation6 + $0x168] ss:$16 sps:$4 sm:$0xff]   ;;  %v1655_v62 = vld [vmem:[#allocation6 + $0x144] ss:$16 sps:$4 sm:$0xff]  }
  0xa2   : > { %v1657_v63 = vld [vmem:[#allocation6 + $0x14c] ss:$16 sps:$4 sm:$0xff]   ;;  %v1659_v0 = vld [vmem:[#allocation6 + $0x140] ss:$16 sps:$4 sm:$0xff]   ;;  %v1660_v1 = vld [vmem:[#allocation6 + $0x148] ss:$16 sps:$4 sm:$0xff]  }
  0xa3   : > { %v398_v59 = vpack.c.bf16 %v392_v54, %v390_v53  ;;  %v1661_v2 = vld [vmem:[#allocation6 + $0x124] ss:$16 sps:$4 sm:$0xff]   ;;  %v1663_v3 = vld [vmem:[#allocation6 + $0x12c] ss:$16 sps:$4 sm:$0xff]   ;;  %v1665_v4 = vld [vmem:[#allocation6 + $0x120] ss:$16 sps:$4 sm:$0xff]  }
  0xa4   : > { %818 = vmatpush1.bf16.msra.mxu0 %v1611_v22  ;;  %871 = vmatpush1.bf16.msra.mxu1 %v1612_v23  ;;  %v1666_v5 = vld [vmem:[#allocation6 + $0x128] ss:$16 sps:$4 sm:$0xff]   ;;  %v1667_v6 = vld [vmem:[#allocation6 + $0x104] ss:$16 sps:$4 sm:$0xff]   ;;  %v1669_v9 = vld [vmem:[#allocation6 + $0x10c] ss:$16 sps:$4 sm:$0xff]  }
  0xa5   : > { %819 = vmatprep.subr.bf16.mxu0 %v1613_v24  ;;  %872 = vmatprep.subr.bf16.mxu1 %v1615_v25  ;;  %v381_v7 = vld [vmem:[%s2161_s14] sm:$0xff]  ;;  %v383_v8 = vld [vmem:[%s2161_s14 + $0x10] sm:$0xff]  ;;  %v1672_v13 = vld [vmem:[#allocation6 + $0x108] ss:$16 sps:$4 sm:$0xff]   ;;  %s2306_s26 = smov (!%p367_p10, %s1351_s26), 7 }
  0xa6   : > { %839 = vmatprep.mubr.bf16.mxu0 %v398_v59  ;;  %892 = vmatprep.mubr.bf16.mxu1 %v398_v59  ;;  %v1671_v10 = vld [vmem:[#allocation6 + $0x100] ss:$16 sps:$4 sm:$0xff]   ;;  %v389_v11 = vadd.f32 %v381_v7, %v2190_v55  ;;  %v391_v12 = vadd.f32 %v383_v8, %v2193_v56  ;;  %v1673_v15 = vld [vmem:[#allocation9 + $0x70] ss:$8 sps:$4 sm:$0xff]   ;;  %v378_v16 = vld [vmem:[%s2154_s16 + $0x28] sm:$0xff]  ;;  %s1487_s27 = smul.u32 48, %s2306_s26 }
  0xa7   : > { %v1675_v14 = vld [vmem:[#allocation9 + $0x74] ss:$8 sps:$4 sm:$0xff]   ;;  %v1678_v18 = vld [vmem:[#allocation9 + $0x64] ss:$8 sps:$4 sm:$0xff]   ;;  %v1700_v50 = vld [vmem:[#allocation9 + $0xe0] ss:$8 sps:$4 sm:$0xff]  }
  0xa8   : > { %820 = vmatpush1.bf16.msra.mxu0 %v1617_v26  ;;  %873 = vmatpush1.bf16.msra.mxu1 %v1618_v27  ;;  %v397_v17 = vpack.c.bf16 %v391_v12, %v389_v11  ;;  %v380_v19 = vld [vmem:[%s2154_s16 + $0x38] sm:$0xff]  ;;  %v386_v20 = vld [vmem:[%s2161_s14 + $0x28] sm:$0xff]  ;;  %v2206_v24 = vld [vmem:[%s2154_s16 + $0x20] sm:$0xff]  ;;  %s2232_s13 = scalar_lea.vmem %s2277_s6, %s1487_s27 }
  0xa9   : > { %821 = vmatprep.subr.bf16.mxu0 %v1619_v28  ;;  %874 = vmatprep.subr.bf16.mxu1 %v1621_v29  ;;  %v388_v21 = vld [vmem:[%s2161_s14 + $0x38] sm:$0xff]  ;;  %v394_v22 = vadd.f32 %v386_v20, %v378_v16  ;;  %v2209_v25 = vld [vmem:[%s2154_s16 + $0x30] sm:$0xff]  ;;  %v385_v26 = vld [vmem:[%s2161_s14 + $0x20] sm:$0xff] }
  0xaa   : > { %v396_v23 = vadd.f32 %v388_v21, %v380_v19  ;;  %v387_v27 = vld [vmem:[%s2161_s14 + $0x30] sm:$0xff]  ;;  %v393_v29 = vadd.f32 %v385_v26, %v2206_v24  ;;  %v1705_v51 = vld [vmem:[#allocation9 + $0xd4] ss:$8 sps:$4 sm:$0xff]   ;;  %v1706_v54 = vld [vmem:[#allocation9 + $0xc0] ss:$8 sps:$4 sm:$0xff]  }
  0xab   : > { %v1708_v53 = vld [vmem:[#allocation9 + $0xc4] ss:$8 sps:$4 sm:$0xff]   ;;  %v1709_v59 = vld [vmem:[#allocation9 + $0xb0] ss:$8 sps:$4 sm:$0xff]   ;;  %v465_v7 = vld [vmem:[#allocation7] sm:$0xf] }
  0xac   : > { %822 = vmatpush1.bf16.msra.mxu0 %v1623_v30  ;;  %875 = vmatpush1.bf16.msra.mxu1 %v1624_v31  ;;  %v400_v28 = vpack.c.bf16 %v396_v23, %v394_v22  ;;  %v395_v30 = vadd.f32 %v387_v27, %v2209_v25  ;;  %v1676_v31 = vld [vmem:[#allocation9 + $0x60] ss:$8 sps:$4 sm:$0xff]  }
  0xad   : > { %823 = vmatprep.subr.bf16.mxu0 %v1625_v32  ;;  %876 = vmatprep.subr.bf16.mxu1 %v1627_v33  ;;  %v1681_v32 = vld [vmem:[#allocation9 + $0x54] ss:$8 sps:$4 sm:$0xff]  }
  0xae   : > { %v399_v33 = vpack.c.bf16 %v395_v30, %v393_v29 }
  0xb0   : > { %824 = vmatpush2.bf16.msra.mxu0 %v1629_v34  ;;  %877 = vmatpush2.bf16.msra.mxu1 %v1630_v35  ;;  %v1679_v34 = vld [vmem:[#allocation9 + $0x50] ss:$8 sps:$4 sm:$0xff]   ;;  %v1684_v35 = vld [vmem:[#allocation9 + $0x44] ss:$8 sps:$4 sm:$0xff]  }
  0xb1   : > { %825 = vmatprep.subr.bf16.mxu0 %v1631_v36  ;;  %878 = vmatprep.subr.bf16.mxu1 %v1633_v37  ;;  %v914_v36 = vpack.c.bf16 %v2183_v49, %v2180_v48  ;;  %v916_v37 = vpack.c.bf16 %v380_v19, %v378_v16  ;;  %v1697_v48 = vld [vmem:[#allocation9 + $0xf0] ss:$8 sps:$4 sm:$0xff]   ;;  %v1702_v49 = vld [vmem:[#allocation9 + $0xe4] ss:$8 sps:$4 sm:$0xff]  }
  0xb4   : > { %826 = vmatpush2.bf16.msra.mxu0 %v1635_v38  ;;  %879 = vmatpush2.bf16.msra.mxu1 %v1636_v39  ;;  %v1682_v38 = vld [vmem:[#allocation9 + $0x40] ss:$8 sps:$4 sm:$0xff]   ;;  %v1687_v39 = vld [vmem:[#allocation9 + $0x34] ss:$8 sps:$4 sm:$0xff]  }
  0xb5   : > { %827 = vmatprep.subr.bf16.mxu0 %v1637_v40  ;;  %880 = vmatprep.subr.bf16.mxu1 %v1639_v41  ;;  %v1685_v40 = vld [vmem:[#allocation9 + $0x30] ss:$8 sps:$4 sm:$0xff]   ;;  %v1690_v41 = vld [vmem:[#allocation9 + $0x24] ss:$8 sps:$4 sm:$0xff]  }
  0xb8   : > { %828 = vmatpush2.bf16.msra.mxu0 %v1641_v42  ;;  %881 = vmatpush2.bf16.msra.mxu1 %v1642_v43  ;;  %v1688_v42 = vld [vmem:[#allocation9 + $0x20] ss:$8 sps:$4 sm:$0xff]   ;;  %v1693_v43 = vld [vmem:[#allocation9 + $0x14] ss:$8 sps:$4 sm:$0xff]  }
  0xb9   : > { %829 = vmatprep.subr.bf16.mxu0 %v1643_v44  ;;  %882 = vmatprep.subr.bf16.mxu1 %v1645_v45  ;;  %v1691_v44 = vld [vmem:[#allocation9 + $0x10] ss:$8 sps:$4 sm:$0xff]   ;;  %v1696_v45 = vld [vmem:[#allocation9 + $0x4] ss:$8 sps:$4 sm:$0xff]  }
  0xbc   : > { %830 = vmatpush2.bf16.msra.mxu0 %v1647_v46  ;;  %883 = vmatpush2.bf16.msra.mxu1 %v1648_v47  ;;  %v1694_v46 = vld [vmem:[#allocation9] ss:$8 sps:$4 sm:$0xff]   ;;  %v1699_v47 = vld [vmem:[#allocation9 + $0xf4] ss:$8 sps:$4 sm:$0xff]  }
  0xbd   : > { %831 = vmatprep.subr.bf16.mxu0 %v1649_v52  ;;  %884 = vmatprep.subr.bf16.mxu1 %v1651_v57  ;;  %v1703_v52 = vld [vmem:[#allocation9 + $0xd0] ss:$8 sps:$4 sm:$0xff]   ;;  %v1711_v57 = vld [vmem:[#allocation9 + $0xb4] ss:$8 sps:$4 sm:$0xff]  }
  0xc0   : > { %832 = vmatpush2.bf16.msra.mxu0 %v1653_v60  ;;  %885 = vmatpush2.bf16.msra.mxu1 %v1654_v61  ;;  %v1714_v60 = vld [vmem:[#allocation9 + $0xa4] ss:$8 sps:$4 sm:$0xff]   ;;  %v1712_v61 = vld [vmem:[#allocation9 + $0xa0] ss:$8 sps:$4 sm:$0xff]  }
  0xc1   : > { %833 = vmatprep.subr.bf16.mxu0 %v1655_v62  ;;  %886 = vmatprep.subr.bf16.mxu1 %v1657_v63  ;;  %v1717_v62 = vld [vmem:[#allocation9 + $0x94] ss:$8 sps:$4 sm:$0xff]   ;;  %v1715_v63 = vld [vmem:[#allocation9 + $0x90] ss:$8 sps:$4 sm:$0xff]  }
  0xc4   : > { %834 = vmatpush2.bf16.msra.mxu0 %v1659_v0  ;;  %887 = vmatpush2.bf16.msra.mxu1 %v1660_v1  ;;  %v1720_v0 = vld [vmem:[#allocation9 + $0x84] ss:$8 sps:$4 sm:$0xff]   ;;  %v1718_v1 = vld [vmem:[#allocation9 + $0x80] ss:$8 sps:$4 sm:$0xff]  }
  0xc5   : > { %835 = vmatprep.subr.bf16.mxu0 %v1661_v2  ;;  %888 = vmatprep.subr.bf16.mxu1 %v1663_v3  ;;  %v915_v2 = vpack.c.bf16 %v2209_v25, %v2206_v24  ;;  %v467_v3 = vlaneseq }
  0xc8   : > { %836 = vmatpush2.bf16.msra.mxu0 %v1665_v4  ;;  %889 = vmatpush2.bf16.msra.mxu1 %v1666_v5  ;;  %v2223_v4 = vshrl.u32 %v467_v3, 7 }
  0xc9   : > { %837 = vmatprep.subr.bf16.mxu0 %v1667_v6  ;;  %890 = vmatprep.subr.bf16.mxu1 %v1669_v9 }
  0xca   : > { %v469_v5 = vsub.s32 0, %v2223_v4  ;;  %v477_v6 = vsub.s32 2, %v2223_v4  ;;  %v473_v8 = vsub.s32 1, %v2223_v4  ;;  %v481_v9 = vsub.s32 3, %v2223_v4 }
  0xcc   : > { %838 = vmatpush2.bf16.msra.mxu0 %v1671_v10  ;;  %891 = vmatpush2.bf16.msra.mxu1 %v1672_v13  ;;  %v470_v10 = vrot.slane %v465_v7, %v469_v5  ;;  %v478_v55 = vrot.slane %v465_v7, %v477_v6  ;;  %v474_v56 = vrot.slane %v465_v7, %v473_v8 }
  0xcd   : > { %1121 = vmatprep.subr.bf16.mxu0 %v1675_v14  ;;  %1455 = vmatprep.subr.bf16.mxu1 %v1675_v14 }
  0xcf   : > { %840 = vmatmul.mubr.bf16.vlgmr.msra.gmra.mxu0 %v397_v17  ;;  %893 = vmatmul.mubr.bf16.vlgmr.msra.gmra.mxu1 %v397_v17 }
  0xd0   : > { %1122 = vmatpush1.bf16.msra.mxu0 %v1673_v15  ;;  %1471 = vmatpush1.bf16.msra.mxu1 %v1673_v15 }
  0xd1   : > { %1123 = vmatprep.subr.bf16.mxu0 %v1678_v18  ;;  %1456 = vmatprep.subr.bf16.mxu1 %v1678_v18 }
  0xd2   : > { %849 = vmatprep.mubr.bf16.mxu0 %v400_v28  ;;  %902 = vmatprep.mubr.bf16.mxu1 %v400_v28 }
  0xd4   : > { %1124 = vmatpush1.bf16.msra.mxu0 %v1676_v31  ;;  %1472 = vmatpush1.bf16.msra.mxu1 %v1676_v31 }
  0xd5   : > { %1125 = vmatprep.subr.bf16.mxu0 %v1681_v32  ;;  %1457 = vmatprep.subr.bf16.mxu1 %v1681_v32 }
  0xd7   : > { %850 = vmatmul.mubr.bf16.gmra.mxu0 %v399_v33  ;;  %903 = vmatmul.mubr.bf16.gmra.mxu1 %v399_v33 }
  0xd8   : > { %1126 = vmatpush1.bf16.msra.mxu0 %v1679_v34  ;;  %1473 = vmatpush1.bf16.msra.mxu1 %v1679_v34 }
  0xd9   : > { %1127 = vmatprep.subr.bf16.mxu0 %v1684_v35  ;;  %1458 = vmatprep.subr.bf16.mxu1 %v1684_v35 }
  0xda   : > { %1153 = vmatprep.mubr.bf16.mxu0 %v914_v36  ;;  %1163 = vmatprep.mubr.bf16.mxu1 %v916_v37 }
  0xdc   : > { %1128 = vmatpush1.bf16.msra.mxu0 %v1682_v38  ;;  %1474 = vmatpush1.bf16.msra.mxu1 %v1682_v38 }
  0xdd   : > { %1129 = vmatprep.subr.bf16.mxu0 %v1687_v39  ;;  %1459 = vmatprep.subr.bf16.mxu1 %v1687_v39 }
  0xe0   : > { %1130 = vmatpush1.bf16.msra.mxu0 %v1685_v40  ;;  %1475 = vmatpush1.bf16.msra.mxu1 %v1685_v40 }
  0xe1   : > { %1131 = vmatprep.subr.bf16.mxu0 %v1690_v41  ;;  %1460 = vmatprep.subr.bf16.mxu1 %v1690_v41 }
  0xe4   : > { %1132 = vmatpush1.bf16.msra.mxu0 %v1688_v42  ;;  %1476 = vmatpush1.bf16.msra.mxu1 %v1688_v42 }
  0xe5   : > { %1133 = vmatprep.subr.bf16.mxu0 %v1693_v43  ;;  %1461 = vmatprep.subr.bf16.mxu1 %v1693_v43  ;;  %v949_v43 = vld [vmem:[#allocation10] sm:$0x3] }
  0xe8   : > { %1134 = vmatpush1.bf16.msra.mxu0 %v1691_v44  ;;  %1477 = vmatpush1.bf16.msra.mxu1 %v1691_v44  ;;  %v954_v44 = vrot.slane %v949_v43, %v469_v5 }
  0xe9   : > { %1135 = vmatprep.subr.bf16.mxu0 %v1696_v45  ;;  %1462 = vmatprep.subr.bf16.mxu1 %v1696_v45  ;;  %v958_v45 = vrot.slane %v949_v43, %v473_v8 }
  0xec   : > { %1136 = vmatpush1.bf16.msra.mxu0 %v1694_v46  ;;  %1478 = vmatpush1.bf16.msra.mxu1 %v1694_v46 }
  0xed   : > { %1137 = vmatprep.subr.bf16.mxu0 %v1699_v47  ;;  %1463 = vmatprep.subr.bf16.mxu1 %v1699_v47 }
  0xf0   : > { %1138 = vmatpush2.bf16.msra.mxu0 %v1697_v48  ;;  %1479 = vmatpush2.bf16.msra.mxu1 %v1697_v48 }
  0xf1   : > { %1139 = vmatprep.subr.bf16.mxu0 %v1702_v49  ;;  %1464 = vmatprep.subr.bf16.mxu1 %v1702_v49 }
  0xf4   : > { %1140 = vmatpush2.bf16.msra.mxu0 %v1700_v50  ;;  %1480 = vmatpush2.bf16.msra.mxu1 %v1700_v50 }
  0xf5   : > { %1141 = vmatprep.subr.bf16.mxu0 %v1705_v51  ;;  %1465 = vmatprep.subr.bf16.mxu1 %v1705_v51 }
  0xf8   : > { %1142 = vmatpush2.bf16.msra.mxu0 %v1703_v52  ;;  %1481 = vmatpush2.bf16.msra.mxu1 %v1703_v52 }
  0xf9   : > { %1143 = vmatprep.subr.bf16.mxu0 %v1708_v53  ;;  %1466 = vmatprep.subr.bf16.mxu1 %v1708_v53 }
  0xfc   : > { %1144 = vmatpush2.bf16.msra.mxu0 %v1706_v54  ;;  %1482 = vmatpush2.bf16.msra.mxu1 %v1706_v54 }
  0xfd   : > { %1145 = vmatprep.subr.bf16.mxu0 %v1711_v57  ;;  %1467 = vmatprep.subr.bf16.mxu1 %v1711_v57 }
 0x100   : > { %1146 = vmatpush2.bf16.msra.mxu0 %v1709_v59  ;;  %1483 = vmatpush2.bf16.msra.mxu1 %v1709_v59 }
 0x101   : > { %1147 = vmatprep.subr.bf16.mxu0 %v1714_v60  ;;  %1468 = vmatprep.subr.bf16.mxu1 %v1714_v60 }
 0x104   : > { %1148 = vmatpush2.bf16.msra.mxu0 %v1712_v61  ;;  %1484 = vmatpush2.bf16.msra.mxu1 %v1712_v61 }
 0x105   : > { %1149 = vmatprep.subr.bf16.mxu0 %v1717_v62  ;;  %1469 = vmatprep.subr.bf16.mxu1 %v1717_v62 }
 0x108   : > { %1150 = vmatpush2.bf16.msra.mxu0 %v1715_v63  ;;  %1485 = vmatpush2.bf16.msra.mxu1 %v1715_v63 }
 0x109   : > { %1151 = vmatprep.subr.bf16.mxu0 %v1720_v0  ;;  %1470 = vmatprep.subr.bf16.mxu1 %v1720_v0 }
 0x10c   : > { %1152 = vmatpush2.bf16.msra.mxu0 %v1718_v1  ;;  %1486 = vmatpush2.bf16.msra.mxu1 %v1718_v1 }
 0x10f   : > { %1154 = vmatmul.mubr.bf16.vlgmr.msra.gmra.mxu0 %v913_v58  ;;  %1164 = vmatmul.mubr.bf16.vlgmr.msra.gmra.mxu1 %v915_v2  ;;  %v482_v58 = vrot.slane %v465_v7, %v481_v9 }
 0x18f   : > { %v841_v11 = vpop.f32.mrf.mxu0  ;;  %v894_v12 = vpop.f32.mrf.mxu1 }
 0x190   : > { %v842_v13 = vadd.f32 %v841_v11, %v470_v10  ;;  %v895_v14 = vadd.f32 %v894_v12, %v478_v55 }
 0x191   : > { %v843_v15 = vpop.f32.mrf.mxu0  ;;  %v896_v16 = vpop.f32.mrf.mxu1 }
 0x192   : > { %1174 = vst [vmem:[%s2232_s13] sm:$0xff] %v842_v13  ;;  %1176 = vst [vmem:[%s2232_s13 + $0x10] sm:$0xff] %v895_v14  ;;  %v844_v17 = vadd.f32 %v843_v15, %v474_v56  ;;  %v897_v18 = vadd.f32 %v896_v16, %v482_v58 }
 0x193   : > { %v845_v19 = vpop.f32.mrf.mxu0  ;;  %v898_v20 = vpop.f32.mrf.mxu1 }
 0x194   : > { %1175 = vst [vmem:[%s2232_s13 + $0x8] sm:$0xff] %v844_v17  ;;  %1177 = vst [vmem:[%s2232_s13 + $0x18] sm:$0xff] %v897_v18  ;;  %v846_v21 = vadd.f32 %v845_v19, %v470_v10  ;;  %v899_v22 = vadd.f32 %v898_v20, %v478_v55 }
 0x195   : > { %v847_v23 = vpop.f32.mrf.mxu0  ;;  %v900_v24 = vpop.f32.mrf.mxu1 }
 0x196   : > { %1178 = vst [vmem:[%s2232_s13 + $0x30] sm:$0xff] %v846_v21  ;;  %1180 = vst [vmem:[%s2232_s13 + $0x40] sm:$0xff] %v899_v22  ;;  %v848_v25 = vadd.f32 %v847_v23, %v474_v56  ;;  %v901_v26 = vadd.f32 %v900_v24, %v482_v58 }
 0x197   : > { %v851_v27 = vpop.f32.mrf.mxu0  ;;  %v904_v28 = vpop.f32.mrf.mxu1 }
 0x198   : > { %1179 = vst [vmem:[%s2232_s13 + $0x38] sm:$0xff] %v848_v25  ;;  %1181 = vst [vmem:[%s2232_s13 + $0x48] sm:$0xff] %v901_v26  ;;  %v852_v29 = vadd.f32 %v851_v27, %v470_v10  ;;  %v905_v30 = vadd.f32 %v904_v28, %v478_v55 }
 0x199   : > { %v853_v31 = vpop.f32.mrf.mxu0  ;;  %v906_v32 = vpop.f32.mrf.mxu1 }
 0x19a   : > { %1182 = vst [vmem:[%s2232_s13 + $0x60] sm:$0xff] %v852_v29  ;;  %v854_v33 = vadd.f32 %v853_v31, %v474_v56  ;;  %1184 = vst [vmem:[%s2232_s13 + $0x70] sm:$0xff] %v905_v30  ;;  %v907_v34 = vadd.f32 %v906_v32, %v482_v58 }
 0x19b   : > { %v855_v35 = vpop.f32.mrf.mxu0  ;;  %v908_v36 = vpop.f32.mrf.mxu1 }
 0x19c   : > { %1183 = vst [vmem:[%s2232_s13 + $0x68] sm:$0xff] %v854_v33  ;;  %v856_v37 = vadd.f32 %v855_v35, %v470_v10  ;;  %1185 = vst [vmem:[%s2232_s13 + $0x78] sm:$0xff] %v907_v34  ;;  %v909_v38 = vadd.f32 %v908_v36, %v478_v55 }
 0x19d   : > { %v857_v39 = vpop.f32.mrf.mxu0  ;;  %v910_v40 = vpop.f32.mrf.mxu1 }
 0x19e   : > { %1186 = vst [vmem:[%s2232_s13 + $0x90] sm:$0xff] %v856_v37  ;;  %v858_v41 = vadd.f32 %v857_v39, %v474_v56  ;;  %1188 = vst [vmem:[%s2232_s13 + $0xa0] sm:$0xff] %v909_v38  ;;  %v911_v42 = vadd.f32 %v910_v40, %v482_v58 }
 0x1a0   : > { %1187 = vst [vmem:[%s2232_s13 + $0x98] sm:$0xff] %v858_v41  ;;  %1189 = vst [vmem:[%s2232_s13 + $0xa8] sm:$0xff] %v911_v42 }
 0x1cf   : > { %v1155_v46 = vpop.f32.mrf.mxu0  ;;  %v1165_v47 = vpop.f32.mrf.mxu1 }
 0x1d0   : > { %v1156_v48 = vadd.f32 %v1155_v46, %v954_v44  ;;  %v1166_v57 = vadd.f32 %v1165_v47, %v954_v44 }
 0x1d1   : > { %v1157_v49 = vpop.f32.mrf.mxu0  ;;  %v1167_v50 = vpop.f32.mrf.mxu1 }
 0x1d2   : > { %1190 = vst [vmem:[%s2232_s13 + $0x20] sm:$0xff] %v1156_v48  ;;  %v1158_v51 = vadd.f32 %v1157_v49, %v958_v45  ;;  %v1168_v63 = vadd.f32 %v1167_v50, %v958_v45  ;;  %1194 = vst [vmem:[%s2232_s13 + $0x80] sm:$0xff] %v1166_v57 }
 0x1d3   : > { %v1159_v52 = vpop.f32.mrf.mxu0  ;;  %v1169_v53 = vpop.f32.mrf.mxu1 }
 0x1d4   : > { %1191 = vst [vmem:[%s2232_s13 + $0x28] sm:$0xff] %v1158_v51  ;;  %v1160_v54 = vadd.f32 %v1159_v52, %v954_v44  ;;  %v1170_v61 = vadd.f32 %v1169_v53, %v954_v44  ;;  %1195 = vst [vmem:[%s2232_s13 + $0x88] sm:$0xff] %v1168_v63 }
 0x1d5   : > { %v1161_v59 = vpop.f32.mrf.mxu0  ;;  %v1171_v60 = vpop.f32.mrf.mxu1 }
 0x1d6   : > { %1192 = vst [vmem:[%s2232_s13 + $0x50] sm:$0xff] %v1160_v54  ;;  %v1162_v62 = vadd.f32 %v1161_v59, %v958_v45  ;;  %1196 = vst [vmem:[%s2232_s13 + $0xb0] sm:$0xff] %v1170_v61  ;;  %v1172_v0 = vadd.f32 %v1171_v60, %v958_v45 }
 0x1d8   : > { %1193 = vst [vmem:[%s2232_s13 + $0x58] sm:$0xff] %v1162_v62  ;;  %1197 = vst [vmem:[%s2232_s13 + $0xb8] sm:$0xff] %v1172_v0 }
 0x1d9 PF: > { %p21_p9 = scmp.ge.s32.totalorder %s2059_s10, 4   ;;  %s2301_s21 = smov %s1923_s22 }
 0x1da   : > { %s2302_s22 = smov %s1927_s23  ;;  %s2303_s23 = smov %s2070_s17 }
 0x1db   : > { %s2304_s24 = smov %s2059_s10  ;;  %23 = sbr.rel (!%p21_p9) target bundleno = 10 (0xa), region = 113 }
 0x1e0   :  { %1222 = vsyncpa [#allocation3], 1 }
 0x1e1   :  { %1224 = vsyncpa [#allocation3 + $0x1], 1 }
 0x1e2   :  { %1225 = vsyncpa [#allocation5], 1 }
 0x1e3   :  { %1227 = vsyncpa [#allocation5 + $0x1], 1 }
 0x1e4   :  { %1228 = vsyncpa [#allocation8], 1 }
 0x1e5   :  { %1229 = vsyncpa [#allocation11], 1 }

// kernel: decoder_forward.9
= control target key start
LH: loop header
LB: loop body
LE: loop exit
PB: predicated region body
PF: predicated region fallthrough
CT: control target
= control target key end

     0   :  { %s943_s21 = smov 0   ;;  %s1103_s0 = inlined_call_operand.vmem [shape: f32[64,256], index: 0, kind: input, shape index: {}]   ;;  %s1104_s1 = inlined_call_operand.vmem [shape: f32[64,256], index: 1, kind: input, shape index: {}]   ;;  %s1105_s2 = inlined_call_operand.vmem [shape: bf16[256,256], index: 2, kind: input, shape index: {}]   ;;  %s1106_s3 = inlined_call_operand.vmem [shape: f32[1,256], index: 3, kind: input, shape index: {}]   ;;  %s1107_s4 = inlined_call_operand.vmem [shape: f32[1,256], index: 4, kind: input, shape index: {}]   ;;  %s1108_s5 = inlined_call_operand.vmem [shape: f32[1,256], index: 5, kind: input, shape index: {}]   ;;  %s1109_s6 = inlined_call_operand.vmem [shape: f32[64,256], index: 6, kind: output, shape index: {}]  }
   0x1 LB: > { %s753_s22 = sadd.s32 4294967295, %s906_s21   ;;  %p757_p0 = scmp.ge.s32.totalorder %s906_s21, 1  ;;  %s906_s21 = sphi %s943_s21, %s16_s21  }
   0x2   : > { %p226_p1 = scmp.lt.s32.totalorder %s906_s21, 3 }
   0x4   : > { %p227_p2 = pnand %p757_p0, %p226_p1 }
   0x5   : > { %s758_s9 = sshll.u32 (!%p227_p2), %s753_s22, 2 }
   0x6   : > { %230 = sbr.rel (%p227_p2) target bundleno = 594 (0x252), region = 44  ;;  %p265_p3 = scmp.lt.s32.totalorder (!%p227_p2), %s758_s9, 7 }
   0xb   : > { %v844_v0 = vld [vmem:[%s1105_s2 + $0x74] ss:$8 sps:$4 sm:$0xff]   ;;  %v846_v1 = vld [vmem:[%s1105_s2 + $0x70] ss:$8 sps:$4 sm:$0xff]   ;;  %v847_v2 = vld [vmem:[%s1105_s2 + $0x64] ss:$8 sps:$4 sm:$0xff]   ;;  %v331_v44 = vlaneseq }
   0xc   : > { %501 = vmatprep.subr.bf16.mxu0 %v844_v0  ;;  %804 = vmatprep.subr.bf16.mxu1 %v844_v0  ;;  %v849_v3 = vld [vmem:[%s1105_s2 + $0x60] ss:$8 sps:$4 sm:$0xff]   ;;  %v850_v4 = vld [vmem:[%s1105_s2 + $0x54] ss:$8 sps:$4 sm:$0xff]   ;;  %v852_v5 = vld [vmem:[%s1105_s2 + $0x50] ss:$8 sps:$4 sm:$0xff]  }
   0xd   : > { %502 = vmatpush1.bf16.msra.mxu0 %v846_v1  ;;  %820 = vmatpush1.bf16.msra.mxu1 %v846_v1  ;;  %v853_v6 = vld [vmem:[%s1105_s2 + $0x44] ss:$8 sps:$4 sm:$0xff]   ;;  %v855_v7 = vld [vmem:[%s1105_s2 + $0x40] ss:$8 sps:$4 sm:$0xff]   ;;  %s1111_s9 = smov (!%p265_p3, %s758_s9), 7  ;;  %v332_v45 = vshrl.u32 %v331_v44, 7 }
   0xe   : > { %503 = vmatprep.subr.bf16.mxu0 %v847_v2  ;;  %805 = vmatprep.subr.bf16.mxu1 %v847_v2  ;;  %v856_v8 = vld [vmem:[%s1105_s2 + $0x34] ss:$8 sps:$4 sm:$0xff]   ;;  %v858_v9 = vld [vmem:[%s1105_s2 + $0x30] ss:$8 sps:$4 sm:$0xff]   ;;  %s981_s20 = sshll.u32 %s1111_s9, 4 }
   0xf   : > { %v859_v10 = vld [vmem:[%s1105_s2 + $0x24] ss:$8 sps:$4 sm:$0xff]   ;;  %s990_s26 = scalar_lea.vmem %s1103_s0, %s981_s20  ;;  %v861_v11 = vld [vmem:[%s1105_s2 + $0x20] ss:$8 sps:$4 sm:$0xff]   ;;  %v862_v12 = vld [vmem:[%s1105_s2 + $0x14] ss:$8 sps:$4 sm:$0xff]   ;;  %s276_s30 = scalar_lea.vmem %s1104_s1, %s981_s20 }
  0x10   : > { %v286_v13 = vld [vmem:[%s990_s26 + $0x8] sm:$0xff]  ;;  %v288_v14 = vld [vmem:[%s990_s26 + $0x18] sm:$0xff]  ;;  %v285_v38 = vld [vmem:[%s990_s26] sm:$0xff]  ;;  %v1063_v46 = vsub.s32 0, %v332_v45  ;;  %v1068_v48 = vsub.s32 1, %v332_v45  ;;  %s283_s13 = scalar_lea.vmem %s1109_s6, %s981_s20 }
  0x11   : > { %504 = vmatpush1.bf16.msra.mxu0 %v849_v3  ;;  %821 = vmatpush1.bf16.msra.mxu1 %v849_v3  ;;  %v294_v15 = vpack.c.bf16 %v288_v14, %v286_v13  ;;  %v290_v16 = vld [vmem:[%s990_s26 + $0x28] sm:$0xff]  ;;  %v292_v17 = vld [vmem:[%s990_s26 + $0x38] sm:$0xff]  ;;  %v287_v39 = vld [vmem:[%s990_s26 + $0x10] sm:$0xff] }
  0x12   : > { %505 = vmatprep.subr.bf16.mxu0 %v850_v4  ;;  %806 = vmatprep.subr.bf16.mxu1 %v850_v4  ;;  %v864_v18 = vld [vmem:[%s1105_s2 + $0x10] ss:$8 sps:$4 sm:$0xff]   ;;  %v296_v19 = vpack.c.bf16 %v292_v17, %v290_v16  ;;  %v865_v20 = vld [vmem:[%s1105_s2 + $0x4] ss:$8 sps:$4 sm:$0xff]   ;;  %v867_v21 = vld [vmem:[%s1105_s2] ss:$8 sps:$4 sm:$0xff]   ;;  %v293_v42 = vpack.c.bf16 %v287_v39, %v285_v38 }
  0x13   : > { %533 = vmatprep.mubr.bf16.mxu0 %v294_v15  ;;  %v868_v22 = vld [vmem:[%s1105_s2 + $0xf4] ss:$8 sps:$4 sm:$0xff]   ;;  %v870_v23 = vld [vmem:[%s1105_s2 + $0xf0] ss:$8 sps:$4 sm:$0xff]   ;;  %v871_v24 = vld [vmem:[%s1105_s2 + $0xe4] ss:$8 sps:$4 sm:$0xff]  }
  0x14   : > { %543 = vmatprep.mubr.bf16.mxu1 %v296_v19  ;;  %v873_v25 = vld [vmem:[%s1105_s2 + $0xe0] ss:$8 sps:$4 sm:$0xff]   ;;  %v874_v26 = vld [vmem:[%s1105_s2 + $0xd4] ss:$8 sps:$4 sm:$0xff]   ;;  %v876_v27 = vld [vmem:[%s1105_s2 + $0xd0] ss:$8 sps:$4 sm:$0xff]  }
  0x15   : > { %506 = vmatpush1.bf16.msra.mxu0 %v852_v5  ;;  %822 = vmatpush1.bf16.msra.mxu1 %v852_v5  ;;  %v877_v28 = vld [vmem:[%s1105_s2 + $0xc4] ss:$8 sps:$4 sm:$0xff]   ;;  %v879_v29 = vld [vmem:[%s1105_s2 + $0xc0] ss:$8 sps:$4 sm:$0xff]   ;;  %v880_v30 = vld [vmem:[%s1105_s2 + $0xb4] ss:$8 sps:$4 sm:$0xff]  }
  0x16   : > { %507 = vmatprep.subr.bf16.mxu0 %v853_v6  ;;  %807 = vmatprep.subr.bf16.mxu1 %v853_v6  ;;  %v882_v31 = vld [vmem:[%s1105_s2 + $0xb0] ss:$8 sps:$4 sm:$0xff]   ;;  %v883_v32 = vld [vmem:[%s1105_s2 + $0xa4] ss:$8 sps:$4 sm:$0xff]   ;;  %v885_v33 = vld [vmem:[%s1105_s2 + $0xa0] ss:$8 sps:$4 sm:$0xff]  }
  0x17   : > { %v886_v34 = vld [vmem:[%s1105_s2 + $0x94] ss:$8 sps:$4 sm:$0xff]   ;;  %v888_v35 = vld [vmem:[%s1105_s2 + $0x90] ss:$8 sps:$4 sm:$0xff]   ;;  %v889_v36 = vld [vmem:[%s1105_s2 + $0x84] ss:$8 sps:$4 sm:$0xff]  }
  0x18   : > { %v891_v37 = vld [vmem:[%s1105_s2 + $0x80] ss:$8 sps:$4 sm:$0xff]   ;;  %v291_v41 = vld [vmem:[%s990_s26 + $0x30] sm:$0xff] }
  0x19   : > { %508 = vmatpush1.bf16.msra.mxu0 %v855_v7  ;;  %823 = vmatpush1.bf16.msra.mxu1 %v855_v7  ;;  %v289_v40 = vld [vmem:[%s990_s26 + $0x20] sm:$0xff]  ;;  %v559_v58 = vld [vmem:[%s276_s30 + $0x28] sm:$0xff]  ;;  %v556_v3 = vld [vmem:[%s276_s30 + $0x10] sm:$0xff] }
  0x1a   : > { %509 = vmatprep.subr.bf16.mxu0 %v856_v8  ;;  %808 = vmatprep.subr.bf16.mxu1 %v856_v8  ;;  %v295_v43 = vpack.c.bf16 %v291_v41, %v289_v40  ;;  %v329_v47 = vld [vmem:[%s1106_s3] sm:$0x3]  ;;  %v555_v59 = vld [vmem:[%s276_s30 + $0x8] sm:$0xff]  ;;  %v560_v7 = vld [vmem:[%s276_s30 + $0x30] sm:$0xff] }
  0x1b   : > { %v334_v49 = vrot.slane %v329_v47, %v1063_v46  ;;  %v338_v50 = vrot.slane %v329_v47, %v1068_v48  ;;  %v558_v54 = vld [vmem:[%s276_s30 + $0x20] sm:$0xff] }
  0x1c   : > { %v554_v62 = vld [vmem:[%s276_s30] sm:$0xff] }
  0x1d   : > { %510 = vmatpush1.bf16.msra.mxu0 %v858_v9  ;;  %824 = vmatpush1.bf16.msra.mxu1 %v858_v9  ;;  %v557_v9 = vld [vmem:[%s276_s30 + $0x18] sm:$0xff] }
  0x1e   : > { %511 = vmatprep.subr.bf16.mxu0 %v859_v10  ;;  %809 = vmatprep.subr.bf16.mxu1 %v859_v10 }
  0x21   : > { %512 = vmatpush1.bf16.msra.mxu0 %v861_v11  ;;  %825 = vmatpush1.bf16.msra.mxu1 %v861_v11  ;;  %v561_v11 = vld [vmem:[%s276_s30 + $0x38] sm:$0xff] }
  0x22   : > { %513 = vmatprep.subr.bf16.mxu0 %v862_v12  ;;  %810 = vmatprep.subr.bf16.mxu1 %v862_v12 }
  0x25   : > { %514 = vmatpush1.bf16.msra.mxu0 %v864_v18  ;;  %826 = vmatpush1.bf16.msra.mxu1 %v864_v18 }
  0x26   : > { %515 = vmatprep.subr.bf16.mxu0 %v865_v20  ;;  %811 = vmatprep.subr.bf16.mxu1 %v865_v20 }
  0x29   : > { %516 = vmatpush1.bf16.msra.mxu0 %v867_v21  ;;  %827 = vmatpush1.bf16.msra.mxu1 %v867_v21 }
  0x2a   : > { %517 = vmatprep.subr.bf16.mxu0 %v868_v22  ;;  %812 = vmatprep.subr.bf16.mxu1 %v868_v22 }
  0x2d   : > { %518 = vmatpush2.bf16.msra.mxu0 %v870_v23  ;;  %828 = vmatpush2.bf16.msra.mxu1 %v870_v23 }
  0x2e   : > { %519 = vmatprep.subr.bf16.mxu0 %v871_v24  ;;  %813 = vmatprep.subr.bf16.mxu1 %v871_v24 }
  0x31   : > { %520 = vmatpush2.bf16.msra.mxu0 %v873_v25  ;;  %829 = vmatpush2.bf16.msra.mxu1 %v873_v25 }
  0x32   : > { %521 = vmatprep.subr.bf16.mxu0 %v874_v26  ;;  %814 = vmatprep.subr.bf16.mxu1 %v874_v26 }
  0x35   : > { %522 = vmatpush2.bf16.msra.mxu0 %v876_v27  ;;  %830 = vmatpush2.bf16.msra.mxu1 %v876_v27 }
  0x36   : > { %523 = vmatprep.subr.bf16.mxu0 %v877_v28  ;;  %815 = vmatprep.subr.bf16.mxu1 %v877_v28 }
  0x39   : > { %524 = vmatpush2.bf16.msra.mxu0 %v879_v29  ;;  %831 = vmatpush2.bf16.msra.mxu1 %v879_v29 }
  0x3a   : > { %525 = vmatprep.subr.bf16.mxu0 %v880_v30  ;;  %816 = vmatprep.subr.bf16.mxu1 %v880_v30 }
  0x3d   : > { %526 = vmatpush2.bf16.msra.mxu0 %v882_v31  ;;  %832 = vmatpush2.bf16.msra.mxu1 %v882_v31 }
  0x3e   : > { %527 = vmatprep.subr.bf16.mxu0 %v883_v32  ;;  %817 = vmatprep.subr.bf16.mxu1 %v883_v32 }
  0x41   : > { %528 = vmatpush2.bf16.msra.mxu0 %v885_v33  ;;  %833 = vmatpush2.bf16.msra.mxu1 %v885_v33 }
  0x42   : > { %529 = vmatprep.subr.bf16.mxu0 %v886_v34  ;;  %818 = vmatprep.subr.bf16.mxu1 %v886_v34 }
  0x45   : > { %530 = vmatpush2.bf16.msra.mxu0 %v888_v35  ;;  %834 = vmatpush2.bf16.msra.mxu1 %v888_v35 }
  0x46   : > { %531 = vmatprep.subr.bf16.mxu0 %v889_v36  ;;  %819 = vmatprep.subr.bf16.mxu1 %v889_v36 }
  0x49   : > { %532 = vmatpush2.bf16.msra.mxu0 %v891_v37  ;;  %835 = vmatpush2.bf16.msra.mxu1 %v891_v37 }
  0x4c   : > { %534 = vmatmul.mubr.bf16.vlgmr.msra.gmra.mxu0 %v293_v42  ;;  %544 = vmatmul.mubr.bf16.vlgmr.msra.gmra.mxu1 %v295_v43 }
 0x10c   : > { %v535_v51 = vpop.f32.mrf.mxu0  ;;  %v545_v52 = vpop.f32.mrf.mxu1 }
 0x10d   : > { %v546_v53 = vadd.f32 %v545_v52, %v334_v49  ;;  %v536_v55 = vadd.f32 %v535_v51, %v334_v49 }
 0x10e   : > { %v537_v56 = vpop.f32.mrf.mxu0  ;;  %v547_v57 = vpop.f32.mrf.mxu1 }
 0x10f   : > { %v538_v60 = vadd.f32 %v537_v56, %v338_v50  ;;  %v548_v61 = vadd.f32 %v547_v57, %v338_v50  ;;  %v566_v1 = vadd.f32 %v558_v54, %v546_v53  ;;  %v562_v12 = vadd.f32 %v554_v62, %v536_v55 }
 0x110   : > { %v539_v63 = vpop.f32.mrf.mxu0  ;;  %v549_v0 = vpop.f32.mrf.mxu1 }
 0x111   : > { %v540_v2 = vadd.f32 %v539_v63, %v334_v49  ;;  %v550_v4 = vadd.f32 %v549_v0, %v334_v49  ;;  %v567_v5 = vadd.f32 %v559_v58, %v548_v61  ;;  %v563_v6 = vadd.f32 %v555_v59, %v538_v60 }
 0x112   : > { %v541_v8 = vpop.f32.mrf.mxu0  ;;  %v551_v10 = vpop.f32.mrf.mxu1 }
 0x113   : > { %v542_v13 = vadd.f32 %v541_v8, %v338_v50  ;;  %v552_v14 = vadd.f32 %v551_v10, %v338_v50  ;;  %v576_v15 = vadd.f32 %v567_v5, %v566_v1  ;;  %v570_v16 = vadd.f32 %v563_v6, %v562_v12 }
 0x114   : > { %v564_v17 = vadd.f32 %v556_v3, %v540_v2  ;;  %v568_v18 = vadd.f32 %v560_v7, %v550_v4  ;;  %v655_v2 = vld [vmem:[%s1108_s5] sm:$0x3] }
 0x115   : > { %v565_v19 = vadd.f32 %v557_v9, %v542_v13  ;;  %v569_v20 = vadd.f32 %v561_v11, %v552_v14  ;;  %577 = vadd.xlane.f32.xlu1 %v576_v15  ;;  %571 = vadd.xlane.f32.xlu0 %v570_v16  ;;  %v664_v7 = vrot.slane %v655_v2, %v1068_v48 }
 0x117   : > { %v579_v21 = vadd.f32 %v569_v20, %v568_v18  ;;  %v573_v22 = vadd.f32 %v565_v19, %v564_v17 }
 0x119   : > { %580 = vadd.xlane.f32.xlu1 %v579_v21  ;;  %574 = vadd.xlane.f32.xlu0 %v573_v22 }
 0x19e   : > { %v578_v23 = vpop.xlane.xlu1 %577  ;;  %v572_v24 = vpop.xlane.xlu0 %571 }
 0x19f   : > { %v585_v25 = vmul.f32 0.00390625, %v578_v23  ;;  %v583_v26 = vmul.f32 0.00390625, %v572_v24 }
 0x1a1   : > { %v587_v27 = vsub.f32 %v562_v12, %v583_v26  ;;  %v588_v28 = vsub.f32 %v563_v6, %v583_v26  ;;  %v591_v29 = vsub.f32 %v566_v1, %v585_v25  ;;  %v592_v30 = vsub.f32 %v567_v5, %v585_v25  ;;  %v635_v1 = vld [vmem:[%s1107_s4] sm:$0x3] }
 0x1a2   : > { %v581_v31 = vpop.xlane.xlu1 %580  ;;  %v575_v32 = vpop.xlane.xlu0 %574  ;;  %v640_v3 = vrot.slane %v635_v1, %v1063_v46  ;;  %v644_v4 = vrot.slane %v635_v1, %v1068_v48  ;;  %v660_v6 = vrot.slane %v655_v2, %v1063_v46 }
 0x1a3   : > { %v586_v33 = vmul.f32 0.00390625, %v581_v31  ;;  %v584_v34 = vmul.f32 0.00390625, %v575_v32  ;;  %v595_v35 = vmul.f32 %v587_v27, %v587_v27  ;;  %v596_v36 = vmul.f32 %v588_v28, %v588_v28 }
 0x1a4   : > { %v599_v42 = vmul.f32 %v591_v29, %v591_v29  ;;  %v600_v43 = vmul.f32 %v592_v30, %v592_v30 }
 0x1a5   : > { %v1076_v37 = vsub.f32 %v568_v18, %v586_v33  ;;  %v1078_v38 = vsub.f32 %v569_v20, %v586_v33  ;;  %v589_v39 = vsub.f32 %v564_v17, %v584_v34  ;;  %v590_v40 = vsub.f32 %v565_v19, %v584_v34 }
 0x1a6   : > { %v603_v41 = vadd.f32 %v596_v36, %v595_v35  ;;  %v609_v51 = vadd.f32 %v600_v43, %v599_v42 }
 0x1a7   : > { %v597_v44 = vmul.f32 %v589_v39, %v589_v39  ;;  %v598_v45 = vmul.f32 %v590_v40, %v590_v40  ;;  %v601_v49 = vmul.f32 %v1076_v37, %v1076_v37  ;;  %v602_v50 = vmul.f32 %v1078_v38, %v1078_v38 }
 0x1a8   : > { %604 = vadd.xlane.f32.xlu0 %v603_v41 }
 0x1a9   : > { %v606_v47 = vadd.f32 %v598_v45, %v597_v44  ;;  %v612_v52 = vadd.f32 %v602_v50, %v601_v49 }
 0x1ab   : > { %607 = vadd.xlane.f32.xlu1 %v606_v47 }
 0x1ac   : > { %610 = vadd.xlane.f32.xlu0 %v609_v51 }
 0x1af   : > { %613 = vadd.xlane.f32.xlu1 %v612_v52 }
 0x231   : > { %v605_v53 = vpop.xlane.xlu0 %604 }
 0x232   : > { %v615_v54 = vmul.f32 0.00390625, %v605_v53 }
 0x234   : > { %v619_v55 = vadd.f32 1e-05, %v615_v54  ;;  %v608_v56 = vpop.xlane.xlu1 %607 }
 0x235   : > { %v616_v57 = vmul.f32 0.00390625, %v608_v56  ;;  %v611_v58 = vpop.xlane.xlu0 %610 }
 0x236   : > { %892 = vrsqrt.f32 %v619_v55  ;;  %v617_v59 = vmul.f32 0.00390625, %v611_v58 }
 0x237   : > { %v620_v60 = vadd.f32 1e-05, %v616_v57 }
 0x238   : > { %v621_v61 = vadd.f32 1e-05, %v617_v59  ;;  %v614_v62 = vpop.xlane.xlu1 %613 }
 0x239   : > { %894 = vrsqrt.f32 %v620_v60  ;;  %v618_v63 = vmul.f32 0.00390625, %v614_v62 }
 0x23a   : > { %896 = vrsqrt.f32 %v621_v61 }
 0x23b   : > { %v622_v0 = vadd.f32 1e-05, %v618_v63 }
 0x23d   : > { %898 = vrsqrt.f32 %v622_v0 }
 0x243   : > { %v893_v5 = vpop.eup %892 }
 0x244   : > { %v627_v8 = vmul.f32 %v893_v5, %v587_v27  ;;  %v628_v9 = vmul.f32 %v893_v5, %v588_v28 }
 0x246   : > { %v895_v10 = vpop.eup %894  ;;  %v647_v11 = vmul.f32 %v640_v3, %v627_v8  ;;  %v648_v12 = vmul.f32 %v644_v4, %v628_v9 }
 0x247   : > { %v897_v13 = vpop.eup %896  ;;  %v629_v14 = vmul.f32 %v895_v10, %v589_v39  ;;  %v630_v15 = vmul.f32 %v895_v10, %v590_v40 }
 0x248   : > { %v667_v16 = vadd.f32 %v660_v6, %v647_v11  ;;  %v668_v17 = vadd.f32 %v664_v7, %v648_v12  ;;  %v631_v18 = vmul.f32 %v897_v13, %v591_v29  ;;  %v632_v19 = vmul.f32 %v897_v13, %v592_v30 }
 0x249   : > { %v649_v20 = vmul.f32 %v640_v3, %v629_v14  ;;  %v650_v46 = vmul.f32 %v644_v4, %v630_v15 }
 0x24a   : > { %v899_v21 = vpop.eup %898  ;;  %675 = vst [vmem:[%s283_s13] sm:$0xff] %v667_v16  ;;  %676 = vst [vmem:[%s283_s13 + $0x8] sm:$0xff] %v668_v17  ;;  %v651_v48 = vmul.f32 %v640_v3, %v631_v18  ;;  %v652_v22 = vmul.f32 %v644_v4, %v632_v19 }
 0x24b   : > { %v669_v23 = vadd.f32 %v660_v6, %v649_v20  ;;  %v670_v24 = vadd.f32 %v664_v7, %v650_v46  ;;  %v633_v25 = vmul.f32 %v899_v21, %v1076_v37  ;;  %v634_v26 = vmul.f32 %v899_v21, %v1078_v38 }
 0x24c   : > { %v671_v27 = vadd.f32 %v660_v6, %v651_v48  ;;  %v672_v28 = vadd.f32 %v664_v7, %v652_v22 }
 0x24d   : > { %677 = vst [vmem:[%s283_s13 + $0x10] sm:$0xff] %v669_v23  ;;  %678 = vst [vmem:[%s283_s13 + $0x18] sm:$0xff] %v670_v24  ;;  %v653_v31 = vmul.f32 %v640_v3, %v633_v25  ;;  %v654_v29 = vmul.f32 %v644_v4, %v634_v26 }
 0x24e   : > { %679 = vst [vmem:[%s283_s13 + $0x20] sm:$0xff] %v671_v27  ;;  %680 = vst [vmem:[%s283_s13 + $0x28] sm:$0xff] %v672_v28 }
 0x24f   : > { %v673_v30 = vadd.f32 %v660_v6, %v653_v31  ;;  %v674_v32 = vadd.f32 %v664_v7, %v654_v29 }
 0x251   : > { %681 = vst [vmem:[%s283_s13 + $0x30] sm:$0xff] %v673_v30  ;;  %682 = vst [vmem:[%s283_s13 + $0x38] sm:$0xff] %v674_v32 }
 0x252 PF: > { %s16_s21 = sadd.s32 1, %s906_s21  }
 0x253   : > { %p13_p4 = scmp.ge.s32.totalorder %s16_s21, 4  }
 0x255   :  { %15 = sbr.rel (!%p13_p4) target bundleno = 1 (0x1), region = 77 }

// kernel: decoder_forward.10
= control target key start
LH: loop header
LB: loop body
LE: loop exit
PB: predicated region body
PF: predicated region fallthrough
CT: control target
= control target key end

     0   :  { %s1362_s12 = smov 0   ;;  %s1735_s0 = inlined_call_operand.vmem [shape: f32[64,256], index: 0, kind: input, shape index: {}]   ;;  %s1736_s1 = inlined_call_operand.vmem [shape: bf16[256,768], index: 1, kind: input, shape index: {}]   ;;  %s1737_s2 = inlined_call_operand.vmem [shape: f32[1,768], index: 2, kind: input, shape index: {}]   ;;  %s1738_s3 = inlined_call_operand.vmem [shape: f32[64,768], index: 3, kind: output, shape index: {}]  }
   0x1 LB: > { %s1040_s13 = sadd.s32 4294967295, %s1340_s12   ;;  %p1044_p0 = scmp.ge.s32.totalorder %s1340_s12, 1  ;;  %s1340_s12 = sphi %s1362_s12, %s13_s12  }
   0x2   : > { %p139_p1 = scmp.lt.s32.totalorder %s1340_s12, 3 }
   0x4   : > { %p140_p2 = pnand %p1044_p0, %p139_p1 }
   0x5   : > { %s1045_s24 = sshll.u32 (!%p140_p2), %s1040_s13, 2 }
   0x6   : > { %143 = sbr.rel (%p140_p2) target bundleno = 343 (0x157), region = 32  ;;  %p166_p3 = scmp.lt.s32.totalorder (!%p140_p2), %s1045_s24, 7 }
   0xb   : > { %v1190_v0 = vld [vmem:[%s1736_s1 + $0x154] ss:$24 sps:$4 sm:$0xff]   ;;  %v1194_v2 = vld [vmem:[%s1736_s1 + $0x150] ss:$24 sps:$4 sm:$0xff]   ;;  %v1196_v4 = vld [vmem:[%s1736_s1 + $0x124] ss:$24 sps:$4 sm:$0xff]  }
   0xc   : > { %v1192_v1 = vld [vmem:[%s1736_s1 + $0x15c] ss:$24 sps:$4 sm:$0xff]   ;;  %799 = vmatprep.subr.bf16.mxu0 %v1190_v0  ;;  %v1195_v3 = vld [vmem:[%s1736_s1 + $0x158] ss:$24 sps:$4 sm:$0xff]   ;;  %v1198_v5 = vld [vmem:[%s1736_s1 + $0x12c] ss:$24 sps:$4 sm:$0xff]  }
   0xd   : > { %852 = vmatprep.subr.bf16.mxu1 %v1192_v1  ;;  %800 = vmatpush1.bf16.msra.mxu0 %v1194_v2  ;;  %v1200_v6 = vld [vmem:[%s1736_s1 + $0x120] ss:$24 sps:$4 sm:$0xff]   ;;  %v1202_v8 = vld [vmem:[%s1736_s1 + $0xf4] ss:$24 sps:$4 sm:$0xff]   ;;  %v1206_v10 = vld [vmem:[%s1736_s1 + $0xf0] ss:$24 sps:$4 sm:$0xff]  }
   0xe   : > { %853 = vmatpush1.bf16.msra.mxu1 %v1195_v3  ;;  %801 = vmatprep.subr.bf16.mxu0 %v1196_v4  ;;  %v1201_v7 = vld [vmem:[%s1736_s1 + $0x128] ss:$24 sps:$4 sm:$0xff]   ;;  %v1204_v9 = vld [vmem:[%s1736_s1 + $0xfc] ss:$24 sps:$4 sm:$0xff]   ;;  %v1207_v11 = vld [vmem:[%s1736_s1 + $0xf8] ss:$24 sps:$4 sm:$0xff]  }
   0xf   : > { %854 = vmatprep.subr.bf16.mxu1 %v1198_v5  ;;  %v1208_v12 = vld [vmem:[%s1736_s1 + $0xc4] ss:$24 sps:$4 sm:$0xff]   ;;  %v1212_v14 = vld [vmem:[%s1736_s1 + $0xc0] ss:$24 sps:$4 sm:$0xff]   ;;  %v1214_v16 = vld [vmem:[%s1736_s1 + $0x94] ss:$24 sps:$4 sm:$0xff]  }
  0x10   : > { %v1210_v13 = vld [vmem:[%s1736_s1 + $0xcc] ss:$24 sps:$4 sm:$0xff]   ;;  %v1213_v15 = vld [vmem:[%s1736_s1 + $0xc8] ss:$24 sps:$4 sm:$0xff]   ;;  %v1216_v17 = vld [vmem:[%s1736_s1 + $0x9c] ss:$24 sps:$4 sm:$0xff]  }
  0x11   : > { %802 = vmatpush1.bf16.msra.mxu0 %v1200_v6  ;;  %v1218_v18 = vld [vmem:[%s1736_s1 + $0x90] ss:$24 sps:$4 sm:$0xff]   ;;  %v1220_v20 = vld [vmem:[%s1736_s1 + $0x64] ss:$24 sps:$4 sm:$0xff]   ;;  %v1224_v22 = vld [vmem:[%s1736_s1 + $0x60] ss:$24 sps:$4 sm:$0xff]  }
  0x12   : > { %855 = vmatpush1.bf16.msra.mxu1 %v1201_v7  ;;  %803 = vmatprep.subr.bf16.mxu0 %v1202_v8  ;;  %v1219_v19 = vld [vmem:[%s1736_s1 + $0x98] ss:$24 sps:$4 sm:$0xff]   ;;  %v1222_v21 = vld [vmem:[%s1736_s1 + $0x6c] ss:$24 sps:$4 sm:$0xff]   ;;  %v1225_v23 = vld [vmem:[%s1736_s1 + $0x68] ss:$24 sps:$4 sm:$0xff]  }
  0x13   : > { %856 = vmatprep.subr.bf16.mxu1 %v1204_v9  ;;  %v1226_v24 = vld [vmem:[%s1736_s1 + $0x34] ss:$24 sps:$4 sm:$0xff]   ;;  %v1230_v26 = vld [vmem:[%s1736_s1 + $0x30] ss:$24 sps:$4 sm:$0xff]   ;;  %v1232_v28 = vld [vmem:[%s1736_s1 + $0x4] ss:$24 sps:$4 sm:$0xff]  }
  0x14   : > { %v1228_v25 = vld [vmem:[%s1736_s1 + $0x3c] ss:$24 sps:$4 sm:$0xff]   ;;  %v1231_v27 = vld [vmem:[%s1736_s1 + $0x38] ss:$24 sps:$4 sm:$0xff]   ;;  %v1234_v29 = vld [vmem:[%s1736_s1 + $0xc] ss:$24 sps:$4 sm:$0xff]  }
  0x15   : > { %804 = vmatpush1.bf16.msra.mxu0 %v1206_v10  ;;  %v1236_v30 = vld [vmem:[%s1736_s1] ss:$24 sps:$4 sm:$0xff]   ;;  %v1238_v32 = vld [vmem:[%s1736_s1 + $0x2d4] ss:$24 sps:$4 sm:$0xff]   ;;  %v1242_v34 = vld [vmem:[%s1736_s1 + $0x2d0] ss:$24 sps:$4 sm:$0xff]  }
  0x16   : > { %857 = vmatpush1.bf16.msra.mxu1 %v1207_v11  ;;  %805 = vmatprep.subr.bf16.mxu0 %v1208_v12  ;;  %v1237_v31 = vld [vmem:[%s1736_s1 + $0x8] ss:$24 sps:$4 sm:$0xff]   ;;  %v1240_v33 = vld [vmem:[%s1736_s1 + $0x2dc] ss:$24 sps:$4 sm:$0xff]   ;;  %v1243_v35 = vld [vmem:[%s1736_s1 + $0x2d8] ss:$24 sps:$4 sm:$0xff]  }
  0x17   : > { %858 = vmatprep.subr.bf16.mxu1 %v1210_v13  ;;  %v1244_v36 = vld [vmem:[%s1736_s1 + $0x2a4] ss:$24 sps:$4 sm:$0xff]   ;;  %s1740_s24 = smov (!%p166_p3, %s1045_s24), 7  ;;  %v1248_v38 = vld [vmem:[%s1736_s1 + $0x2a0] ss:$24 sps:$4 sm:$0xff]  }
  0x18   : > { %v1246_v37 = vld [vmem:[%s1736_s1 + $0x2ac] ss:$24 sps:$4 sm:$0xff]   ;;  %v1249_v39 = vld [vmem:[%s1736_s1 + $0x2a8] ss:$24 sps:$4 sm:$0xff]   ;;  %s1148_s21 = sshll.u32 %s1740_s24, 4  ;;  %s1181_s11 = smul.u32 48, %s1740_s24 }
  0x19   : > { %806 = vmatpush1.bf16.msra.mxu0 %v1212_v14  ;;  %v1250_v40 = vld [vmem:[%s1736_s1 + $0x274] ss:$24 sps:$4 sm:$0xff]   ;;  %v1254_v42 = vld [vmem:[%s1736_s1 + $0x270] ss:$24 sps:$4 sm:$0xff]   ;;  %s1510_s4 = scalar_lea.vmem %s1735_s0, %s1148_s21  ;;  %v1256_v44 = vld [vmem:[%s1736_s1 + $0x244] ss:$24 sps:$4 sm:$0xff]  }
  0x1a   : > { %859 = vmatpush1.bf16.msra.mxu1 %v1213_v15  ;;  %807 = vmatprep.subr.bf16.mxu0 %v1214_v16  ;;  %v1252_v41 = vld [vmem:[%s1736_s1 + $0x27c] ss:$24 sps:$4 sm:$0xff]   ;;  %v1255_v43 = vld [vmem:[%s1736_s1 + $0x278] ss:$24 sps:$4 sm:$0xff]   ;;  %v1258_v45 = vld [vmem:[%s1736_s1 + $0x24c] ss:$24 sps:$4 sm:$0xff]   ;;  %s1704_s16 = scalar_lea.vmem %s1738_s3, %s1181_s11 }
  0x1b   : > { %860 = vmatprep.subr.bf16.mxu1 %v1216_v17  ;;  %v180_v46 = vld [vmem:[%s1510_s4 + $0x8] sm:$0xff]  ;;  %v1260_v47 = vld [vmem:[%s1736_s1 + $0x240] ss:$24 sps:$4 sm:$0xff]   ;;  %v1264_v52 = vld [vmem:[%s1736_s1 + $0x21c] ss:$24 sps:$4 sm:$0xff]  }
  0x1c   : > { %v1261_v48 = vld [vmem:[%s1736_s1 + $0x248] ss:$24 sps:$4 sm:$0xff]   ;;  %v182_v49 = vld [vmem:[%s1510_s4 + $0x18] sm:$0xff]  ;;  %v1262_v50 = vld [vmem:[%s1736_s1 + $0x214] ss:$24 sps:$4 sm:$0xff]  }
  0x1d   : > { %808 = vmatpush1.bf16.msra.mxu0 %v1218_v18  ;;  %v1529_v51 = vpack.c.bf16 %v182_v49, %v180_v46  ;;  %v1266_v53 = vld [vmem:[%s1736_s1 + $0x210] ss:$24 sps:$4 sm:$0xff]   ;;  %v1268_v55 = vld [vmem:[%s1736_s1 + $0x1e4] ss:$24 sps:$4 sm:$0xff]   ;;  %v1272_v57 = vld [vmem:[%s1736_s1 + $0x1e0] ss:$24 sps:$4 sm:$0xff]  }
  0x1e   : > { %861 = vmatpush1.bf16.msra.mxu1 %v1219_v19  ;;  %809 = vmatprep.subr.bf16.mxu0 %v1220_v20  ;;  %v1267_v54 = vld [vmem:[%s1736_s1 + $0x218] ss:$24 sps:$4 sm:$0xff]   ;;  %v1270_v56 = vld [vmem:[%s1736_s1 + $0x1ec] ss:$24 sps:$4 sm:$0xff]   ;;  %v1273_v58 = vld [vmem:[%s1736_s1 + $0x1e8] ss:$24 sps:$4 sm:$0xff]  }
  0x1f   : > { %862 = vmatprep.subr.bf16.mxu1 %v1222_v21  ;;  %831 = vmatprep.mubr.bf16.mxu0 %v1529_v51  ;;  %v1274_v59 = vld [vmem:[%s1736_s1 + $0x1b4] ss:$24 sps:$4 sm:$0xff]   ;;  %v1278_v61 = vld [vmem:[%s1736_s1 + $0x1b0] ss:$24 sps:$4 sm:$0xff]   ;;  %v1280_v63 = vld [vmem:[%s1736_s1 + $0x184] ss:$24 sps:$4 sm:$0xff]  }
  0x20   : > { %884 = vmatprep.mubr.bf16.mxu1 %v1529_v51  ;;  %v1276_v60 = vld [vmem:[%s1736_s1 + $0x1bc] ss:$24 sps:$4 sm:$0xff]   ;;  %v1279_v62 = vld [vmem:[%s1736_s1 + $0x1b8] ss:$24 sps:$4 sm:$0xff]   ;;  %v1282_v0 = vld [vmem:[%s1736_s1 + $0x18c] ss:$24 sps:$4 sm:$0xff]  }
  0x21   : > { %810 = vmatpush1.bf16.msra.mxu0 %v1224_v22  ;;  %v1284_v1 = vld [vmem:[%s1736_s1 + $0x180] ss:$24 sps:$4 sm:$0xff]   ;;  %v181_v4 = vld [vmem:[%s1510_s4 + $0x10] sm:$0xff]  ;;  %v1288_v5 = vld [vmem:[%s1736_s1 + $0x164] ss:$24 sps:$4 sm:$0xff]  }
  0x22   : > { %863 = vmatpush1.bf16.msra.mxu1 %v1225_v23  ;;  %811 = vmatprep.subr.bf16.mxu0 %v1226_v24  ;;  %v1285_v2 = vld [vmem:[%s1736_s1 + $0x188] ss:$24 sps:$4 sm:$0xff]   ;;  %v186_v8 = vld [vmem:[%s1510_s4 + $0x38] sm:$0xff]  ;;  %v1291_v10 = vld [vmem:[%s1736_s1 + $0x134] ss:$24 sps:$4 sm:$0xff]  }
  0x23   : > { %864 = vmatprep.subr.bf16.mxu1 %v1228_v25  ;;  %v179_v3 = vld [vmem:[%s1510_s4] sm:$0xff]  ;;  %v184_v7 = vld [vmem:[%s1510_s4 + $0x28] sm:$0xff]  ;;  %v185_v14 = vld [vmem:[%s1510_s4 + $0x30] sm:$0xff] }
  0x24   : > { %v1583_v6 = vpack.c.bf16 %v181_v4, %v179_v3  ;;  %v1286_v9 = vld [vmem:[%s1736_s1 + $0x160] ss:$24 sps:$4 sm:$0xff]   ;;  %v190_v11 = vpack.c.bf16 %v186_v8, %v184_v7  ;;  %v1289_v12 = vld [vmem:[%s1736_s1 + $0x130] ss:$24 sps:$4 sm:$0xff]   ;;  %v1294_v15 = vld [vmem:[%s1736_s1 + $0x104] ss:$24 sps:$4 sm:$0xff]  }
  0x25   : > { %812 = vmatpush1.bf16.msra.mxu0 %v1230_v26  ;;  %v183_v13 = vld [vmem:[%s1510_s4 + $0x20] sm:$0xff]  ;;  %v1297_v18 = vld [vmem:[%s1736_s1 + $0xd4] ss:$24 sps:$4 sm:$0xff]   ;;  %v1295_v19 = vld [vmem:[%s1736_s1 + $0xd0] ss:$24 sps:$4 sm:$0xff]  }
  0x26   : > { %865 = vmatpush1.bf16.msra.mxu1 %v1231_v27  ;;  %813 = vmatprep.subr.bf16.mxu0 %v1232_v28  ;;  %v1603_v16 = vpack.c.bf16 %v185_v14, %v183_v13  ;;  %v1292_v17 = vld [vmem:[%s1736_s1 + $0x100] ss:$24 sps:$4 sm:$0xff]   ;;  %v1300_v20 = vld [vmem:[%s1736_s1 + $0xa4] ss:$24 sps:$4 sm:$0xff]   ;;  %v1303_v22 = vld [vmem:[%s1736_s1 + $0x74] ss:$24 sps:$4 sm:$0xff]  }
  0x27   : > { %866 = vmatprep.subr.bf16.mxu1 %v1234_v29  ;;  %v1298_v21 = vld [vmem:[%s1736_s1 + $0xa0] ss:$24 sps:$4 sm:$0xff]   ;;  %v1301_v23 = vld [vmem:[%s1736_s1 + $0x70] ss:$24 sps:$4 sm:$0xff]   ;;  %v1306_v24 = vld [vmem:[%s1736_s1 + $0x44] ss:$24 sps:$4 sm:$0xff]  }
  0x28   : > { %v1304_v25 = vld [vmem:[%s1736_s1 + $0x40] ss:$24 sps:$4 sm:$0xff]   ;;  %v1309_v26 = vld [vmem:[%s1736_s1 + $0x14] ss:$24 sps:$4 sm:$0xff]   ;;  %v1307_v27 = vld [vmem:[%s1736_s1 + $0x10] ss:$24 sps:$4 sm:$0xff]  }
  0x29   : > { %814 = vmatpush1.bf16.msra.mxu0 %v1236_v30  ;;  %v1312_v28 = vld [vmem:[%s1736_s1 + $0x2e4] ss:$24 sps:$4 sm:$0xff]   ;;  %v1310_v29 = vld [vmem:[%s1736_s1 + $0x2e0] ss:$24 sps:$4 sm:$0xff]   ;;  %v1315_v30 = vld [vmem:[%s1736_s1 + $0x2b4] ss:$24 sps:$4 sm:$0xff]  }
  0x2a   : > { %867 = vmatpush1.bf16.msra.mxu1 %v1237_v31  ;;  %815 = vmatprep.subr.bf16.mxu0 %v1238_v32  ;;  %v1313_v31 = vld [vmem:[%s1736_s1 + $0x2b0] ss:$24 sps:$4 sm:$0xff]   ;;  %v1318_v32 = vld [vmem:[%s1736_s1 + $0x284] ss:$24 sps:$4 sm:$0xff]  }
  0x2b   : > { %868 = vmatprep.subr.bf16.mxu1 %v1240_v33  ;;  %v1316_v33 = vld [vmem:[%s1736_s1 + $0x280] ss:$24 sps:$4 sm:$0xff]  }
  0x2d   : > { %816 = vmatpush2.bf16.msra.mxu0 %v1242_v34  ;;  %v1321_v34 = vld [vmem:[%s1736_s1 + $0x254] ss:$24 sps:$4 sm:$0xff]  }
  0x2e   : > { %869 = vmatpush2.bf16.msra.mxu1 %v1243_v35  ;;  %817 = vmatprep.subr.bf16.mxu0 %v1244_v36  ;;  %v1319_v35 = vld [vmem:[%s1736_s1 + $0x250] ss:$24 sps:$4 sm:$0xff]   ;;  %v1324_v36 = vld [vmem:[%s1736_s1 + $0x224] ss:$24 sps:$4 sm:$0xff]  }
  0x2f   : > { %870 = vmatprep.subr.bf16.mxu1 %v1246_v37  ;;  %v1322_v37 = vld [vmem:[%s1736_s1 + $0x220] ss:$24 sps:$4 sm:$0xff]  }
  0x31   : > { %818 = vmatpush2.bf16.msra.mxu0 %v1248_v38  ;;  %v1327_v38 = vld [vmem:[%s1736_s1 + $0x1f4] ss:$24 sps:$4 sm:$0xff]  }
  0x32   : > { %871 = vmatpush2.bf16.msra.mxu1 %v1249_v39  ;;  %819 = vmatprep.subr.bf16.mxu0 %v1250_v40  ;;  %v1325_v39 = vld [vmem:[%s1736_s1 + $0x1f0] ss:$24 sps:$4 sm:$0xff]   ;;  %v1330_v40 = vld [vmem:[%s1736_s1 + $0x1c4] ss:$24 sps:$4 sm:$0xff]  }
  0x33   : > { %872 = vmatprep.subr.bf16.mxu1 %v1252_v41  ;;  %v1328_v41 = vld [vmem:[%s1736_s1 + $0x1c0] ss:$24 sps:$4 sm:$0xff]  }
  0x35   : > { %820 = vmatpush2.bf16.msra.mxu0 %v1254_v42  ;;  %v1333_v42 = vld [vmem:[%s1736_s1 + $0x194] ss:$24 sps:$4 sm:$0xff]  }
  0x36   : > { %873 = vmatpush2.bf16.msra.mxu1 %v1255_v43  ;;  %821 = vmatprep.subr.bf16.mxu0 %v1256_v44  ;;  %v1331_v43 = vld [vmem:[%s1736_s1 + $0x190] ss:$24 sps:$4 sm:$0xff]   ;;  %v289_v44 = vlaneseq }
  0x37   : > { %874 = vmatprep.subr.bf16.mxu1 %v1258_v45 }
  0x38   : > { %v1691_v45 = vshrl.u32 %v289_v44, 7 }
  0x39   : > { %822 = vmatpush2.bf16.msra.mxu0 %v1260_v47 }
  0x3a   : > { %875 = vmatpush2.bf16.msra.mxu1 %v1261_v48  ;;  %823 = vmatprep.subr.bf16.mxu0 %v1262_v50  ;;  %v291_v46 = vsub.s32 0, %v1691_v45  ;;  %v299_v47 = vsub.s32 2, %v1691_v45  ;;  %v287_v48 = vld [vmem:[%s1737_s2] sm:$0x3f]  ;;  %v295_v49 = vsub.s32 1, %v1691_v45  ;;  %v303_v50 = vsub.s32 3, %v1691_v45 }
  0x3b   : > { %876 = vmatprep.subr.bf16.mxu1 %v1264_v52 }
  0x3c   : > { %v300_v52 = vrot.slane %v287_v48, %v299_v47 }
  0x3d   : > { %824 = vmatpush2.bf16.msra.mxu0 %v1266_v53  ;;  %v296_v53 = vrot.slane %v287_v48, %v295_v49 }
  0x3e   : > { %877 = vmatpush2.bf16.msra.mxu1 %v1267_v54  ;;  %825 = vmatprep.subr.bf16.mxu0 %v1268_v55  ;;  %v304_v54 = vrot.slane %v287_v48, %v303_v50 }
  0x3f   : > { %878 = vmatprep.subr.bf16.mxu1 %v1270_v56 }
  0x41   : > { %826 = vmatpush2.bf16.msra.mxu0 %v1272_v57 }
  0x42   : > { %879 = vmatpush2.bf16.msra.mxu1 %v1273_v58  ;;  %827 = vmatprep.subr.bf16.mxu0 %v1274_v59 }
  0x43   : > { %880 = vmatprep.subr.bf16.mxu1 %v1276_v60 }
  0x45   : > { %828 = vmatpush2.bf16.msra.mxu0 %v1278_v61 }
  0x46   : > { %881 = vmatpush2.bf16.msra.mxu1 %v1279_v62  ;;  %829 = vmatprep.subr.bf16.mxu0 %v1280_v63 }
  0x47   : > { %882 = vmatprep.subr.bf16.mxu1 %v1282_v0 }
  0x49   : > { %830 = vmatpush2.bf16.msra.mxu0 %v1284_v1 }
  0x4a   : > { %883 = vmatpush2.bf16.msra.mxu1 %v1285_v2  ;;  %905 = vmatprep.subr.bf16.mxu0 %v1288_v5 }
  0x4b   : > { %1149 = vmatprep.subr.bf16.mxu1 %v1288_v5 }
  0x4c   : > { %832 = vmatmul.mubr.bf16.vlgmr.msra.gmra.mxu0 %v1583_v6 }
  0x4d   : > { %885 = vmatmul.mubr.bf16.vlgmr.msra.gmra.mxu1 %v1583_v6  ;;  %906 = vmatpush1.bf16.msra.mxu0 %v1286_v9 }
  0x4e   : > { %1165 = vmatpush1.bf16.msra.mxu1 %v1286_v9  ;;  %907 = vmatprep.subr.bf16.mxu0 %v1291_v10 }
  0x4f   : > { %1150 = vmatprep.subr.bf16.mxu1 %v1291_v10  ;;  %841 = vmatprep.mubr.bf16.mxu0 %v190_v11 }
  0x50   : > { %894 = vmatprep.mubr.bf16.mxu1 %v190_v11 }
  0x51   : > { %908 = vmatpush1.bf16.msra.mxu0 %v1289_v12 }
  0x52   : > { %1166 = vmatpush1.bf16.msra.mxu1 %v1289_v12  ;;  %909 = vmatprep.subr.bf16.mxu0 %v1294_v15 }
  0x53   : > { %1151 = vmatprep.subr.bf16.mxu1 %v1294_v15 }
  0x54   : > { %842 = vmatmul.mubr.bf16.gmra.mxu0 %v1603_v16 }
  0x55   : > { %895 = vmatmul.mubr.bf16.gmra.mxu1 %v1603_v16  ;;  %910 = vmatpush1.bf16.msra.mxu0 %v1292_v17 }
  0x56   : > { %1167 = vmatpush1.bf16.msra.mxu1 %v1292_v17  ;;  %911 = vmatprep.subr.bf16.mxu0 %v1297_v18 }
  0x57   : > { %1152 = vmatprep.subr.bf16.mxu1 %v1297_v18  ;;  %937 = vmatprep.mubr.bf16.mxu0 %v1529_v51  ;;  %v292_v51 = vrot.slane %v287_v48, %v291_v46 }
  0x58   : > { %947 = vmatprep.mubr.bf16.mxu1 %v190_v11 }
  0x59   : > { %912 = vmatpush1.bf16.msra.mxu0 %v1295_v19 }
  0x5a   : > { %1168 = vmatpush1.bf16.msra.mxu1 %v1295_v19  ;;  %913 = vmatprep.subr.bf16.mxu0 %v1300_v20 }
  0x5b   : > { %1153 = vmatprep.subr.bf16.mxu1 %v1300_v20 }
  0x5d   : > { %914 = vmatpush1.bf16.msra.mxu0 %v1298_v21 }
  0x5e   : > { %1169 = vmatpush1.bf16.msra.mxu1 %v1298_v21  ;;  %915 = vmatprep.subr.bf16.mxu0 %v1303_v22 }
  0x5f   : > { %1154 = vmatprep.subr.bf16.mxu1 %v1303_v22 }
  0x61   : > { %916 = vmatpush1.bf16.msra.mxu0 %v1301_v23 }
  0x62   : > { %1170 = vmatpush1.bf16.msra.mxu1 %v1301_v23  ;;  %917 = vmatprep.subr.bf16.mxu0 %v1306_v24  ;;  %v307_v23 = vsub.s32 4, %v1691_v45 }
  0x63   : > { %1155 = vmatprep.subr.bf16.mxu1 %v1306_v24  ;;  %v311_v24 = vsub.s32 5, %v1691_v45 }
  0x65   : > { %918 = vmatpush1.bf16.msra.mxu0 %v1304_v25 }
  0x66   : > { %1171 = vmatpush1.bf16.msra.mxu1 %v1304_v25  ;;  %919 = vmatprep.subr.bf16.mxu0 %v1309_v26  ;;  %v308_v25 = vrot.slane %v287_v48, %v307_v23 }
  0x67   : > { %1156 = vmatprep.subr.bf16.mxu1 %v1309_v26  ;;  %v312_v26 = vrot.slane %v287_v48, %v311_v24 }
  0x69   : > { %920 = vmatpush1.bf16.msra.mxu0 %v1307_v27 }
  0x6a   : > { %1172 = vmatpush1.bf16.msra.mxu1 %v1307_v27  ;;  %921 = vmatprep.subr.bf16.mxu0 %v1312_v28 }
  0x6b   : > { %1157 = vmatprep.subr.bf16.mxu1 %v1312_v28 }
  0x6d   : > { %922 = vmatpush2.bf16.msra.mxu0 %v1310_v29 }
  0x6e   : > { %1173 = vmatpush2.bf16.msra.mxu1 %v1310_v29  ;;  %923 = vmatprep.subr.bf16.mxu0 %v1315_v30 }
  0x6f   : > { %1158 = vmatprep.subr.bf16.mxu1 %v1315_v30 }
  0x71   : > { %924 = vmatpush2.bf16.msra.mxu0 %v1313_v31 }
  0x72   : > { %1174 = vmatpush2.bf16.msra.mxu1 %v1313_v31  ;;  %925 = vmatprep.subr.bf16.mxu0 %v1318_v32 }
  0x73   : > { %1159 = vmatprep.subr.bf16.mxu1 %v1318_v32 }
  0x75   : > { %926 = vmatpush2.bf16.msra.mxu0 %v1316_v33 }
  0x76   : > { %1175 = vmatpush2.bf16.msra.mxu1 %v1316_v33  ;;  %927 = vmatprep.subr.bf16.mxu0 %v1321_v34 }
  0x77   : > { %1160 = vmatprep.subr.bf16.mxu1 %v1321_v34 }
  0x79   : > { %928 = vmatpush2.bf16.msra.mxu0 %v1319_v35 }
  0x7a   : > { %1176 = vmatpush2.bf16.msra.mxu1 %v1319_v35  ;;  %929 = vmatprep.subr.bf16.mxu0 %v1324_v36 }
  0x7b   : > { %1161 = vmatprep.subr.bf16.mxu1 %v1324_v36 }
  0x7d   : > { %930 = vmatpush2.bf16.msra.mxu0 %v1322_v37 }
  0x7e   : > { %1177 = vmatpush2.bf16.msra.mxu1 %v1322_v37  ;;  %931 = vmatprep.subr.bf16.mxu0 %v1327_v38 }
  0x7f   : > { %1162 = vmatprep.subr.bf16.mxu1 %v1327_v38 }
  0x81   : > { %932 = vmatpush2.bf16.msra.mxu0 %v1325_v39 }
  0x82   : > { %1178 = vmatpush2.bf16.msra.mxu1 %v1325_v39  ;;  %933 = vmatprep.subr.bf16.mxu0 %v1330_v40 }
  0x83   : > { %1163 = vmatprep.subr.bf16.mxu1 %v1330_v40 }
  0x85   : > { %934 = vmatpush2.bf16.msra.mxu0 %v1328_v41 }
  0x86   : > { %1179 = vmatpush2.bf16.msra.mxu1 %v1328_v41  ;;  %935 = vmatprep.subr.bf16.mxu0 %v1333_v42 }
  0x87   : > { %1164 = vmatprep.subr.bf16.mxu1 %v1333_v42 }
  0x89   : > { %936 = vmatpush2.bf16.msra.mxu0 %v1331_v43 }
  0x8a   : > { %1180 = vmatpush2.bf16.msra.mxu1 %v1331_v43 }
  0x8c   : > { %938 = vmatmul.mubr.bf16.vlgmr.msra.gmra.mxu0 %v1583_v6 }
  0x8d   : > { %948 = vmatmul.mubr.bf16.vlgmr.msra.gmra.mxu1 %v1603_v16 }
 0x10c   : > { %v833_v55 = vpop.f32.mrf.mxu0 }
 0x10d   : > { %v886_v56 = vpop.f32.mrf.mxu1  ;;  %v834_v57 = vadd.f32 %v833_v55, %v292_v51 }
 0x10e   : > { %v887_v58 = vadd.f32 %v886_v56, %v300_v52  ;;  %v835_v59 = vpop.f32.mrf.mxu0 }
 0x10f   : > { %v888_v60 = vpop.f32.mrf.mxu1  ;;  %958 = vst [vmem:[%s1704_s16] sm:$0xff] %v834_v57  ;;  %v836_v61 = vadd.f32 %v835_v59, %v296_v53 }
 0x110   : > { %960 = vst [vmem:[%s1704_s16 + $0x10] sm:$0xff] %v887_v58  ;;  %v889_v62 = vadd.f32 %v888_v60, %v304_v54  ;;  %v837_v63 = vpop.f32.mrf.mxu0 }
 0x111   : > { %v890_v0 = vpop.f32.mrf.mxu1  ;;  %959 = vst [vmem:[%s1704_s16 + $0x8] sm:$0xff] %v836_v61  ;;  %v838_v1 = vadd.f32 %v837_v63, %v292_v51 }
 0x112   : > { %961 = vst [vmem:[%s1704_s16 + $0x18] sm:$0xff] %v889_v62  ;;  %v891_v2 = vadd.f32 %v890_v0, %v300_v52  ;;  %v839_v3 = vpop.f32.mrf.mxu0 }
 0x113   : > { %v892_v4 = vpop.f32.mrf.mxu1  ;;  %964 = vst [vmem:[%s1704_s16 + $0x30] sm:$0xff] %v838_v1  ;;  %v840_v5 = vadd.f32 %v839_v3, %v296_v53 }
 0x114   : > { %966 = vst [vmem:[%s1704_s16 + $0x40] sm:$0xff] %v891_v2  ;;  %v893_v6 = vadd.f32 %v892_v4, %v304_v54  ;;  %v843_v7 = vpop.f32.mrf.mxu0 }
 0x115   : > { %v896_v8 = vpop.f32.mrf.mxu1  ;;  %965 = vst [vmem:[%s1704_s16 + $0x38] sm:$0xff] %v840_v5  ;;  %v844_v9 = vadd.f32 %v843_v7, %v292_v51 }
 0x116   : > { %967 = vst [vmem:[%s1704_s16 + $0x48] sm:$0xff] %v893_v6  ;;  %v897_v10 = vadd.f32 %v896_v8, %v300_v52  ;;  %v845_v11 = vpop.f32.mrf.mxu0 }
 0x117   : > { %v898_v12 = vpop.f32.mrf.mxu1  ;;  %970 = vst [vmem:[%s1704_s16 + $0x60] sm:$0xff] %v844_v9  ;;  %v846_v13 = vadd.f32 %v845_v11, %v296_v53 }
 0x118   : > { %972 = vst [vmem:[%s1704_s16 + $0x70] sm:$0xff] %v897_v10  ;;  %v899_v14 = vadd.f32 %v898_v12, %v304_v54  ;;  %v847_v15 = vpop.f32.mrf.mxu0 }
 0x119   : > { %v900_v16 = vpop.f32.mrf.mxu1  ;;  %971 = vst [vmem:[%s1704_s16 + $0x68] sm:$0xff] %v846_v13  ;;  %v848_v17 = vadd.f32 %v847_v15, %v292_v51 }
 0x11a   : > { %973 = vst [vmem:[%s1704_s16 + $0x78] sm:$0xff] %v899_v14  ;;  %v901_v18 = vadd.f32 %v900_v16, %v300_v52  ;;  %v849_v19 = vpop.f32.mrf.mxu0 }
 0x11b   : > { %v902_v20 = vpop.f32.mrf.mxu1  ;;  %976 = vst [vmem:[%s1704_s16 + $0x90] sm:$0xff] %v848_v17  ;;  %v850_v21 = vadd.f32 %v849_v19, %v296_v53 }
 0x11c   : > { %978 = vst [vmem:[%s1704_s16 + $0xa0] sm:$0xff] %v901_v18  ;;  %v903_v22 = vadd.f32 %v902_v20, %v304_v54 }
 0x11d   : > { %977 = vst [vmem:[%s1704_s16 + $0x98] sm:$0xff] %v850_v21 }
 0x11e   : > { %979 = vst [vmem:[%s1704_s16 + $0xa8] sm:$0xff] %v903_v22 }
 0x14c   : > { %v939_v27 = vpop.f32.mrf.mxu0 }
 0x14d   : > { %v949_v28 = vpop.f32.mrf.mxu1  ;;  %v940_v29 = vadd.f32 %v939_v27, %v308_v25 }
 0x14e   : > { %v941_v30 = vpop.f32.mrf.mxu0  ;;  %v950_v36 = vadd.f32 %v949_v28, %v308_v25 }
 0x14f   : > { %v951_v31 = vpop.f32.mrf.mxu1  ;;  %962 = vst [vmem:[%s1704_s16 + $0x20] sm:$0xff] %v940_v29  ;;  %v942_v32 = vadd.f32 %v941_v30, %v312_v26 }
 0x150   : > { %v943_v33 = vpop.f32.mrf.mxu0  ;;  %v952_v41 = vadd.f32 %v951_v31, %v312_v26  ;;  %974 = vst [vmem:[%s1704_s16 + $0x80] sm:$0xff] %v950_v36 }
 0x151   : > { %v953_v34 = vpop.f32.mrf.mxu1  ;;  %963 = vst [vmem:[%s1704_s16 + $0x28] sm:$0xff] %v942_v32  ;;  %v944_v35 = vadd.f32 %v943_v33, %v308_v25 }
 0x152   : > { %v945_v37 = vpop.f32.mrf.mxu0  ;;  %v954_v39 = vadd.f32 %v953_v34, %v308_v25  ;;  %975 = vst [vmem:[%s1704_s16 + $0x88] sm:$0xff] %v952_v41 }
 0x153   : > { %v955_v38 = vpop.f32.mrf.mxu1  ;;  %968 = vst [vmem:[%s1704_s16 + $0x50] sm:$0xff] %v944_v35  ;;  %v946_v40 = vadd.f32 %v945_v37, %v312_v26 }
 0x154   : > { %980 = vst [vmem:[%s1704_s16 + $0xb0] sm:$0xff] %v954_v39  ;;  %v956_v42 = vadd.f32 %v955_v38, %v312_v26 }
 0x155   : > { %969 = vst [vmem:[%s1704_s16 + $0x58] sm:$0xff] %v946_v40 }
 0x156   : > { %981 = vst [vmem:[%s1704_s16 + $0xb8] sm:$0xff] %v956_v42 }
 0x157 PF: > { %s13_s12 = sadd.s32 1, %s1340_s12  }
 0x158   : > { %p10_p4 = scmp.ge.s32.totalorder %s13_s12, 4  }
 0x15a   :  { %12 = sbr.rel (!%p10_p4) target bundleno = 1 (0x1), region = 62 }

// kernel: decoder_forward.13
= control target key start
LH: loop header
LB: loop body
LE: loop exit
PB: predicated region body
PF: predicated region fallthrough
CT: control target
= control target key end

     0   :  { %s980_s15 = smov 0   ;;  %s1185_s0 = inlined_call_operand.vmem [shape: f32[64,256], index: 0, kind: input, shape index: {}]   ;;  %s1186_s1 = inlined_call_operand.vmem [shape: f32[64,256], index: 1, kind: input, shape index: {}]   ;;  %s1187_s2 = inlined_call_operand.vmem [shape: bf16[256,384], index: 2, kind: input, shape index: {}]   ;;  %s1188_s3 = inlined_call_operand.vmem [shape: f32[1,384], index: 3, kind: input, shape index: {}]   ;;  %s1189_s4 = inlined_call_operand.vmem [shape: f32[64,384], index: 4, kind: output, shape index: {}]  }
   0x1 LB: > { %s781_s16 = sadd.s32 4294967295, %s953_s15   ;;  %p785_p0 = scmp.ge.s32.totalorder %s953_s15, 1  ;;  %s953_s15 = sphi %s980_s15, %s14_s15  }
   0x2   : > { %p176_p1 = scmp.lt.s32.totalorder %s953_s15, 3 }
   0x4   : > { %p177_p2 = pnand %p785_p0, %p176_p1 }
   0x5   : > { %s786_s21 = sshll.u32 (!%p177_p2), %s781_s16, 2 }
   0x6   : > { %180 = sbr.rel (%p177_p2) target bundleno = 286 (0x11e), region = 36  ;;  %p211_p3 = scmp.lt.s32.totalorder (!%p177_p2), %s786_s21, 7 }
   0xb   : > { %v883_v0 = vld [vmem:[%s1187_s2 + $0xac] ss:$12 sps:$4 sm:$0xff]   ;;  %v885_v1 = vld [vmem:[%s1187_s2 + $0xa8] ss:$12 sps:$4 sm:$0xff]   ;;  %v888_v3 = vld [vmem:[%s1187_s2 + $0x90] ss:$12 sps:$4 sm:$0xff]  }
   0xc   : > { %597 = vmatprep.subr.bf16.mxu0 %v883_v0  ;;  %v886_v2 = vld [vmem:[%s1187_s2 + $0x94] ss:$12 sps:$4 sm:$0xff]   ;;  %v889_v4 = vld [vmem:[%s1187_s2 + $0x7c] ss:$12 sps:$4 sm:$0xff]   ;;  %v891_v5 = vld [vmem:[%s1187_s2 + $0x78] ss:$12 sps:$4 sm:$0xff]  }
   0xd   : > { %598 = vmatpush1.bf16.msra.mxu0 %v885_v1  ;;  %v892_v6 = vld [vmem:[%s1187_s2 + $0x64] ss:$12 sps:$4 sm:$0xff]   ;;  %v894_v8 = vld [vmem:[%s1187_s2 + $0x60] ss:$12 sps:$4 sm:$0xff]   ;;  %v897_v13 = vld [vmem:[%s1187_s2 + $0x48] ss:$12 sps:$4 sm:$0xff]  }
   0xe   : > { %599 = vmatprep.subr.bf16.mxu0 %v886_v2  ;;  %v903_v7 = vld [vmem:[%s1187_s2 + $0x170] ss:$12 sps:$4 sm:$0xff]   ;;  %v895_v10 = vld [vmem:[%s1187_s2 + $0x4c] ss:$12 sps:$4 sm:$0xff]   ;;  %v898_v14 = vld [vmem:[%s1187_s2 + $0x34] ss:$12 sps:$4 sm:$0xff]  }
   0xf   : > { %846 = vmatprep.subr.bf16.mxu1 %v903_v7  ;;  %v905_v9 = vld [vmem:[%s1187_s2 + $0xb0] ss:$12 sps:$4 sm:$0xff]   ;;  %v908_v11 = vld [vmem:[%s1187_s2 + $0x158] ss:$12 sps:$4 sm:$0xff]   ;;  %v913_v15 = vld [vmem:[%s1187_s2 + $0x140] ss:$12 sps:$4 sm:$0xff]  }
  0x10   : > { %847 = vmatpush3.bf16.msra.mxu1 %v905_v9  ;;  %v910_v12 = vld [vmem:[%s1187_s2 + $0x98] ss:$12 sps:$4 sm:$0xff]   ;;  %v915_v16 = vld [vmem:[%s1187_s2 + $0x80] ss:$12 sps:$4 sm:$0xff]   ;;  %v900_v17 = vld [vmem:[%s1187_s2 + $0x30] ss:$12 sps:$4 sm:$0xff]  }
  0x11   : > { %600 = vmatpush1.bf16.msra.mxu0 %v888_v3  ;;  %848 = vmatprep.subr.bf16.mxu1 %v908_v11  ;;  %v918_v18 = vld [vmem:[%s1187_s2 + $0x128] ss:$12 sps:$4 sm:$0xff]   ;;  %v904_v21 = vld [vmem:[%s1187_s2 + $0x18] ss:$12 sps:$4 sm:$0xff]   ;;  %v923_v22 = vld [vmem:[%s1187_s2 + $0x110] ss:$12 sps:$4 sm:$0xff]  }
  0x12   : > { %601 = vmatprep.subr.bf16.mxu0 %v889_v4  ;;  %v901_v19 = vld [vmem:[%s1187_s2 + $0x1c] ss:$12 sps:$4 sm:$0xff]   ;;  %v906_v23 = vld [vmem:[%s1187_s2 + $0x4] ss:$12 sps:$4 sm:$0xff]   ;;  %s1191_s21 = smov (!%p211_p3, %s786_s21), 7 }
  0x13   : > { %v920_v20 = vld [vmem:[%s1187_s2 + $0x68] ss:$12 sps:$4 sm:$0xff]   ;;  %v925_v24 = vld [vmem:[%s1187_s2 + $0x50] ss:$12 sps:$4 sm:$0xff]   ;;  %v928_v25 = vld [vmem:[%s1187_s2 + $0xf8] ss:$12 sps:$4 sm:$0xff]  }
  0x14   : > { %849 = vmatpush3.bf16.msra.mxu1 %v910_v12  ;;  %v909_v26 = vld [vmem:[%s1187_s2] ss:$12 sps:$4 sm:$0xff]   ;;  %s844_s26 = sshll.u32 %s1191_s21, 4  ;;  %v930_v28 = vld [vmem:[%s1187_s2 + $0x38] ss:$12 sps:$4 sm:$0xff]   ;;  %v326_v12 = vlaneseq  ;;  %s874_s27 = smul.u32 24, %s1191_s21 }
  0x15   : > { %602 = vmatpush1.bf16.msra.mxu0 %v891_v5  ;;  %850 = vmatprep.subr.bf16.mxu1 %v913_v15  ;;  %v911_v27 = vld [vmem:[%s1187_s2 + $0x16c] ss:$12 sps:$4 sm:$0xff]   ;;  %v914_v30 = vld [vmem:[%s1187_s2 + $0x168] ss:$12 sps:$4 sm:$0xff]   ;;  %s1087_s8 = scalar_lea.vmem %s1185_s0, %s844_s26  ;;  %s1095_s13 = scalar_lea.vmem %s1186_s1, %s844_s26  ;;  %v919_v32 = vld [vmem:[%s1187_s2 + $0x150] ss:$12 sps:$4 sm:$0xff]  }
  0x16   : > { %603 = vmatprep.subr.bf16.mxu0 %v892_v6  ;;  %v933_v29 = vld [vmem:[%s1187_s2 + $0xe0] ss:$12 sps:$4 sm:$0xff]   ;;  %v921_v34 = vld [vmem:[%s1187_s2 + $0x13c] ss:$12 sps:$4 sm:$0xff]   ;;  %v234_v44 = vld [vmem:[%s1087_s8 + $0x10] sm:$0xff]  ;;  %s1168_s16 = scalar_lea.vmem %s1189_s4, %s874_s27 }
  0x17   : > { %v916_v31 = vld [vmem:[%s1187_s2 + $0x154] ss:$12 sps:$4 sm:$0xff]   ;;  %v233_v36 = vld [vmem:[%s1087_s8 + $0x8] sm:$0xff]  ;;  %v235_v37 = vld [vmem:[%s1087_s8 + $0x18] sm:$0xff] }
  0x18   : > { %851 = vmatpush3.bf16.msra.mxu1 %v915_v16  ;;  %v935_v33 = vld [vmem:[%s1187_s2 + $0x20] ss:$12 sps:$4 sm:$0xff]   ;;  %v938_v35 = vld [vmem:[%s1187_s2 + $0xc8] ss:$12 sps:$4 sm:$0xff]   ;;  %v243_v39 = vld [vmem:[%s1095_s13 + $0x18] sm:$0xff] }
  0x19   : > { %604 = vmatpush1.bf16.msra.mxu0 %v894_v8  ;;  %852 = vmatprep.subr.bf16.mxu1 %v918_v18  ;;  %v241_v38 = vld [vmem:[%s1095_s13 + $0x8] sm:$0xff]  ;;  %v251_v42 = vadd.f32 %v243_v39, %v235_v37  ;;  %v232_v43 = vld [vmem:[%s1087_s8] sm:$0xff]  ;;  %v242_v47 = vld [vmem:[%s1095_s13 + $0x10] sm:$0xff] }
  0x1a   : > { %605 = vmatprep.subr.bf16.mxu0 %v895_v10  ;;  %v940_v40 = vld [vmem:[%s1187_s2 + $0x8] ss:$12 sps:$4 sm:$0xff]   ;;  %v249_v41 = vadd.f32 %v241_v38, %v233_v36  ;;  %v240_v45 = vld [vmem:[%s1095_s13] sm:$0xff]  ;;  %v250_v51 = vadd.f32 %v242_v47, %v234_v44  ;;  %v239_v53 = vld [vmem:[%s1087_s8 + $0x38] sm:$0xff] }
  0x1b   : > { %v248_v48 = vadd.f32 %v240_v45, %v232_v43  ;;  %v924_v49 = vld [vmem:[%s1187_s2 + $0x138] ss:$12 sps:$4 sm:$0xff]   ;;  %v237_v52 = vld [vmem:[%s1087_s8 + $0x28] sm:$0xff]  ;;  %v238_v59 = vld [vmem:[%s1087_s8 + $0x30] sm:$0xff] }
  0x1c   : > { %853 = vmatpush3.bf16.msra.mxu1 %v920_v20  ;;  %v257_v46 = vpack.c.bf16 %v251_v42, %v249_v41  ;;  %v926_v50 = vld [vmem:[%s1187_s2 + $0x124] ss:$12 sps:$4 sm:$0xff]   ;;  %v245_v54 = vld [vmem:[%s1095_s13 + $0x28] sm:$0xff]  ;;  %v247_v56 = vld [vmem:[%s1095_s13 + $0x38] sm:$0xff] }
  0x1d   : > { %606 = vmatpush1.bf16.msra.mxu0 %v897_v13  ;;  %854 = vmatprep.subr.bf16.mxu1 %v923_v22  ;;  %v256_v55 = vpack.c.bf16 %v250_v51, %v248_v48  ;;  %v253_v57 = vadd.f32 %v245_v54, %v237_v52  ;;  %v236_v58 = vld [vmem:[%s1087_s8 + $0x20] sm:$0xff]  ;;  %v255_v60 = vadd.f32 %v247_v56, %v239_v53  ;;  %v246_v62 = vld [vmem:[%s1095_s13 + $0x30] sm:$0xff]  ;;  %v931_v0 = vld [vmem:[%s1187_s2 + $0x10c] ss:$12 sps:$4 sm:$0xff]   ;;  %v327_v13 = vshrl.u32 %v326_v12, 7 }
  0x1e   : > { %607 = vmatprep.subr.bf16.mxu0 %v898_v14  ;;  %682 = vmatprep.mubr.bf16.mxu1 %v257_v46  ;;  %v244_v61 = vld [vmem:[%s1095_s13 + $0x20] sm:$0xff]  ;;  %v254_v3 = vadd.f32 %v246_v62, %v238_v59  ;;  %v934_v4 = vld [vmem:[%s1187_s2 + $0x108] ss:$12 sps:$4 sm:$0xff]   ;;  %v939_v7 = vld [vmem:[%s1187_s2 + $0xf0] ss:$12 sps:$4 sm:$0xff]  }
  0x1f   : > { %629 = vmatprep.mubr.bf16.mxu0 %v257_v46  ;;  %v929_v63 = vld [vmem:[%s1187_s2 + $0x120] ss:$12 sps:$4 sm:$0xff]   ;;  %v259_v1 = vpack.c.bf16 %v255_v60, %v253_v57  ;;  %v252_v2 = vadd.f32 %v244_v61, %v236_v58  ;;  %v941_v8 = vld [vmem:[%s1187_s2 + $0xdc] ss:$12 sps:$4 sm:$0xff]   ;;  %v943_v9 = vld [vmem:[%s1187_s2 + $0xd8] ss:$12 sps:$4 sm:$0xff]  }
  0x20   : > { %855 = vmatpush3.bf16.msra.mxu1 %v925_v24  ;;  %v936_v5 = vld [vmem:[%s1187_s2 + $0xf4] ss:$12 sps:$4 sm:$0xff]   ;;  %v944_v10 = vld [vmem:[%s1187_s2 + $0xc4] ss:$12 sps:$4 sm:$0xff]   ;;  %v336_v14 = vsub.s32 2, %v327_v13 }
  0x21   : > { %608 = vmatpush1.bf16.msra.mxu0 %v900_v17  ;;  %856 = vmatprep.subr.bf16.mxu1 %v928_v25  ;;  %v258_v6 = vpack.c.bf16 %v254_v3, %v252_v2  ;;  %v946_v11 = vld [vmem:[%s1187_s2 + $0xc0] ss:$12 sps:$4 sm:$0xff]  }
  0x22   : > { %609 = vmatprep.subr.bf16.mxu0 %v901_v19  ;;  %v324_v15 = vld [vmem:[%s1188_s3] sm:$0x7] }
  0x23   : > { %v337_v17 = vrot.slane %v324_v15, %v336_v14 }
  0x24   : > { %857 = vmatpush3.bf16.msra.mxu1 %v930_v28 }
  0x25   : > { %610 = vmatpush1.bf16.msra.mxu0 %v904_v21  ;;  %858 = vmatprep.subr.bf16.mxu1 %v933_v29 }
  0x26   : > { %611 = vmatprep.subr.bf16.mxu0 %v906_v23 }
  0x28   : > { %859 = vmatpush3.bf16.msra.mxu1 %v935_v33  ;;  %v332_v33 = vsub.s32 1, %v327_v13 }
  0x29   : > { %612 = vmatpush1.bf16.msra.mxu0 %v909_v26  ;;  %860 = vmatprep.subr.bf16.mxu1 %v938_v35 }
  0x2a   : > { %613 = vmatprep.subr.bf16.mxu0 %v911_v27  ;;  %v333_v36 = vrot.slane %v324_v15, %v332_v33 }
  0x2c   : > { %861 = vmatpush3.bf16.msra.mxu1 %v940_v40 }
  0x2d   : > { %614 = vmatpush2.bf16.msra.mxu0 %v914_v30 }
  0x2e   : > { %615 = vmatprep.subr.bf16.mxu0 %v916_v31  ;;  %v328_v31 = vsub.s32 0, %v327_v13 }
  0x2f   : > { %683 = vmatmul.mubr.bf16.vlgmr.msra.gmra.mxu1 %v256_v55 }
  0x30   : > { %690 = vmatprep.mubr.bf16.mxu1 %v259_v1  ;;  %v329_v35 = vrot.slane %v324_v15, %v328_v31 }
  0x31   : > { %616 = vmatpush2.bf16.msra.mxu0 %v919_v32 }
  0x32   : > { %617 = vmatprep.subr.bf16.mxu0 %v921_v34 }
  0x35   : > { %618 = vmatpush2.bf16.msra.mxu0 %v924_v49 }
  0x36   : > { %619 = vmatprep.subr.bf16.mxu0 %v926_v50 }
  0x37   : > { %691 = vmatmul.mubr.bf16.gmra.mxu1 %v258_v6 }
  0x39   : > { %620 = vmatpush2.bf16.msra.mxu0 %v929_v63 }
  0x3a   : > { %621 = vmatprep.subr.bf16.mxu0 %v931_v0 }
  0x3d   : > { %622 = vmatpush2.bf16.msra.mxu0 %v934_v4 }
  0x3e   : > { %623 = vmatprep.subr.bf16.mxu0 %v936_v5 }
  0x41   : > { %624 = vmatpush2.bf16.msra.mxu0 %v939_v7 }
  0x42   : > { %625 = vmatprep.subr.bf16.mxu0 %v941_v8 }
  0x45   : > { %626 = vmatpush2.bf16.msra.mxu0 %v943_v9 }
  0x46   : > { %627 = vmatprep.subr.bf16.mxu0 %v944_v10 }
  0x49   : > { %628 = vmatpush2.bf16.msra.mxu0 %v946_v11 }
  0x4c   : > { %630 = vmatmul.mubr.bf16.vlgmr.msra.gmra.mxu0 %v256_v55 }
  0x4d   : > { %639 = vmatprep.mubr.bf16.mxu0 %v259_v1 }
  0x54   : > { %640 = vmatmul.mubr.bf16.gmra.mxu0 %v258_v6 }
  0xef   : > { %v862_v16 = vpop.f32.mrf.mxu1 }
  0xf1   : > { %v863_v18 = vpop.f32.mrf.mxu1 }
  0xf2   : > { %v864_v19 = vadd.f32 %v863_v18, %v862_v16 }
  0xf3   : > { %v865_v20 = vpop.f32.mrf.mxu1 }
  0xf4   : > { %v685_v21 = vadd.f32 %v864_v19, %v337_v17 }
  0xf5   : > { %v866_v22 = vpop.f32.mrf.mxu1 }
  0xf6   : > { %701 = vst [vmem:[%s1168_s16 + $0x10] sm:$0xff] %v685_v21  ;;  %v867_v23 = vadd.f32 %v866_v22, %v865_v20 }
  0xf7   : > { %v868_v24 = vpop.f32.mrf.mxu1 }
  0xf8   : > { %v688_v25 = vadd.f32 %v867_v23, %v337_v17 }
  0xf9   : > { %v869_v26 = vpop.f32.mrf.mxu1 }
  0xfa   : > { %704 = vst [vmem:[%s1168_s16 + $0x28] sm:$0xff] %v688_v25  ;;  %v870_v27 = vadd.f32 %v869_v26, %v868_v24 }
  0xfb   : > { %v871_v28 = vpop.f32.mrf.mxu1 }
  0xfc   : > { %v693_v29 = vadd.f32 %v870_v27, %v337_v17 }
  0xfd   : > { %v872_v30 = vpop.f32.mrf.mxu1 }
  0xfe   : > { %707 = vst [vmem:[%s1168_s16 + $0x40] sm:$0xff] %v693_v29  ;;  %v873_v32 = vadd.f32 %v872_v30, %v871_v28 }
 0x100   : > { %v696_v34 = vadd.f32 %v873_v32, %v337_v17 }
 0x102   : > { %710 = vst [vmem:[%s1168_s16 + $0x58] sm:$0xff] %v696_v34 }
 0x10c   : > { %v631_v37 = vpop.f32.mrf.mxu0 }
 0x10d   : > { %v632_v38 = vadd.f32 %v631_v37, %v329_v35 }
 0x10e   : > { %v633_v39 = vpop.f32.mrf.mxu0 }
 0x10f   : > { %699 = vst [vmem:[%s1168_s16] sm:$0xff] %v632_v38  ;;  %v634_v40 = vadd.f32 %v633_v39, %v333_v36 }
 0x110   : > { %v635_v41 = vpop.f32.mrf.mxu0 }
 0x111   : > { %700 = vst [vmem:[%s1168_s16 + $0x8] sm:$0xff] %v634_v40  ;;  %v636_v42 = vadd.f32 %v635_v41, %v329_v35 }
 0x112   : > { %v637_v43 = vpop.f32.mrf.mxu0 }
 0x113   : > { %702 = vst [vmem:[%s1168_s16 + $0x18] sm:$0xff] %v636_v42  ;;  %v638_v44 = vadd.f32 %v637_v43, %v333_v36 }
 0x114   : > { %v641_v45 = vpop.f32.mrf.mxu0 }
 0x115   : > { %703 = vst [vmem:[%s1168_s16 + $0x20] sm:$0xff] %v638_v44  ;;  %v642_v46 = vadd.f32 %v641_v45, %v329_v35 }
 0x116   : > { %v643_v47 = vpop.f32.mrf.mxu0 }
 0x117   : > { %705 = vst [vmem:[%s1168_s16 + $0x30] sm:$0xff] %v642_v46  ;;  %v644_v48 = vadd.f32 %v643_v47, %v333_v36 }
 0x118   : > { %v645_v49 = vpop.f32.mrf.mxu0 }
 0x119   : > { %706 = vst [vmem:[%s1168_s16 + $0x38] sm:$0xff] %v644_v48  ;;  %v646_v50 = vadd.f32 %v645_v49, %v329_v35 }
 0x11a   : > { %v647_v51 = vpop.f32.mrf.mxu0 }
 0x11b   : > { %708 = vst [vmem:[%s1168_s16 + $0x48] sm:$0xff] %v646_v50  ;;  %v648_v52 = vadd.f32 %v647_v51, %v333_v36 }
 0x11d   : > { %709 = vst [vmem:[%s1168_s16 + $0x50] sm:$0xff] %v648_v52 }
 0x11e PF: > { %s14_s15 = sadd.s32 1, %s953_s15  }
 0x11f   : > { %p11_p4 = scmp.ge.s32.totalorder %s14_s15, 4  }
 0x121   :  { %13 = sbr.rel (!%p11_p4) target bundleno = 1 (0x1), region = 69 }

// kernel: decoder_forward.12
= control target key start
LH: loop header
LB: loop body
LE: loop exit
PB: predicated region body
PF: predicated region fallthrough
CT: control target
= control target key end

     0   :  { %s1069_s12 = smov 0   ;;  %s1458_s0 = inlined_call_operand.vmem [shape: f32[688,256], index: 0, kind: input, shape index: {}]   ;;  %s1459_s1 = inlined_call_operand.vmem [shape: bf16[256,256], index: 1, kind: input, shape index: {}]   ;;  %s1460_s2 = inlined_call_operand.vmem [shape: f32[1,256], index: 2, kind: input, shape index: {}]   ;;  %s1461_s3 = inlined_call_operand.vmem [shape: f32[688,256], index: 3, kind: output, shape index: {}]  }
   0x1 LB: > { %s908_s13 = sadd.s32 4294967295, %s1047_s12   ;;  %p912_p0 = scmp.ge.s32.totalorder %s1047_s12, 1  ;;  %s1047_s12 = sphi %s1069_s12, %s13_s12  }
   0x2   : > { %p139_p1 = scmp.lt.s32.totalorder %s1047_s12, 3 }
   0x4   : > { %p140_p2 = pnand %p912_p0, %p139_p1 }
   0x5   : > { %s165_s22 = smul.u32 (!%p140_p2), 43, %s908_s13 }
   0x6   : > { %143 = sbr.rel (%p140_p2) target bundleno = 358 (0x166), region = 32 }
   0x7   : > { %p166_p3 = scmp.lt.s32.totalorder (!%p140_p2), %s165_s22, 85 }
   0xb   : > { %v993_v0 = vld [vmem:[%s1459_s1 + $0x74] ss:$8 sps:$4 sm:$0xff]   ;;  %v995_v1 = vld [vmem:[%s1459_s1 + $0x70] ss:$8 sps:$4 sm:$0xff]   ;;  %v996_v2 = vld [vmem:[%s1459_s1 + $0x64] ss:$8 sps:$4 sm:$0xff]  }
   0xc   : > { %513 = vmatprep.subr.bf16.mxu0 %v993_v0  ;;  %953 = vmatprep.subr.bf16.mxu1 %v993_v0  ;;  %v998_v3 = vld [vmem:[%s1459_s1 + $0x60] ss:$8 sps:$4 sm:$0xff]   ;;  %v999_v4 = vld [vmem:[%s1459_s1 + $0x54] ss:$8 sps:$4 sm:$0xff]   ;;  %v1001_v5 = vld [vmem:[%s1459_s1 + $0x50] ss:$8 sps:$4 sm:$0xff]  }
   0xd   : > { %514 = vmatpush1.bf16.msra.mxu0 %v995_v1  ;;  %969 = vmatpush1.bf16.msra.mxu1 %v995_v1  ;;  %v1002_v6 = vld [vmem:[%s1459_s1 + $0x44] ss:$8 sps:$4 sm:$0xff]   ;;  %v1004_v7 = vld [vmem:[%s1459_s1 + $0x40] ss:$8 sps:$4 sm:$0xff]   ;;  %s1463_s22 = smov (!%p166_p3, %s165_s22), 85 }
   0xe   : > { %515 = vmatprep.subr.bf16.mxu0 %v996_v2  ;;  %954 = vmatprep.subr.bf16.mxu1 %v996_v2  ;;  %v1005_v8 = vld [vmem:[%s1459_s1 + $0x34] ss:$8 sps:$4 sm:$0xff]   ;;  %v1007_v9 = vld [vmem:[%s1459_s1 + $0x30] ss:$8 sps:$4 sm:$0xff]   ;;  %s951_s8 = sshll.u32 %s1463_s22, 4 }
   0xf   : > { %v1008_v10 = vld [vmem:[%s1459_s1 + $0x24] ss:$8 sps:$4 sm:$0xff]   ;;  %s1118_s14 = scalar_lea.vmem %s1458_s0, %s951_s8  ;;  %v1010_v11 = vld [vmem:[%s1459_s1 + $0x20] ss:$8 sps:$4 sm:$0xff]   ;;  %v1011_v12 = vld [vmem:[%s1459_s1 + $0x14] ss:$8 sps:$4 sm:$0xff]  }
  0x10   : > { %v180_v13 = vld [vmem:[%s1118_s14 + $0x8] sm:$0xff]  ;;  %v182_v14 = vld [vmem:[%s1118_s14 + $0x18] sm:$0xff]  ;;  %v179_v38 = vld [vmem:[%s1118_s14] sm:$0xff] }
  0x11   : > { %516 = vmatpush1.bf16.msra.mxu0 %v998_v3  ;;  %970 = vmatpush1.bf16.msra.mxu1 %v998_v3  ;;  %v266_v15 = vpack.c.bf16 %v182_v14, %v180_v13  ;;  %v224_v16 = vld [vmem:[%s1118_s14 + $0x168] sm:$0xff]  ;;  %v226_v17 = vld [vmem:[%s1118_s14 + $0x178] sm:$0xff]  ;;  %v181_v39 = vld [vmem:[%s1118_s14 + $0x10] sm:$0xff] }
  0x12   : > { %517 = vmatprep.subr.bf16.mxu0 %v999_v4  ;;  %955 = vmatprep.subr.bf16.mxu1 %v999_v4  ;;  %v1013_v18 = vld [vmem:[%s1459_s1 + $0x10] ss:$8 sps:$4 sm:$0xff]   ;;  %v288_v19 = vpack.c.bf16 %v226_v17, %v224_v16  ;;  %v1014_v20 = vld [vmem:[%s1459_s1 + $0x4] ss:$8 sps:$4 sm:$0xff]   ;;  %v1016_v21 = vld [vmem:[%s1459_s1] ss:$8 sps:$4 sm:$0xff]   ;;  %v265_v46 = vpack.c.bf16 %v181_v39, %v179_v38 }
  0x13   : > { %545 = vmatprep.mubr.bf16.mxu0 %v266_v15  ;;  %v1017_v22 = vld [vmem:[%s1459_s1 + $0xf4] ss:$8 sps:$4 sm:$0xff]   ;;  %v1019_v23 = vld [vmem:[%s1459_s1 + $0xf0] ss:$8 sps:$4 sm:$0xff]   ;;  %v1020_v24 = vld [vmem:[%s1459_s1 + $0xe4] ss:$8 sps:$4 sm:$0xff]  }
  0x14   : > { %655 = vmatprep.mubr.bf16.mxu1 %v288_v19  ;;  %v1022_v25 = vld [vmem:[%s1459_s1 + $0xe0] ss:$8 sps:$4 sm:$0xff]   ;;  %v1023_v26 = vld [vmem:[%s1459_s1 + $0xd4] ss:$8 sps:$4 sm:$0xff]   ;;  %v1025_v27 = vld [vmem:[%s1459_s1 + $0xd0] ss:$8 sps:$4 sm:$0xff]  }
  0x15   : > { %518 = vmatpush1.bf16.msra.mxu0 %v1001_v5  ;;  %971 = vmatpush1.bf16.msra.mxu1 %v1001_v5  ;;  %v1026_v28 = vld [vmem:[%s1459_s1 + $0xc4] ss:$8 sps:$4 sm:$0xff]   ;;  %v1028_v29 = vld [vmem:[%s1459_s1 + $0xc0] ss:$8 sps:$4 sm:$0xff]   ;;  %v1029_v30 = vld [vmem:[%s1459_s1 + $0xb4] ss:$8 sps:$4 sm:$0xff]  }
  0x16   : > { %519 = vmatprep.subr.bf16.mxu0 %v1002_v6  ;;  %956 = vmatprep.subr.bf16.mxu1 %v1002_v6  ;;  %v1031_v31 = vld [vmem:[%s1459_s1 + $0xb0] ss:$8 sps:$4 sm:$0xff]   ;;  %v1032_v32 = vld [vmem:[%s1459_s1 + $0xa4] ss:$8 sps:$4 sm:$0xff]   ;;  %v1034_v33 = vld [vmem:[%s1459_s1 + $0xa0] ss:$8 sps:$4 sm:$0xff]  }
  0x17   : > { %v1035_v34 = vld [vmem:[%s1459_s1 + $0x94] ss:$8 sps:$4 sm:$0xff]   ;;  %v1037_v35 = vld [vmem:[%s1459_s1 + $0x90] ss:$8 sps:$4 sm:$0xff]   ;;  %v1038_v36 = vld [vmem:[%s1459_s1 + $0x84] ss:$8 sps:$4 sm:$0xff]  }
  0x18   : > { %v1040_v37 = vld [vmem:[%s1459_s1 + $0x80] ss:$8 sps:$4 sm:$0xff]   ;;  %v225_v41 = vld [vmem:[%s1118_s14 + $0x170] sm:$0xff]  ;;  %v186_v43 = vld [vmem:[%s1118_s14 + $0x38] sm:$0xff] }
  0x19   : > { %520 = vmatpush1.bf16.msra.mxu0 %v1004_v7  ;;  %972 = vmatpush1.bf16.msra.mxu1 %v1004_v7  ;;  %v223_v40 = vld [vmem:[%s1118_s14 + $0x160] sm:$0xff]  ;;  %v184_v42 = vld [vmem:[%s1118_s14 + $0x28] sm:$0xff]  ;;  %v230_v45 = vld [vmem:[%s1118_s14 + $0x198] sm:$0xff] }
  0x1a   : > { %521 = vmatprep.subr.bf16.mxu0 %v1005_v8  ;;  %957 = vmatprep.subr.bf16.mxu1 %v1005_v8  ;;  %v228_v44 = vld [vmem:[%s1118_s14 + $0x188] sm:$0xff]  ;;  %v287_v47 = vpack.c.bf16 %v225_v41, %v223_v40  ;;  %v268_v48 = vpack.c.bf16 %v186_v43, %v184_v42  ;;  %v183_v50 = vld [vmem:[%s1118_s14 + $0x20] sm:$0xff]  ;;  %v185_v51 = vld [vmem:[%s1118_s14 + $0x30] sm:$0xff] }
  0x1b   : > { %v290_v49 = vpack.c.bf16 %v230_v45, %v228_v44  ;;  %v227_v52 = vld [vmem:[%s1118_s14 + $0x180] sm:$0xff]  ;;  %v229_v53 = vld [vmem:[%s1118_s14 + $0x190] sm:$0xff]  ;;  %v188_v54 = vld [vmem:[%s1118_s14 + $0x48] sm:$0xff]  ;;  %v267_v58 = vpack.c.bf16 %v185_v51, %v183_v50 }
  0x1c   : > { %v190_v55 = vld [vmem:[%s1118_s14 + $0x58] sm:$0xff]  ;;  %v232_v56 = vld [vmem:[%s1118_s14 + $0x1a8] sm:$0xff]  ;;  %v289_v59 = vpack.c.bf16 %v229_v53, %v227_v52  ;;  %v187_v62 = vld [vmem:[%s1118_s14 + $0x40] sm:$0xff] }
  0x1d   : > { %522 = vmatpush1.bf16.msra.mxu0 %v1007_v9  ;;  %973 = vmatpush1.bf16.msra.mxu1 %v1007_v9  ;;  %v234_v57 = vld [vmem:[%s1118_s14 + $0x1b8] sm:$0xff]  ;;  %v270_v60 = vpack.c.bf16 %v190_v55, %v188_v54  ;;  %v189_v63 = vld [vmem:[%s1118_s14 + $0x50] sm:$0xff]  ;;  %v231_v0 = vld [vmem:[%s1118_s14 + $0x1a0] sm:$0xff] }
  0x1e   : > { %523 = vmatprep.subr.bf16.mxu0 %v1008_v10  ;;  %958 = vmatprep.subr.bf16.mxu1 %v1008_v10  ;;  %v292_v61 = vpack.c.bf16 %v234_v57, %v232_v56  ;;  %v233_v1 = vld [vmem:[%s1118_s14 + $0x1b0] sm:$0xff]  ;;  %v192_v2 = vld [vmem:[%s1118_s14 + $0x68] sm:$0xff]  ;;  %v194_v3 = vld [vmem:[%s1118_s14 + $0x78] sm:$0xff]  ;;  %v269_v6 = vpack.c.bf16 %v189_v63, %v187_v62 }
  0x1f   : > { %v236_v4 = vld [vmem:[%s1118_s14 + $0x1c8] sm:$0xff]  ;;  %v238_v5 = vld [vmem:[%s1118_s14 + $0x1d8] sm:$0xff]  ;;  %v291_v7 = vpack.c.bf16 %v233_v1, %v231_v0  ;;  %v272_v8 = vpack.c.bf16 %v194_v3, %v192_v2  ;;  %v191_v10 = vld [vmem:[%s1118_s14 + $0x60] sm:$0xff] }
  0x20   : > { %v294_v9 = vpack.c.bf16 %v238_v5, %v236_v4  ;;  %v237_v13 = vld [vmem:[%s1118_s14 + $0x1d0] sm:$0xff]  ;;  %v196_v14 = vld [vmem:[%s1118_s14 + $0x88] sm:$0xff]  ;;  %v198_v15 = vld [vmem:[%s1118_s14 + $0x98] sm:$0xff] }
  0x21   : > { %524 = vmatpush1.bf16.msra.mxu0 %v1010_v11  ;;  %974 = vmatpush1.bf16.msra.mxu1 %v1010_v11  ;;  %v193_v11 = vld [vmem:[%s1118_s14 + $0x70] sm:$0xff]  ;;  %v240_v16 = vld [vmem:[%s1118_s14 + $0x1e8] sm:$0xff]  ;;  %v242_v17 = vld [vmem:[%s1118_s14 + $0x1f8] sm:$0xff] }
  0x22   : > { %525 = vmatprep.subr.bf16.mxu0 %v1011_v12  ;;  %959 = vmatprep.subr.bf16.mxu1 %v1011_v12  ;;  %v235_v12 = vld [vmem:[%s1118_s14 + $0x1c0] sm:$0xff]  ;;  %v204_v38 = vld [vmem:[%s1118_s14 + $0xc8] sm:$0xff]  ;;  %v206_v39 = vld [vmem:[%s1118_s14 + $0xd8] sm:$0xff] }
  0x23   : > { %v293_v19 = vpack.c.bf16 %v237_v13, %v235_v12  ;;  %v248_v40 = vld [vmem:[%s1118_s14 + $0x228] sm:$0xff]  ;;  %v250_v41 = vld [vmem:[%s1118_s14 + $0x238] sm:$0xff]  ;;  %v278_v44 = vpack.c.bf16 %v206_v39, %v204_v38 }
  0x24   : > { %v300_v45 = vpack.c.bf16 %v250_v41, %v248_v40  ;;  %v208_v50 = vld [vmem:[%s1118_s14 + $0xe8] sm:$0xff]  ;;  %v210_v51 = vld [vmem:[%s1118_s14 + $0xf8] sm:$0xff] }
  0x25   : > { %526 = vmatpush1.bf16.msra.mxu0 %v1013_v18  ;;  %975 = vmatpush1.bf16.msra.mxu1 %v1013_v18  ;;  %v271_v18 = vpack.c.bf16 %v193_v11, %v191_v10  ;;  %v252_v52 = vld [vmem:[%s1118_s14 + $0x248] sm:$0xff]  ;;  %v254_v53 = vld [vmem:[%s1118_s14 + $0x258] sm:$0xff]  ;;  %v280_v56 = vpack.c.bf16 %v210_v51, %v208_v50 }
  0x26   : > { %527 = vmatprep.subr.bf16.mxu0 %v1014_v20  ;;  %960 = vmatprep.subr.bf16.mxu1 %v1014_v20  ;;  %v274_v20 = vpack.c.bf16 %v198_v15, %v196_v14  ;;  %v302_v57 = vpack.c.bf16 %v254_v53, %v252_v52  ;;  %v212_v62 = vld [vmem:[%s1118_s14 + $0x108] sm:$0xff]  ;;  %v214_v63 = vld [vmem:[%s1118_s14 + $0x118] sm:$0xff] }
  0x27   : > { %v256_v0 = vld [vmem:[%s1118_s14 + $0x268] sm:$0xff]  ;;  %v258_v1 = vld [vmem:[%s1118_s14 + $0x278] sm:$0xff]  ;;  %v282_v4 = vpack.c.bf16 %v214_v63, %v212_v62 }
  0x28   : > { %v304_v5 = vpack.c.bf16 %v258_v1, %v256_v0  ;;  %v216_v10 = vld [vmem:[%s1118_s14 + $0x128] sm:$0xff]  ;;  %v218_v11 = vld [vmem:[%s1118_s14 + $0x138] sm:$0xff] }
  0x29   : > { %528 = vmatpush1.bf16.msra.mxu0 %v1016_v21  ;;  %976 = vmatpush1.bf16.msra.mxu1 %v1016_v21  ;;  %v296_v21 = vpack.c.bf16 %v242_v17, %v240_v16  ;;  %v260_v12 = vld [vmem:[%s1118_s14 + $0x288] sm:$0xff]  ;;  %v262_v13 = vld [vmem:[%s1118_s14 + $0x298] sm:$0xff]  ;;  %v284_v16 = vpack.c.bf16 %v218_v11, %v216_v10 }
  0x2a   : > { %529 = vmatprep.subr.bf16.mxu0 %v1017_v22  ;;  %961 = vmatprep.subr.bf16.mxu1 %v1017_v22  ;;  %v195_v22 = vld [vmem:[%s1118_s14 + $0x80] sm:$0xff]  ;;  %v306_v17 = vpack.c.bf16 %v262_v13, %v260_v12 }
  0x2d   : > { %530 = vmatpush2.bf16.msra.mxu0 %v1019_v23  ;;  %977 = vmatpush2.bf16.msra.mxu1 %v1019_v23  ;;  %v197_v23 = vld [vmem:[%s1118_s14 + $0x90] sm:$0xff] }
  0x2e   : > { %531 = vmatprep.subr.bf16.mxu0 %v1020_v24  ;;  %962 = vmatprep.subr.bf16.mxu1 %v1020_v24  ;;  %v239_v24 = vld [vmem:[%s1118_s14 + $0x1e0] sm:$0xff] }
  0x31   : > { %532 = vmatpush2.bf16.msra.mxu0 %v1022_v25  ;;  %978 = vmatpush2.bf16.msra.mxu1 %v1022_v25  ;;  %v241_v25 = vld [vmem:[%s1118_s14 + $0x1f0] sm:$0xff] }
  0x32   : > { %533 = vmatprep.subr.bf16.mxu0 %v1023_v26  ;;  %963 = vmatprep.subr.bf16.mxu1 %v1023_v26  ;;  %v200_v26 = vld [vmem:[%s1118_s14 + $0xa8] sm:$0xff] }
  0x35   : > { %534 = vmatpush2.bf16.msra.mxu0 %v1025_v27  ;;  %979 = vmatpush2.bf16.msra.mxu1 %v1025_v27  ;;  %v202_v27 = vld [vmem:[%s1118_s14 + $0xb8] sm:$0xff] }
  0x36   : > { %535 = vmatprep.subr.bf16.mxu0 %v1026_v28  ;;  %964 = vmatprep.subr.bf16.mxu1 %v1026_v28  ;;  %v244_v28 = vld [vmem:[%s1118_s14 + $0x208] sm:$0xff] }
  0x39   : > { %536 = vmatpush2.bf16.msra.mxu0 %v1028_v29  ;;  %980 = vmatpush2.bf16.msra.mxu1 %v1028_v29  ;;  %v246_v29 = vld [vmem:[%s1118_s14 + $0x218] sm:$0xff] }
  0x3a   : > { %537 = vmatprep.subr.bf16.mxu0 %v1029_v30  ;;  %965 = vmatprep.subr.bf16.mxu1 %v1029_v30  ;;  %v273_v30 = vpack.c.bf16 %v197_v23, %v195_v22  ;;  %v220_v22 = vld [vmem:[%s1118_s14 + $0x148] sm:$0xff]  ;;  %v222_v23 = vld [vmem:[%s1118_s14 + $0x158] sm:$0xff] }
  0x3d   : > { %538 = vmatpush2.bf16.msra.mxu0 %v1031_v31  ;;  %981 = vmatpush2.bf16.msra.mxu1 %v1031_v31  ;;  %v295_v31 = vpack.c.bf16 %v241_v25, %v239_v24  ;;  %v264_v24 = vld [vmem:[%s1118_s14 + $0x2a8] sm:$0xff] }
  0x3e   : > { %539 = vmatprep.subr.bf16.mxu0 %v1032_v32  ;;  %966 = vmatprep.subr.bf16.mxu1 %v1032_v32  ;;  %v276_v32 = vpack.c.bf16 %v202_v27, %v200_v26  ;;  %v286_v27 = vpack.c.bf16 %v222_v23, %v220_v22 }
  0x41   : > { %540 = vmatpush2.bf16.msra.mxu0 %v1034_v33  ;;  %982 = vmatpush2.bf16.msra.mxu1 %v1034_v33  ;;  %v298_v33 = vpack.c.bf16 %v246_v29, %v244_v28  ;;  %v308_v28 = vpack.c.bf16 %v264_v24, %v264_v24  ;;  %v219_v29 = vld [vmem:[%s1118_s14 + $0x140] sm:$0xff] }
  0x42   : > { %541 = vmatprep.subr.bf16.mxu0 %v1035_v34  ;;  %967 = vmatprep.subr.bf16.mxu1 %v1035_v34  ;;  %v199_v34 = vld [vmem:[%s1118_s14 + $0xa0] sm:$0xff] }
  0x45   : > { %542 = vmatpush2.bf16.msra.mxu0 %v1037_v35  ;;  %983 = vmatpush2.bf16.msra.mxu1 %v1037_v35  ;;  %v201_v35 = vld [vmem:[%s1118_s14 + $0xb0] sm:$0xff] }
  0x46   : > { %543 = vmatprep.subr.bf16.mxu0 %v1038_v36  ;;  %968 = vmatprep.subr.bf16.mxu1 %v1038_v36  ;;  %v243_v36 = vld [vmem:[%s1118_s14 + $0x200] sm:$0xff]  ;;  %v275_v42 = vpack.c.bf16 %v201_v35, %v199_v34  ;;  %v343_v34 = vlaneseq }
  0x48   : > { %v344_v35 = vshrl.u32 %v343_v34, 7 }
  0x49   : > { %544 = vmatpush2.bf16.msra.mxu0 %v1040_v37  ;;  %984 = vmatpush2.bf16.msra.mxu1 %v1040_v37  ;;  %v245_v37 = vld [vmem:[%s1118_s14 + $0x210] sm:$0xff] }
  0x4a   : > { %v297_v43 = vpack.c.bf16 %v245_v37, %v243_v36  ;;  %v345_v36 = vsub.s32 0, %v344_v35  ;;  %v341_v37 = vld [vmem:[%s1460_s2] sm:$0x3]  ;;  %v349_v38 = vsub.s32 1, %v344_v35 }
  0x4c   : > { %546 = vmatmul.mubr.bf16.vlgmr.msra.gmra.mxu0 %v265_v46  ;;  %656 = vmatmul.mubr.bf16.vlgmr.msra.gmra.mxu1 %v287_v47  ;;  %v203_v46 = vld [vmem:[%s1118_s14 + $0xc0] sm:$0xff]  ;;  %v205_v47 = vld [vmem:[%s1118_s14 + $0xd0] sm:$0xff]  ;;  %v1272_v39 = vrot.slane %v341_v37, %v345_v36  ;;  %v1274_v40 = vrot.slane %v341_v37, %v349_v38 }
  0x4d   : > { %555 = vmatprep.mubr.bf16.mxu0 %v268_v48  ;;  %665 = vmatprep.mubr.bf16.mxu1 %v290_v49  ;;  %v247_v48 = vld [vmem:[%s1118_s14 + $0x220] sm:$0xff]  ;;  %v249_v49 = vld [vmem:[%s1118_s14 + $0x230] sm:$0xff]  ;;  %v277_v54 = vpack.c.bf16 %v205_v47, %v203_v46 }
  0x4e   : > { %v299_v55 = vpack.c.bf16 %v249_v49, %v247_v48 }
  0x54   : > { %556 = vmatmul.mubr.bf16.gmra.mxu0 %v267_v58  ;;  %666 = vmatmul.mubr.bf16.gmra.mxu1 %v289_v59  ;;  %v207_v58 = vld [vmem:[%s1118_s14 + $0xe0] sm:$0xff]  ;;  %v209_v59 = vld [vmem:[%s1118_s14 + $0xf0] sm:$0xff] }
  0x55   : > { %565 = vmatprep.mubr.bf16.mxu0 %v270_v60  ;;  %675 = vmatprep.mubr.bf16.mxu1 %v292_v61  ;;  %v251_v60 = vld [vmem:[%s1118_s14 + $0x240] sm:$0xff]  ;;  %v253_v61 = vld [vmem:[%s1118_s14 + $0x250] sm:$0xff]  ;;  %v279_v2 = vpack.c.bf16 %v209_v59, %v207_v58 }
  0x56   : > { %v301_v3 = vpack.c.bf16 %v253_v61, %v251_v60 }
  0x5c   : > { %566 = vmatmul.mubr.bf16.gmra.mxu0 %v269_v6  ;;  %676 = vmatmul.mubr.bf16.gmra.mxu1 %v291_v7  ;;  %v211_v6 = vld [vmem:[%s1118_s14 + $0x100] sm:$0xff]  ;;  %v213_v7 = vld [vmem:[%s1118_s14 + $0x110] sm:$0xff] }
  0x5d   : > { %575 = vmatprep.mubr.bf16.mxu0 %v272_v8  ;;  %685 = vmatprep.mubr.bf16.mxu1 %v294_v9  ;;  %v255_v8 = vld [vmem:[%s1118_s14 + $0x260] sm:$0xff]  ;;  %v257_v9 = vld [vmem:[%s1118_s14 + $0x270] sm:$0xff]  ;;  %v281_v14 = vpack.c.bf16 %v213_v7, %v211_v6 }
  0x5e   : > { %v303_v15 = vpack.c.bf16 %v257_v9, %v255_v8 }
  0x64   : > { %576 = vmatmul.mubr.bf16.gmra.mxu0 %v271_v18  ;;  %686 = vmatmul.mubr.bf16.gmra.mxu1 %v293_v19  ;;  %v215_v18 = vld [vmem:[%s1118_s14 + $0x120] sm:$0xff]  ;;  %v217_v19 = vld [vmem:[%s1118_s14 + $0x130] sm:$0xff] }
  0x65   : > { %585 = vmatprep.mubr.bf16.mxu0 %v274_v20  ;;  %695 = vmatprep.mubr.bf16.mxu1 %v296_v21  ;;  %v259_v20 = vld [vmem:[%s1118_s14 + $0x280] sm:$0xff]  ;;  %v261_v21 = vld [vmem:[%s1118_s14 + $0x290] sm:$0xff]  ;;  %v283_v25 = vpack.c.bf16 %v217_v19, %v215_v18 }
  0x66   : > { %v305_v26 = vpack.c.bf16 %v261_v21, %v259_v20 }
  0x6c   : > { %586 = vmatmul.mubr.bf16.gmra.mxu0 %v273_v30  ;;  %696 = vmatmul.mubr.bf16.gmra.mxu1 %v295_v31  ;;  %v221_v30 = vld [vmem:[%s1118_s14 + $0x150] sm:$0xff]  ;;  %v263_v31 = vld [vmem:[%s1118_s14 + $0x2a0] sm:$0xff]  ;;  %s1281_s14 = scalar_lea.vmem %s1461_s3, %s951_s8 }
  0x6d   : > { %595 = vmatprep.mubr.bf16.mxu0 %v276_v32  ;;  %705 = vmatprep.mubr.bf16.mxu1 %v298_v33  ;;  %v285_v32 = vpack.c.bf16 %v221_v30, %v219_v29  ;;  %v307_v33 = vpack.c.bf16 %v263_v31, %v263_v31 }
  0x74   : > { %596 = vmatmul.mubr.bf16.gmra.mxu0 %v275_v42  ;;  %706 = vmatmul.mubr.bf16.gmra.mxu1 %v297_v43 }
  0x75   : > { %605 = vmatprep.mubr.bf16.mxu0 %v278_v44  ;;  %715 = vmatprep.mubr.bf16.mxu1 %v300_v45 }
  0x7c   : > { %606 = vmatmul.mubr.bf16.gmra.mxu0 %v277_v54  ;;  %716 = vmatmul.mubr.bf16.gmra.mxu1 %v299_v55 }
  0x7d   : > { %615 = vmatprep.mubr.bf16.mxu0 %v280_v56  ;;  %725 = vmatprep.mubr.bf16.mxu1 %v302_v57 }
  0x84   : > { %616 = vmatmul.mubr.bf16.gmra.mxu0 %v279_v2  ;;  %726 = vmatmul.mubr.bf16.gmra.mxu1 %v301_v3 }
  0x85   : > { %625 = vmatprep.mubr.bf16.mxu0 %v282_v4  ;;  %735 = vmatprep.mubr.bf16.mxu1 %v304_v5 }
  0x8c   : > { %626 = vmatmul.mubr.bf16.gmra.mxu0 %v281_v14  ;;  %736 = vmatmul.mubr.bf16.gmra.mxu1 %v303_v15 }
  0x8d   : > { %635 = vmatprep.mubr.bf16.mxu0 %v284_v16  ;;  %745 = vmatprep.mubr.bf16.mxu1 %v306_v17 }
  0x94   : > { %636 = vmatmul.mubr.bf16.gmra.mxu0 %v283_v25  ;;  %746 = vmatmul.mubr.bf16.gmra.mxu1 %v305_v26 }
  0x95   : > { %645 = vmatprep.mubr.bf16.mxu0 %v286_v27  ;;  %755 = vmatprep.mubr.bf16.mxu1 %v308_v28 }
  0x9c   : > { %646 = vmatmul.mubr.bf16.gmra.mxu0 %v285_v32  ;;  %756 = vmatmul.mubr.bf16.gmra.mxu1 %v307_v33 }
 0x10c   : > { %v547_v41 = vpop.f32.mrf.mxu0  ;;  %v657_v42 = vpop.f32.mrf.mxu1 }
 0x10d   : > { %v548_v43 = vadd.f32 %v547_v41, %v1272_v39  ;;  %v658_v44 = vadd.f32 %v657_v42, %v1272_v39 }
 0x10e   : > { %v549_v45 = vpop.f32.mrf.mxu0  ;;  %v659_v46 = vpop.f32.mrf.mxu1 }
 0x10f   : > { %764 = vst [vmem:[%s1281_s14] sm:$0xff] %v548_v43  ;;  %808 = vst [vmem:[%s1281_s14 + $0x160] sm:$0xff] %v658_v44  ;;  %v550_v47 = vadd.f32 %v549_v45, %v1274_v40  ;;  %v660_v48 = vadd.f32 %v659_v46, %v1274_v40 }
 0x110   : > { %v551_v49 = vpop.f32.mrf.mxu0  ;;  %v661_v50 = vpop.f32.mrf.mxu1 }
 0x111   : > { %765 = vst [vmem:[%s1281_s14 + $0x8] sm:$0xff] %v550_v47  ;;  %809 = vst [vmem:[%s1281_s14 + $0x168] sm:$0xff] %v660_v48  ;;  %v552_v51 = vadd.f32 %v551_v49, %v1272_v39  ;;  %v662_v52 = vadd.f32 %v661_v50, %v1272_v39 }
 0x112   : > { %v553_v53 = vpop.f32.mrf.mxu0  ;;  %v663_v54 = vpop.f32.mrf.mxu1 }
 0x113   : > { %766 = vst [vmem:[%s1281_s14 + $0x10] sm:$0xff] %v552_v51  ;;  %810 = vst [vmem:[%s1281_s14 + $0x170] sm:$0xff] %v662_v52  ;;  %v554_v55 = vadd.f32 %v553_v53, %v1274_v40  ;;  %v664_v56 = vadd.f32 %v663_v54, %v1274_v40 }
 0x114   : > { %v557_v57 = vpop.f32.mrf.mxu0  ;;  %v667_v58 = vpop.f32.mrf.mxu1 }
 0x115   : > { %767 = vst [vmem:[%s1281_s14 + $0x18] sm:$0xff] %v554_v55  ;;  %811 = vst [vmem:[%s1281_s14 + $0x178] sm:$0xff] %v664_v56  ;;  %v558_v59 = vadd.f32 %v557_v57, %v1272_v39  ;;  %v668_v60 = vadd.f32 %v667_v58, %v1272_v39 }
 0x116   : > { %v559_v61 = vpop.f32.mrf.mxu0  ;;  %v669_v62 = vpop.f32.mrf.mxu1 }
 0x117   : > { %768 = vst [vmem:[%s1281_s14 + $0x20] sm:$0xff] %v558_v59  ;;  %812 = vst [vmem:[%s1281_s14 + $0x180] sm:$0xff] %v668_v60  ;;  %v560_v63 = vadd.f32 %v559_v61, %v1274_v40  ;;  %v670_v0 = vadd.f32 %v669_v62, %v1274_v40 }
 0x118   : > { %v561_v1 = vpop.f32.mrf.mxu0  ;;  %v671_v2 = vpop.f32.mrf.mxu1 }
 0x119   : > { %769 = vst [vmem:[%s1281_s14 + $0x28] sm:$0xff] %v560_v63  ;;  %813 = vst [vmem:[%s1281_s14 + $0x188] sm:$0xff] %v670_v0  ;;  %v562_v3 = vadd.f32 %v561_v1, %v1272_v39  ;;  %v672_v4 = vadd.f32 %v671_v2, %v1272_v39 }
 0x11a   : > { %v563_v5 = vpop.f32.mrf.mxu0  ;;  %v673_v6 = vpop.f32.mrf.mxu1 }
 0x11b   : > { %770 = vst [vmem:[%s1281_s14 + $0x30] sm:$0xff] %v562_v3  ;;  %814 = vst [vmem:[%s1281_s14 + $0x190] sm:$0xff] %v672_v4  ;;  %v564_v7 = vadd.f32 %v563_v5, %v1274_v40  ;;  %v674_v8 = vadd.f32 %v673_v6, %v1274_v40 }
 0x11c   : > { %v567_v9 = vpop.f32.mrf.mxu0  ;;  %v677_v10 = vpop.f32.mrf.mxu1 }
 0x11d   : > { %771 = vst [vmem:[%s1281_s14 + $0x38] sm:$0xff] %v564_v7  ;;  %815 = vst [vmem:[%s1281_s14 + $0x198] sm:$0xff] %v674_v8  ;;  %v568_v11 = vadd.f32 %v567_v9, %v1272_v39  ;;  %v678_v12 = vadd.f32 %v677_v10, %v1272_v39 }
 0x11e   : > { %v569_v13 = vpop.f32.mrf.mxu0  ;;  %v679_v14 = vpop.f32.mrf.mxu1 }
 0x11f   : > { %772 = vst [vmem:[%s1281_s14 + $0x40] sm:$0xff] %v568_v11  ;;  %816 = vst [vmem:[%s1281_s14 + $0x1a0] sm:$0xff] %v678_v12  ;;  %v570_v15 = vadd.f32 %v569_v13, %v1274_v40  ;;  %v680_v16 = vadd.f32 %v679_v14, %v1274_v40 }
 0x120   : > { %v571_v17 = vpop.f32.mrf.mxu0  ;;  %v681_v18 = vpop.f32.mrf.mxu1 }
 0x121   : > { %773 = vst [vmem:[%s1281_s14 + $0x48] sm:$0xff] %v570_v15  ;;  %817 = vst [vmem:[%s1281_s14 + $0x1a8] sm:$0xff] %v680_v16  ;;  %v572_v19 = vadd.f32 %v571_v17, %v1272_v39  ;;  %v682_v20 = vadd.f32 %v681_v18, %v1272_v39 }
 0x122   : > { %v573_v21 = vpop.f32.mrf.mxu0  ;;  %v683_v22 = vpop.f32.mrf.mxu1 }
 0x123   : > { %774 = vst [vmem:[%s1281_s14 + $0x50] sm:$0xff] %v572_v19  ;;  %818 = vst [vmem:[%s1281_s14 + $0x1b0] sm:$0xff] %v682_v20  ;;  %v574_v23 = vadd.f32 %v573_v21, %v1274_v40  ;;  %v684_v24 = vadd.f32 %v683_v22, %v1274_v40 }
 0x124   : > { %v577_v25 = vpop.f32.mrf.mxu0  ;;  %v687_v26 = vpop.f32.mrf.mxu1 }
 0x125   : > { %775 = vst [vmem:[%s1281_s14 + $0x58] sm:$0xff] %v574_v23  ;;  %819 = vst [vmem:[%s1281_s14 + $0x1b8] sm:$0xff] %v684_v24  ;;  %v578_v27 = vadd.f32 %v577_v25, %v1272_v39  ;;  %v688_v28 = vadd.f32 %v687_v26, %v1272_v39 }
 0x126   : > { %v579_v29 = vpop.f32.mrf.mxu0  ;;  %v689_v30 = vpop.f32.mrf.mxu1 }
 0x127   : > { %776 = vst [vmem:[%s1281_s14 + $0x60] sm:$0xff] %v578_v27  ;;  %820 = vst [vmem:[%s1281_s14 + $0x1c0] sm:$0xff] %v688_v28  ;;  %v580_v31 = vadd.f32 %v579_v29, %v1274_v40  ;;  %v690_v32 = vadd.f32 %v689_v30, %v1274_v40 }
 0x128   : > { %v581_v33 = vpop.f32.mrf.mxu0  ;;  %v691_v34 = vpop.f32.mrf.mxu1 }
 0x129   : > { %777 = vst [vmem:[%s1281_s14 + $0x68] sm:$0xff] %v580_v31  ;;  %821 = vst [vmem:[%s1281_s14 + $0x1c8] sm:$0xff] %v690_v32  ;;  %v582_v35 = vadd.f32 %v581_v33, %v1272_v39  ;;  %v692_v36 = vadd.f32 %v691_v34, %v1272_v39 }
 0x12a   : > { %v583_v37 = vpop.f32.mrf.mxu0  ;;  %v693_v38 = vpop.f32.mrf.mxu1 }
 0x12b   : > { %778 = vst [vmem:[%s1281_s14 + $0x70] sm:$0xff] %v582_v35  ;;  %822 = vst [vmem:[%s1281_s14 + $0x1d0] sm:$0xff] %v692_v36  ;;  %v584_v41 = vadd.f32 %v583_v37, %v1274_v40  ;;  %v694_v42 = vadd.f32 %v693_v38, %v1274_v40 }
 0x12c   : > { %v587_v43 = vpop.f32.mrf.mxu0  ;;  %v697_v44 = vpop.f32.mrf.mxu1 }
 0x12d   : > { %779 = vst [vmem:[%s1281_s14 + $0x78] sm:$0xff] %v584_v41  ;;  %823 = vst [vmem:[%s1281_s14 + $0x1d8] sm:$0xff] %v694_v42  ;;  %v588_v45 = vadd.f32 %v587_v43, %v1272_v39  ;;  %v698_v46 = vadd.f32 %v697_v44, %v1272_v39 }
 0x12e   : > { %v589_v47 = vpop.f32.mrf.mxu0  ;;  %v699_v48 = vpop.f32.mrf.mxu1 }
 0x12f   : > { %780 = vst [vmem:[%s1281_s14 + $0x80] sm:$0xff] %v588_v45  ;;  %824 = vst [vmem:[%s1281_s14 + $0x1e0] sm:$0xff] %v698_v46  ;;  %v590_v49 = vadd.f32 %v589_v47, %v1274_v40  ;;  %v700_v50 = vadd.f32 %v699_v48, %v1274_v40 }
 0x130   : > { %v591_v51 = vpop.f32.mrf.mxu0  ;;  %v701_v52 = vpop.f32.mrf.mxu1 }
 0x131   : > { %781 = vst [vmem:[%s1281_s14 + $0x88] sm:$0xff] %v590_v49  ;;  %825 = vst [vmem:[%s1281_s14 + $0x1e8] sm:$0xff] %v700_v50  ;;  %v592_v53 = vadd.f32 %v591_v51, %v1272_v39  ;;  %v702_v54 = vadd.f32 %v701_v52, %v1272_v39 }
 0x132   : > { %v593_v55 = vpop.f32.mrf.mxu0  ;;  %v703_v56 = vpop.f32.mrf.mxu1 }
 0x133   : > { %782 = vst [vmem:[%s1281_s14 + $0x90] sm:$0xff] %v592_v53  ;;  %826 = vst [vmem:[%s1281_s14 + $0x1f0] sm:$0xff] %v702_v54  ;;  %v594_v57 = vadd.f32 %v593_v55, %v1274_v40  ;;  %v704_v58 = vadd.f32 %v703_v56, %v1274_v40 }
 0x134   : > { %v597_v59 = vpop.f32.mrf.mxu0  ;;  %v707_v60 = vpop.f32.mrf.mxu1 }
 0x135   : > { %783 = vst [vmem:[%s1281_s14 + $0x98] sm:$0xff] %v594_v57  ;;  %827 = vst [vmem:[%s1281_s14 + $0x1f8] sm:$0xff] %v704_v58  ;;  %v598_v61 = vadd.f32 %v597_v59, %v1272_v39  ;;  %v708_v62 = vadd.f32 %v707_v60, %v1272_v39 }
 0x136   : > { %v599_v63 = vpop.f32.mrf.mxu0  ;;  %v709_v0 = vpop.f32.mrf.mxu1 }
 0x137   : > { %784 = vst [vmem:[%s1281_s14 + $0xa0] sm:$0xff] %v598_v61  ;;  %828 = vst [vmem:[%s1281_s14 + $0x200] sm:$0xff] %v708_v62  ;;  %v600_v1 = vadd.f32 %v599_v63, %v1274_v40  ;;  %v710_v2 = vadd.f32 %v709_v0, %v1274_v40 }
 0x138   : > { %v601_v3 = vpop.f32.mrf.mxu0  ;;  %v711_v4 = vpop.f32.mrf.mxu1 }
 0x139   : > { %785 = vst [vmem:[%s1281_s14 + $0xa8] sm:$0xff] %v600_v1  ;;  %829 = vst [vmem:[%s1281_s14 + $0x208] sm:$0xff] %v710_v2  ;;  %v602_v5 = vadd.f32 %v601_v3, %v1272_v39  ;;  %v712_v6 = vadd.f32 %v711_v4, %v1272_v39 }
 0x13a   : > { %v603_v7 = vpop.f32.mrf.mxu0  ;;  %v713_v8 = vpop.f32.mrf.mxu1 }
 0x13b   : > { %786 = vst [vmem:[%s1281_s14 + $0xb0] sm:$0xff] %v602_v5  ;;  %830 = vst [vmem:[%s1281_s14 + $0x210] sm:$0xff] %v712_v6  ;;  %v604_v9 = vadd.f32 %v603_v7, %v1274_v40  ;;  %v714_v10 = vadd.f32 %v713_v8, %v1274_v40 }
 0x13c   : > { %v607_v11 = vpop.f32.mrf.mxu0  ;;  %v717_v12 = vpop.f32.mrf.mxu1 }
 0x13d   : > { %787 = vst [vmem:[%s1281_s14 + $0xb8] sm:$0xff] %v604_v9  ;;  %831 = vst [vmem:[%s1281_s14 + $0x218] sm:$0xff] %v714_v10  ;;  %v608_v13 = vadd.f32 %v607_v11, %v1272_v39  ;;  %v718_v14 = vadd.f32 %v717_v12, %v1272_v39 }
 0x13e   : > { %v609_v15 = vpop.f32.mrf.mxu0  ;;  %v719_v16 = vpop.f32.mrf.mxu1 }
 0x13f   : > { %788 = vst [vmem:[%s1281_s14 + $0xc0] sm:$0xff] %v608_v13  ;;  %832 = vst [vmem:[%s1281_s14 + $0x220] sm:$0xff] %v718_v14  ;;  %v610_v17 = vadd.f32 %v609_v15, %v1274_v40  ;;  %v720_v18 = vadd.f32 %v719_v16, %v1274_v40 }
 0x140   : > { %v611_v19 = vpop.f32.mrf.mxu0  ;;  %v721_v20 = vpop.f32.mrf.mxu1 }
 0x141   : > { %789 = vst [vmem:[%s1281_s14 + $0xc8] sm:$0xff] %v610_v17  ;;  %833 = vst [vmem:[%s1281_s14 + $0x228] sm:$0xff] %v720_v18  ;;  %v612_v21 = vadd.f32 %v611_v19, %v1272_v39  ;;  %v722_v22 = vadd.f32 %v721_v20, %v1272_v39 }
 0x142   : > { %v613_v23 = vpop.f32.mrf.mxu0  ;;  %v723_v24 = vpop.f32.mrf.mxu1 }
 0x143   : > { %790 = vst [vmem:[%s1281_s14 + $0xd0] sm:$0xff] %v612_v21  ;;  %834 = vst [vmem:[%s1281_s14 + $0x230] sm:$0xff] %v722_v22  ;;  %v614_v25 = vadd.f32 %v613_v23, %v1274_v40  ;;  %v724_v26 = vadd.f32 %v723_v24, %v1274_v40 }
 0x144   : > { %v617_v27 = vpop.f32.mrf.mxu0  ;;  %v727_v28 = vpop.f32.mrf.mxu1 }
 0x145   : > { %791 = vst [vmem:[%s1281_s14 + $0xd8] sm:$0xff] %v614_v25  ;;  %835 = vst [vmem:[%s1281_s14 + $0x238] sm:$0xff] %v724_v26  ;;  %v618_v29 = vadd.f32 %v617_v27, %v1272_v39  ;;  %v728_v30 = vadd.f32 %v727_v28, %v1272_v39 }
 0x146   : > { %v619_v31 = vpop.f32.mrf.mxu0  ;;  %v729_v32 = vpop.f32.mrf.mxu1 }
 0x147   : > { %792 = vst [vmem:[%s1281_s14 + $0xe0] sm:$0xff] %v618_v29  ;;  %836 = vst [vmem:[%s1281_s14 + $0x240] sm:$0xff] %v728_v30  ;;  %v620_v33 = vadd.f32 %v619_v31, %v1274_v40  ;;  %v730_v34 = vadd.f32 %v729_v32, %v1274_v40 }
 0x148   : > { %v621_v35 = vpop.f32.mrf.mxu0  ;;  %v731_v36 = vpop.f32.mrf.mxu1 }
 0x149   : > { %793 = vst [vmem:[%s1281_s14 + $0xe8] sm:$0xff] %v620_v33  ;;  %837 = vst [vmem:[%s1281_s14 + $0x248] sm:$0xff] %v730_v34  ;;  %v622_v37 = vadd.f32 %v621_v35, %v1272_v39  ;;  %v732_v38 = vadd.f32 %v731_v36, %v1272_v39 }
 0x14a   : > { %v623_v41 = vpop.f32.mrf.mxu0  ;;  %v733_v42 = vpop.f32.mrf.mxu1 }
 0x14b   : > { %794 = vst [vmem:[%s1281_s14 + $0xf0] sm:$0xff] %v622_v37  ;;  %838 = vst [vmem:[%s1281_s14 + $0x250] sm:$0xff] %v732_v38  ;;  %v624_v43 = vadd.f32 %v623_v41, %v1274_v40  ;;  %v734_v44 = vadd.f32 %v733_v42, %v1274_v40 }
 0x14c   : > { %v627_v45 = vpop.f32.mrf.mxu0  ;;  %v737_v46 = vpop.f32.mrf.mxu1 }
 0x14d   : > { %795 = vst [vmem:[%s1281_s14 + $0xf8] sm:$0xff] %v624_v43  ;;  %839 = vst [vmem:[%s1281_s14 + $0x258] sm:$0xff] %v734_v44  ;;  %v628_v47 = vadd.f32 %v627_v45, %v1272_v39  ;;  %v738_v48 = vadd.f32 %v737_v46, %v1272_v39 }
 0x14e   : > { %v629_v49 = vpop.f32.mrf.mxu0  ;;  %v739_v50 = vpop.f32.mrf.mxu1 }
 0x14f   : > { %796 = vst [vmem:[%s1281_s14 + $0x100] sm:$0xff] %v628_v47  ;;  %840 = vst [vmem:[%s1281_s14 + $0x260] sm:$0xff] %v738_v48  ;;  %v630_v51 = vadd.f32 %v629_v49, %v1274_v40  ;;  %v740_v52 = vadd.f32 %v739_v50, %v1274_v40 }
 0x150   : > { %v631_v53 = vpop.f32.mrf.mxu0  ;;  %v741_v54 = vpop.f32.mrf.mxu1 }
 0x151   : > { %797 = vst [vmem:[%s1281_s14 + $0x108] sm:$0xff] %v630_v51  ;;  %841 = vst [vmem:[%s1281_s14 + $0x268] sm:$0xff] %v740_v52  ;;  %v632_v55 = vadd.f32 %v631_v53, %v1272_v39  ;;  %v742_v56 = vadd.f32 %v741_v54, %v1272_v39 }
 0x152   : > { %v633_v57 = vpop.f32.mrf.mxu0  ;;  %v743_v58 = vpop.f32.mrf.mxu1 }
 0x153   : > { %798 = vst [vmem:[%s1281_s14 + $0x110] sm:$0xff] %v632_v55  ;;  %842 = vst [vmem:[%s1281_s14 + $0x270] sm:$0xff] %v742_v56  ;;  %v634_v59 = vadd.f32 %v633_v57, %v1274_v40  ;;  %v744_v60 = vadd.f32 %v743_v58, %v1274_v40 }
 0x154   : > { %v637_v61 = vpop.f32.mrf.mxu0  ;;  %v747_v62 = vpop.f32.mrf.mxu1 }
 0x155   : > { %799 = vst [vmem:[%s1281_s14 + $0x118] sm:$0xff] %v634_v59  ;;  %843 = vst [vmem:[%s1281_s14 + $0x278] sm:$0xff] %v744_v60  ;;  %v638_v63 = vadd.f32 %v637_v61, %v1272_v39  ;;  %v748_v0 = vadd.f32 %v747_v62, %v1272_v39 }
 0x156   : > { %v639_v1 = vpop.f32.mrf.mxu0  ;;  %v749_v2 = vpop.f32.mrf.mxu1 }
 0x157   : > { %800 = vst [vmem:[%s1281_s14 + $0x120] sm:$0xff] %v638_v63  ;;  %844 = vst [vmem:[%s1281_s14 + $0x280] sm:$0xff] %v748_v0  ;;  %v640_v3 = vadd.f32 %v639_v1, %v1274_v40  ;;  %v750_v4 = vadd.f32 %v749_v2, %v1274_v40 }
 0x158   : > { %v641_v5 = vpop.f32.mrf.mxu0  ;;  %v751_v6 = vpop.f32.mrf.mxu1 }
 0x159   : > { %801 = vst [vmem:[%s1281_s14 + $0x128] sm:$0xff] %v640_v3  ;;  %845 = vst [vmem:[%s1281_s14 + $0x288] sm:$0xff] %v750_v4  ;;  %v642_v7 = vadd.f32 %v641_v5, %v1272_v39  ;;  %v752_v8 = vadd.f32 %v751_v6, %v1272_v39 }
 0x15a   : > { %v643_v9 = vpop.f32.mrf.mxu0  ;;  %v753_v10 = vpop.f32.mrf.mxu1 }
 0x15b   : > { %802 = vst [vmem:[%s1281_s14 + $0x130] sm:$0xff] %v642_v7  ;;  %846 = vst [vmem:[%s1281_s14 + $0x290] sm:$0xff] %v752_v8  ;;  %v644_v11 = vadd.f32 %v643_v9, %v1274_v40  ;;  %v754_v12 = vadd.f32 %v753_v10, %v1274_v40 }
 0x15c   : > { %v647_v13 = vpop.f32.mrf.mxu0  ;;  %v757_v14 = vpop.f32.mrf.mxu1 }
 0x15d   : > { %803 = vst [vmem:[%s1281_s14 + $0x138] sm:$0xff] %v644_v11  ;;  %847 = vst [vmem:[%s1281_s14 + $0x298] sm:$0xff] %v754_v12  ;;  %v648_v15 = vadd.f32 %v647_v13, %v1272_v39  ;;  %v758_v16 = vadd.f32 %v757_v14, %v1272_v39 }
 0x15e   : > { %v649_v17 = vpop.f32.mrf.mxu0  ;;  %v759_v18 = vpop.f32.mrf.mxu1 }
 0x15f   : > { %804 = vst [vmem:[%s1281_s14 + $0x140] sm:$0xff] %v648_v15  ;;  %848 = vst [vmem:[%s1281_s14 + $0x2a0] sm:$0xff] %v758_v16  ;;  %v650_v19 = vadd.f32 %v649_v17, %v1274_v40  ;;  %v760_v20 = vadd.f32 %v759_v18, %v1274_v40 }
 0x160   : > { %v651_v21 = vpop.f32.mrf.mxu0  ;;  %v761_v22 = vpop.f32.mrf.mxu1 }
 0x161   : > { %805 = vst [vmem:[%s1281_s14 + $0x148] sm:$0xff] %v650_v19  ;;  %849 = vst [vmem:[%s1281_s14 + $0x2a8] sm:$0xff] %v760_v20  ;;  %v652_v23 = vadd.f32 %v651_v21, %v1272_v39 }
 0x162   : > { %v653_v24 = vpop.f32.mrf.mxu0  ;;  %v762_v25 = vpop.f32.mrf.mxu1 }
 0x163   : > { %806 = vst [vmem:[%s1281_s14 + $0x150] sm:$0xff] %v652_v23  ;;  %v654_v26 = vadd.f32 %v653_v24, %v1274_v40 }
 0x165   : > { %807 = vst [vmem:[%s1281_s14 + $0x158] sm:$0xff] %v654_v26 }
 0x166 PF: > { %s13_s12 = sadd.s32 1, %s1047_s12  }
 0x167   : > { %p10_p4 = scmp.ge.s32.totalorder %s13_s12, 4  }
 0x169   :  { %12 = sbr.rel (!%p10_p4) target bundleno = 1 (0x1), region = 62 }

// kernel: decoder_forward.15
= control target key start
LH: loop header
LB: loop body
LE: loop exit
PB: predicated region body
PF: predicated region fallthrough
CT: control target
= control target key end

     0   :  { %12 = vsyncpa [#allocation3], 0  ;;  %s4153_s0 = inlined_call_operand.vmem [shape: f32[64,256], index: 0, kind: input, shape index: {}]   ;;  %s4154_s1 = inlined_call_operand.vmem [shape: bf16[256,1024], index: 1, kind: input, shape index: {}]   ;;  %s4155_s2 = inlined_call_operand.vmem [shape: f32[1,1024], index: 2, kind: input, shape index: {}]   ;;  %s4156_s3 = inlined_call_operand.vmem [shape: bf16[1024,256], index: 3, kind: input, shape index: {}]   ;;  %s4157_s4 = inlined_call_operand.vmem [shape: f32[1,256], index: 4, kind: input, shape index: {}]   ;;  %s4158_s5 = inlined_call_operand.vmem [shape: f32[1,256], index: 5, kind: input, shape index: {}]   ;;  %s4159_s6 = inlined_call_operand.vmem [shape: f32[1,256], index: 6, kind: input, shape index: {}]   ;;  %s4160_s7 = inlined_call_operand.hbm [shape: f32[64,256], index: 7, kind: output, shape index: {}]  }
   0x1   :  { %14 = vsyncpa [#allocation3 + $0x1], 0  ;;  %s3182_s24 = smov 0   ;;  %s3184_s25 = smov 0  }
   0x2   :  { %s3186_s26 = smov 0   ;;  %s3188_s27 = smov 0  }
   0x3 LB: > { %s3203_s28 = sadd.s32 4294967295, %s3137_s27   ;;  %s2555_s29 = sadd.s32 4294967294, %s3137_s27   ;;  %s3137_s27 = sphi %s3188_s27, %s4166_s27   ;;  %s3133_s26 = sphi %s3186_s26, %s4165_s26   ;;  %s3129_s25 = sphi %s3184_s25, %s4164_s25   ;;  %s3125_s24 = sphi %s3182_s24, %s4163_s24  }
   0x4   : > { %s3207_s30 = sadd.s32 1, %s3137_s27   ;;  %s179_s8 = sadd.s32 1, %s3133_s26 }
   0x5   : > { %s176_s9 = ssub.s32 %s3137_s27, %s3207_s30  ;;  %p189_p0 = scmp.ne.s32.totalorder %s3133_s26, %s3129_s25 }
   0x6   : > { %p177_p1 = scmp.eq.s32.totalorder %s176_s9, 0  ;;  %p190_p2 = scmp.eq.s32.totalorder %s3203_s28, 1 }
   0x7   : > { %p195_p3 = scmp.ne.s32.totalorder %s3129_s25, %s3125_s24  ;;  %p196_p4 = scmp.eq.s32.totalorder %s2555_s29, 1 }
   0x8   : > { %s3218_s10 = scalar_select %p177_p1, %s3133_s26, %s179_s8  }
   0x9   : > { %p3220_p5 = por %p190_p2, %p189_p0  ;;  %p3224_p6 = por %p196_p4, %p195_p3 }
   0xa   : > { %p2558_p7 = scmp.ge.s32.totalorder %s3137_s27, 1  ;;  %p242_p8 = scmp.lt.s32.totalorder %s3137_s27, 3 }
   0xc   : > { %p243_p9 = pnand %p2558_p7, %p242_p8 }
   0xd   : > { %s2560_s23 = sshll.u32 (!%p243_p9), %s3203_s28, 2  ;;  %s272_s14 = sand.u32 (!%p243_p9), 1, %s3129_s25  }
   0xe   : > { %246 = sbr.rel (%p243_p9) target bundleno = 894 (0x37e), region = 48  ;;  %p276_p10 = scmp.lt.s32.totalorder (!%p243_p9), %s2560_s23, 7 }
   0xf   : > { %s2559_s15 = sshll.u32 (!%p243_p9), %s272_s14, 6  ;;  %s2827_s17 = sshll.u32 (!%p243_p9), %s3203_s28, 10 }
  0x10   : > { %s274_s16 = scalar_lea.vmem (!%p243_p9), [#allocation2], %s2559_s15  ;;  %s4113_s28 = scalar_lea.sflag (!%p243_p9), [#allocation3], %s272_s14 }
  0x11   : > { %s2493_s18 = sshll.u32 (!%p243_p9), %s274_s16, 4  ;;  %s3139_s29 = smov (!%p243_p9), [#allocation2]   ;;  %s4109_s18 = int_to_ptr.vmem [resolvable:$true] %s2493_s18 }
  0x12   : > { %s3077_s22 = scalar_lea.vmem (!%p243_p9), %s4109_s18, 1024 }
  0x13   : > { %v351_v0 = vld [vmem:[%s4154_s1 + $0x1c0] sm:$0xff]  ;;  %v352_v2 = vld [vmem:[%s4154_s1 + $0x1c8] sm:$0xff]  ;;  %s4168_s23 = smov (!%p276_p10, %s2560_s23), 7  ;;  %p3078_p11 = scmp.ne.s32.totalorder %s4109_s18, %s3077_s22 }
  0x14   : > { %v355_v1 = vld [vmem:[%s4154_s1 + $0x1e0] sm:$0xff]  ;;  %v356_v4 = vld [vmem:[%s4154_s1 + $0x1e8] sm:$0xff]  ;;  %s2825_s21 = sshll.u32 %s4168_s23, 4 }
  0x15   : > { %v2620_v3 = vcombine.high %v351_v0, %v355_v1  ;;  %v2619_v5 = vcombine.low %v351_v0, %v355_v1  ;;  %v343_v6 = vld [vmem:[%s4154_s1 + $0x180] sm:$0xff]  ;;  %v2622_v8 = vcombine.high %v352_v2, %v356_v4  ;;  %v2621_v9 = vcombine.low %v352_v2, %v356_v4  ;;  %v344_v11 = vld [vmem:[%s4154_s1 + $0x188] sm:$0xff]  ;;  %s3312_s23 = scalar_lea.vmem %s4153_s0, %s2825_s21  ;;  %s4107_s21 = scalar_lea.hbm %s4160_s7, %s2827_s17 }
  0x16   : > { %v347_v7 = vld [vmem:[%s4154_s1 + $0x1a0] sm:$0xff]  ;;  %v348_v12 = vld [vmem:[%s4154_s1 + $0x1a8] sm:$0xff]  ;;  %v286_v54 = vld [vmem:[%s3312_s23 + $0x18] sm:$0xff]  ;;  %p3079_p12 = pnand %p3078_p11, %p3220_p5 }
  0x17   : > { %v2612_v10 = vcombine.high %v343_v6, %v347_v7  ;;  %v335_v13 = vld [vmem:[%s4154_s1 + $0x140] sm:$0xff]  ;;  %1105 = vmatprep.subr.bf16.mxu0 %v2620_v3  ;;  %v2614_v14 = vcombine.high %v344_v11, %v348_v12  ;;  %v336_v16 = vld [vmem:[%s4154_s1 + $0x148] sm:$0xff]  ;;  %1158 = vmatprep.subr.bf16.mxu1 %v2622_v8  ;;  %v2611_v18 = vcombine.low %v343_v6, %v347_v7 }
  0x18   : > { %v339_v15 = vld [vmem:[%s4154_s1 + $0x160] sm:$0xff]  ;;  %v340_v17 = vld [vmem:[%s4154_s1 + $0x168] sm:$0xff]  ;;  %1106 = vmatpush1.bf16.msra.mxu0 %v2619_v5  ;;  %1159 = vmatpush1.bf16.msra.mxu1 %v2621_v9  ;;  %v2613_v19 = vcombine.low %v344_v11, %v348_v12  ;;  %p3080_p13 = pneg %p3079_p12 }
  0x19   : > { %1107 = vmatprep.subr.bf16.mxu0 %v2612_v10  ;;  %v2604_v20 = vcombine.high %v335_v13, %v339_v15  ;;  %1160 = vmatprep.subr.bf16.mxu1 %v2614_v14  ;;  %v2606_v21 = vcombine.high %v336_v16, %v340_v17  ;;  %v327_v22 = vld [vmem:[%s4154_s1 + $0x100] sm:$0xff]  ;;  %v328_v24 = vld [vmem:[%s4154_s1 + $0x108] sm:$0xff]  ;;  %v2603_v26 = vcombine.low %v335_v13, %v339_v15 }
  0x1a   : > { %v331_v23 = vld [vmem:[%s4154_s1 + $0x120] sm:$0xff]  ;;  %v332_v25 = vld [vmem:[%s4154_s1 + $0x128] sm:$0xff]  ;;  %v2605_v27 = vcombine.low %v336_v16, %v340_v17 }
  0x1b   : > { %v2596_v28 = vcombine.high %v327_v22, %v331_v23  ;;  %v2598_v29 = vcombine.high %v328_v24, %v332_v25  ;;  %v319_v30 = vld [vmem:[%s4154_s1 + $0xc0] sm:$0xff]  ;;  %v320_v32 = vld [vmem:[%s4154_s1 + $0xc8] sm:$0xff]  ;;  %v2595_v34 = vcombine.low %v327_v22, %v331_v23  ;;  %v2597_v35 = vcombine.low %v328_v24, %v332_v25 }
  0x1c   : > { %1108 = vmatpush1.bf16.msra.mxu0 %v2611_v18  ;;  %1161 = vmatpush1.bf16.msra.mxu1 %v2613_v19  ;;  %v323_v31 = vld [vmem:[%s4154_s1 + $0xe0] sm:$0xff]  ;;  %v324_v33 = vld [vmem:[%s4154_s1 + $0xe8] sm:$0xff] }
  0x1d   : > { %1109 = vmatprep.subr.bf16.mxu0 %v2604_v20  ;;  %1162 = vmatprep.subr.bf16.mxu1 %v2606_v21  ;;  %v2588_v36 = vcombine.high %v319_v30, %v323_v31  ;;  %v2590_v37 = vcombine.high %v320_v32, %v324_v33  ;;  %v311_v38 = vld [vmem:[%s4154_s1 + $0x80] sm:$0xff]  ;;  %v312_v40 = vld [vmem:[%s4154_s1 + $0x88] sm:$0xff]  ;;  %v2587_v42 = vcombine.low %v319_v30, %v323_v31 }
  0x1e   : > { %v315_v39 = vld [vmem:[%s4154_s1 + $0xa0] sm:$0xff]  ;;  %v316_v41 = vld [vmem:[%s4154_s1 + $0xa8] sm:$0xff]  ;;  %v2589_v43 = vcombine.low %v320_v32, %v324_v33 }
  0x1f   : > { %v2580_v44 = vcombine.high %v311_v38, %v315_v39  ;;  %v2582_v45 = vcombine.high %v312_v40, %v316_v41  ;;  %v303_v46 = vld [vmem:[%s4154_s1 + $0x40] sm:$0xff]  ;;  %v304_v48 = vld [vmem:[%s4154_s1 + $0x48] sm:$0xff]  ;;  %v2579_v50 = vcombine.low %v311_v38, %v315_v39  ;;  %v2581_v51 = vcombine.low %v312_v40, %v316_v41 }
  0x20   : > { %1110 = vmatpush1.bf16.msra.mxu0 %v2603_v26  ;;  %1163 = vmatpush1.bf16.msra.mxu1 %v2605_v27  ;;  %v307_v47 = vld [vmem:[%s4154_s1 + $0x60] sm:$0xff]  ;;  %v308_v49 = vld [vmem:[%s4154_s1 + $0x68] sm:$0xff] }
  0x21   : > { %1111 = vmatprep.subr.bf16.mxu0 %v2596_v28  ;;  %1164 = vmatprep.subr.bf16.mxu1 %v2598_v29  ;;  %v2572_v52 = vcombine.high %v303_v46, %v307_v47  ;;  %v284_v53 = vld [vmem:[%s3312_s23 + $0x8] sm:$0xff]  ;;  %v2574_v55 = vcombine.high %v304_v48, %v308_v49  ;;  %v295_v56 = vld [vmem:[%s4154_s1] sm:$0xff]  ;;  %v2571_v61 = vcombine.low %v303_v46, %v307_v47 }
  0x22   : > { %v299_v57 = vld [vmem:[%s4154_s1 + $0x20] sm:$0xff]  ;;  %v3328_v58 = vpack.c.bf16 %v286_v54, %v284_v53  ;;  %v296_v59 = vld [vmem:[%s4154_s1 + $0x8] sm:$0xff]  ;;  %v2573_v62 = vcombine.low %v304_v48, %v308_v49 }
  0x23   : > { %v300_v60 = vld [vmem:[%s4154_s1 + $0x28] sm:$0xff]  ;;  %v2564_v63 = vcombine.high %v295_v56, %v299_v57  ;;  %v415_v1 = vld [vmem:[%s4154_s1 + $0x3c0] sm:$0xff]  ;;  %v2563_v5 = vcombine.low %v295_v56, %v299_v57 }
  0x24   : > { %1112 = vmatpush1.bf16.msra.mxu0 %v2595_v34  ;;  %1165 = vmatpush1.bf16.msra.mxu1 %v2597_v35  ;;  %v2566_v0 = vcombine.high %v296_v59, %v300_v60  ;;  %v419_v2 = vld [vmem:[%s4154_s1 + $0x3e0] sm:$0xff]  ;;  %v416_v3 = vld [vmem:[%s4154_s1 + $0x3c8] sm:$0xff]  ;;  %v2565_v6 = vcombine.low %v296_v59, %v300_v60 }
  0x25   : > { %1113 = vmatprep.subr.bf16.mxu0 %v2588_v36  ;;  %1166 = vmatprep.subr.bf16.mxu1 %v2590_v37  ;;  %v420_v4 = vld [vmem:[%s4154_s1 + $0x3e8] sm:$0xff]  ;;  %v2684_v7 = vcombine.high %v415_v1, %v419_v2  ;;  %v407_v9 = vld [vmem:[%s4154_s1 + $0x380] sm:$0xff]  ;;  %v2683_v13 = vcombine.low %v415_v1, %v419_v2 }
  0x26   : > { %1137 = vmatprep.mubr.bf16.mxu0 %v3328_v58  ;;  %1190 = vmatprep.mubr.bf16.mxu1 %v3328_v58  ;;  %v2686_v8 = vcombine.high %v416_v3, %v420_v4  ;;  %v411_v10 = vld [vmem:[%s4154_s1 + $0x3a0] sm:$0xff]  ;;  %v408_v11 = vld [vmem:[%s4154_s1 + $0x388] sm:$0xff]  ;;  %v2685_v14 = vcombine.low %v416_v3, %v420_v4  ;;  %v285_v3 = vld [vmem:[%s3312_s23 + $0x10] sm:$0xff] }
  0x27   : > { %v412_v12 = vld [vmem:[%s4154_s1 + $0x3a8] sm:$0xff]  ;;  %v2676_v15 = vcombine.high %v407_v9, %v411_v10  ;;  %v399_v17 = vld [vmem:[%s4154_s1 + $0x340] sm:$0xff]  ;;  %v2675_v21 = vcombine.low %v407_v9, %v411_v10  ;;  %v353_v4 = vld [vmem:[%s4154_s1 + $0x1d0] sm:$0xff] }
  0x28   : > { %1114 = vmatpush1.bf16.msra.mxu0 %v2587_v42  ;;  %1167 = vmatpush1.bf16.msra.mxu1 %v2589_v43  ;;  %v2678_v16 = vcombine.high %v408_v11, %v412_v12  ;;  %v403_v18 = vld [vmem:[%s4154_s1 + $0x360] sm:$0xff]  ;;  %v400_v19 = vld [vmem:[%s4154_s1 + $0x348] sm:$0xff]  ;;  %v2677_v22 = vcombine.low %v408_v11, %v412_v12  ;;  %v345_v9 = vld [vmem:[%s4154_s1 + $0x190] sm:$0xff] }
  0x29   : > { %1115 = vmatprep.subr.bf16.mxu0 %v2580_v44  ;;  %1168 = vmatprep.subr.bf16.mxu1 %v2582_v45  ;;  %v404_v20 = vld [vmem:[%s4154_s1 + $0x368] sm:$0xff]  ;;  %v2668_v23 = vcombine.high %v399_v17, %v403_v18  ;;  %v391_v25 = vld [vmem:[%s4154_s1 + $0x300] sm:$0xff]  ;;  %v2667_v29 = vcombine.low %v399_v17, %v403_v18  ;;  %v349_v12 = vld [vmem:[%s4154_s1 + $0x1b0] sm:$0xff] }
  0x2a   : > { %v2670_v24 = vcombine.high %v400_v19, %v404_v20  ;;  %v395_v26 = vld [vmem:[%s4154_s1 + $0x320] sm:$0xff]  ;;  %v392_v27 = vld [vmem:[%s4154_s1 + $0x308] sm:$0xff]  ;;  %v2669_v30 = vcombine.low %v400_v19, %v404_v20  ;;  %v290_v18 = vld [vmem:[%s3312_s23 + $0x38] sm:$0xff] }
  0x2b   : > { %v396_v28 = vld [vmem:[%s4154_s1 + $0x328] sm:$0xff]  ;;  %v2660_v31 = vcombine.high %v391_v25, %v395_v26  ;;  %v383_v33 = vld [vmem:[%s4154_s1 + $0x2c0] sm:$0xff]  ;;  %v2659_v37 = vcombine.low %v391_v25, %v395_v26  ;;  %v338_v25 = vld [vmem:[%s4154_s1 + $0x158] sm:$0xff] }
  0x2c   : > { %1116 = vmatpush1.bf16.msra.mxu0 %v2579_v50  ;;  %1169 = vmatpush1.bf16.msra.mxu1 %v2581_v51  ;;  %v2662_v32 = vcombine.high %v392_v27, %v396_v28  ;;  %v387_v34 = vld [vmem:[%s4154_s1 + $0x2e0] sm:$0xff]  ;;  %v384_v35 = vld [vmem:[%s4154_s1 + $0x2c8] sm:$0xff]  ;;  %v2661_v38 = vcombine.low %v392_v27, %v396_v28  ;;  %v342_v27 = vld [vmem:[%s4154_s1 + $0x178] sm:$0xff] }
  0x2d   : > { %1117 = vmatprep.subr.bf16.mxu0 %v2572_v52  ;;  %1170 = vmatprep.subr.bf16.mxu1 %v2574_v55  ;;  %v388_v36 = vld [vmem:[%s4154_s1 + $0x2e8] sm:$0xff]  ;;  %v2652_v39 = vcombine.high %v383_v33, %v387_v34  ;;  %v375_v41 = vld [vmem:[%s4154_s1 + $0x280] sm:$0xff]  ;;  %v2651_v45 = vcombine.low %v383_v33, %v387_v34  ;;  %v2610_v33 = vcombine.high %v338_v25, %v342_v27  ;;  %v329_v34 = vld [vmem:[%s4154_s1 + $0x110] sm:$0xff] }
  0x2e   : > { %v2654_v40 = vcombine.high %v384_v35, %v388_v36  ;;  %v379_v42 = vld [vmem:[%s4154_s1 + $0x2a0] sm:$0xff]  ;;  %v376_v43 = vld [vmem:[%s4154_s1 + $0x288] sm:$0xff]  ;;  %v2653_v46 = vcombine.low %v384_v35, %v388_v36  ;;  %v333_v35 = vld [vmem:[%s4154_s1 + $0x130] sm:$0xff] }
  0x2f   : > { %v380_v44 = vld [vmem:[%s4154_s1 + $0x2a8] sm:$0xff]  ;;  %v2644_v47 = vcombine.high %v375_v41, %v379_v42  ;;  %v367_v49 = vld [vmem:[%s4154_s1 + $0x240] sm:$0xff]  ;;  %v2643_v53 = vcombine.low %v375_v41, %v379_v42  ;;  %v330_v36 = vld [vmem:[%s4154_s1 + $0x118] sm:$0xff]  ;;  %v2600_v41 = vcombine.high %v329_v34, %v333_v35 }
  0x30   : > { %1118 = vmatpush1.bf16.msra.mxu0 %v2571_v61  ;;  %1171 = vmatpush1.bf16.msra.mxu1 %v2573_v62  ;;  %v2646_v48 = vcombine.high %v376_v43, %v380_v44  ;;  %v371_v50 = vld [vmem:[%s4154_s1 + $0x260] sm:$0xff]  ;;  %v368_v51 = vld [vmem:[%s4154_s1 + $0x248] sm:$0xff]  ;;  %v2645_v54 = vcombine.low %v376_v43, %v380_v44  ;;  %v321_v43 = vld [vmem:[%s4154_s1 + $0xd0] sm:$0xff] }
  0x31   : > { %1119 = vmatprep.subr.bf16.mxu0 %v2564_v63  ;;  %1172 = vmatprep.subr.bf16.mxu1 %v2566_v0  ;;  %v372_v52 = vld [vmem:[%s4154_s1 + $0x268] sm:$0xff]  ;;  %v2636_v55 = vcombine.high %v367_v49, %v371_v50  ;;  %v359_v57 = vld [vmem:[%s4154_s1 + $0x200] sm:$0xff]  ;;  %v2635_v62 = vcombine.low %v367_v49, %v371_v50  ;;  %v325_v44 = vld [vmem:[%s4154_s1 + $0xf0] sm:$0xff] }
  0x32   : > { %v2638_v56 = vcombine.high %v368_v51, %v372_v52  ;;  %v363_v59 = vld [vmem:[%s4154_s1 + $0x220] sm:$0xff]  ;;  %v360_v60 = vld [vmem:[%s4154_s1 + $0x208] sm:$0xff]  ;;  %v2637_v63 = vcombine.low %v368_v51, %v372_v52  ;;  %v2592_v49 = vcombine.high %v321_v43, %v325_v44  ;;  %v313_v51 = vld [vmem:[%s4154_s1 + $0x90] sm:$0xff] }
  0x33   : > { %v364_v61 = vld [vmem:[%s4154_s1 + $0x228] sm:$0xff]  ;;  %v2628_v0 = vcombine.high %v359_v57, %v363_v59  ;;  %v283_v2 = vld [vmem:[%s3312_s23] sm:$0xff]  ;;  %v317_v52 = vld [vmem:[%s4154_s1 + $0xb0] sm:$0xff] }
  0x34   : > { %1120 = vmatpush1.bf16.msra.mxu0 %v2563_v5  ;;  %1173 = vmatpush1.bf16.msra.mxu1 %v2565_v6  ;;  %v2630_v1 = vcombine.high %v360_v60, %v364_v61  ;;  %v357_v5 = vld [vmem:[%s4154_s1 + $0x1f0] sm:$0xff]  ;;  %v354_v6 = vld [vmem:[%s4154_s1 + $0x1d8] sm:$0xff]  ;;  %v2629_v10 = vcombine.low %v360_v60, %v364_v61  ;;  %v288_v17 = vld [vmem:[%s3312_s23 + $0x28] sm:$0xff]  ;;  %v2584_v60 = vcombine.high %v313_v51, %v317_v52 }
  0x35   : > { %1121 = vmatprep.subr.bf16.mxu0 %v2684_v7  ;;  %1174 = vmatprep.subr.bf16.mxu1 %v2686_v8  ;;  %v358_v7 = vld [vmem:[%s4154_s1 + $0x1f8] sm:$0xff]  ;;  %v2627_v8 = vcombine.low %v359_v57, %v363_v59  ;;  %v2624_v11 = vcombine.high %v353_v4, %v357_v5  ;;  %v2623_v19 = vcombine.low %v353_v4, %v357_v5  ;;  %v287_v28 = vld [vmem:[%s3312_s23 + $0x20] sm:$0xff]  ;;  %v309_v57 = vld [vmem:[%s4154_s1 + $0x70] sm:$0xff] }
  0x36   : > { %v2625_v20 = vcombine.low %v354_v6, %v358_v7  ;;  %v3473_v26 = vpack.c.bf16 %v290_v18, %v288_v17  ;;  %v306_v61 = vld [vmem:[%s4154_s1 + $0x58] sm:$0xff]  ;;  %v409_v17 = vld [vmem:[%s4154_s1 + $0x390] sm:$0xff] }
  0x37   : > { %v298_v4 = vld [vmem:[%s4154_s1 + $0x18] sm:$0xff]  ;;  %v413_v18 = vld [vmem:[%s4154_s1 + $0x3b0] sm:$0xff] }
  0x38   : > { %1122 = vmatpush2.bf16.msra.mxu0 %v2683_v13  ;;  %1175 = vmatpush2.bf16.msra.mxu1 %v2685_v14  ;;  %v2626_v13 = vcombine.high %v354_v6, %v358_v7  ;;  %v346_v14 = vld [vmem:[%s4154_s1 + $0x198] sm:$0xff] }
  0x39   : > { %1123 = vmatprep.subr.bf16.mxu0 %v2676_v15  ;;  %1176 = vmatprep.subr.bf16.mxu1 %v2678_v16  ;;  %v350_v15 = vld [vmem:[%s4154_s1 + $0x1b8] sm:$0xff]  ;;  %v3460_v16 = vpack.c.bf16 %v285_v3, %v283_v2 }
  0x3a   : > { %v302_v5 = vld [vmem:[%s4154_s1 + $0x38] sm:$0xff] }
  0x3c   : > { %1124 = vmatpush2.bf16.msra.mxu0 %v2675_v21  ;;  %1177 = vmatpush2.bf16.msra.mxu1 %v2677_v22  ;;  %v2616_v21 = vcombine.high %v345_v9, %v349_v12  ;;  %v337_v22 = vld [vmem:[%s4154_s1 + $0x150] sm:$0xff] }
  0x3d   : > { %1125 = vmatprep.subr.bf16.mxu0 %v2668_v23  ;;  %1178 = vmatprep.subr.bf16.mxu1 %v2670_v24  ;;  %v2618_v23 = vcombine.high %v346_v14, %v350_v15  ;;  %v341_v24 = vld [vmem:[%s4154_s1 + $0x170] sm:$0xff] }
  0x40   : > { %1126 = vmatpush2.bf16.msra.mxu0 %v2667_v29  ;;  %1179 = vmatpush2.bf16.msra.mxu1 %v2669_v30  ;;  %v2615_v29 = vcombine.low %v345_v9, %v349_v12  ;;  %v289_v30 = vld [vmem:[%s3312_s23 + $0x30] sm:$0xff]  ;;  %v418_v12 = vld [vmem:[%s4154_s1 + $0x3d8] sm:$0xff] }
  0x41   : > { %1127 = vmatprep.subr.bf16.mxu0 %v2660_v31  ;;  %1180 = vmatprep.subr.bf16.mxu1 %v2662_v32  ;;  %v2617_v31 = vcombine.low %v346_v14, %v350_v15  ;;  %v2608_v32 = vcombine.high %v337_v22, %v341_v24  ;;  %v421_v9 = vld [vmem:[%s4154_s1 + $0x3f0] sm:$0xff]  ;;  %v2570_v14 = vcombine.high %v298_v4, %v302_v5 }
  0x44   : > { %1128 = vmatpush2.bf16.msra.mxu0 %v2659_v37  ;;  %1181 = vmatpush2.bf16.msra.mxu1 %v2661_v38  ;;  %v334_v37 = vld [vmem:[%s4154_s1 + $0x138] sm:$0xff]  ;;  %v3495_v38 = vpack.c.bf16 %v289_v30, %v287_v28 }
  0x45   : > { %1129 = vmatprep.subr.bf16.mxu0 %v2652_v39  ;;  %1182 = vmatprep.subr.bf16.mxu1 %v2654_v40  ;;  %v2607_v39 = vcombine.low %v337_v22, %v341_v24  ;;  %v2609_v40 = vcombine.low %v338_v25, %v342_v27  ;;  %v2602_v42 = vcombine.high %v330_v36, %v334_v37  ;;  %v414_v22 = vld [vmem:[%s4154_s1 + $0x3b8] sm:$0xff]  ;;  %v401_v25 = vld [vmem:[%s4154_s1 + $0x350] sm:$0xff] }
  0x46   : > { %v405_v27 = vld [vmem:[%s4154_s1 + $0x370] sm:$0xff]  ;;  %v402_v30 = vld [vmem:[%s4154_s1 + $0x358] sm:$0xff] }
  0x48   : > { %1130 = vmatpush2.bf16.msra.mxu0 %v2651_v45  ;;  %1183 = vmatpush2.bf16.msra.mxu1 %v2653_v46  ;;  %v322_v45 = vld [vmem:[%s4154_s1 + $0xd8] sm:$0xff] }
  0x49   : > { %1131 = vmatprep.subr.bf16.mxu0 %v2644_v47  ;;  %1184 = vmatprep.subr.bf16.mxu1 %v2646_v48  ;;  %v326_v46 = vld [vmem:[%s4154_s1 + $0xf8] sm:$0xff]  ;;  %v2599_v47 = vcombine.low %v329_v34, %v333_v35  ;;  %v2601_v48 = vcombine.low %v330_v36, %v334_v37  ;;  %v393_v34 = vld [vmem:[%s4154_s1 + $0x310] sm:$0xff]  ;;  %v2672_v37 = vcombine.high %v401_v25, %v405_v27 }
  0x4a   : > { %v2594_v50 = vcombine.high %v322_v45, %v326_v46  ;;  %v2593_v59 = vcombine.low %v322_v45, %v326_v46  ;;  %v397_v35 = vld [vmem:[%s4154_s1 + $0x330] sm:$0xff] }
  0x4b   : > { %v385_v46 = vld [vmem:[%s4154_s1 + $0x2d0] sm:$0xff] }
  0x4c   : > { %1132 = vmatpush2.bf16.msra.mxu0 %v2643_v53  ;;  %1185 = vmatpush2.bf16.msra.mxu1 %v2645_v54  ;;  %v314_v53 = vld [vmem:[%s4154_s1 + $0x98] sm:$0xff] }
  0x4d   : > { %1133 = vmatprep.subr.bf16.mxu0 %v2636_v55  ;;  %1186 = vmatprep.subr.bf16.mxu1 %v2638_v56  ;;  %v318_v54 = vld [vmem:[%s4154_s1 + $0xb8] sm:$0xff]  ;;  %v2591_v55 = vcombine.low %v321_v43, %v325_v44  ;;  %v305_v56 = vld [vmem:[%s4154_s1 + $0x50] sm:$0xff]  ;;  %v2664_v44 = vcombine.high %v393_v34, %v397_v35 }
  0x4e   : > { %v2585_v2 = vcombine.low %v314_v53, %v318_v54  ;;  %v2576_v3 = vcombine.high %v305_v56, %v309_v57  ;;  %v2575_v7 = vcombine.low %v305_v56, %v309_v57  ;;  %v378_v56 = vld [vmem:[%s4154_s1 + $0x298] sm:$0xff] }
  0x4f   : > { %v382_v57 = vld [vmem:[%s4154_s1 + $0x2b8] sm:$0xff] }
  0x50   : > { %1134 = vmatpush2.bf16.msra.mxu0 %v2635_v62  ;;  %1187 = vmatpush2.bf16.msra.mxu1 %v2637_v63  ;;  %v2586_v62 = vcombine.high %v314_v53, %v318_v54  ;;  %v2583_v63 = vcombine.low %v313_v51, %v317_v52  ;;  %v377_v54 = vld [vmem:[%s4154_s1 + $0x290] sm:$0xff] }
  0x51   : > { %1135 = vmatprep.subr.bf16.mxu0 %v2628_v0  ;;  %1188 = vmatprep.subr.bf16.mxu1 %v2630_v1  ;;  %v297_v0 = vld [vmem:[%s4154_s1 + $0x10] sm:$0xff] }
  0x52   : > { %v301_v1 = vld [vmem:[%s4154_s1 + $0x30] sm:$0xff] }
  0x53   : > { %v2567_v15 = vcombine.low %v297_v0, %v301_v1 }
  0x54   : > { %1136 = vmatpush2.bf16.msra.mxu0 %v2627_v8  ;;  %1189 = vmatpush2.bf16.msra.mxu1 %v2629_v10  ;;  %v417_v8 = vld [vmem:[%s4154_s1 + $0x3d0] sm:$0xff] }
  0x55   : > { %1211 = vmatprep.subr.bf16.mxu0 %v2624_v11  ;;  %1264 = vmatprep.subr.bf16.mxu1 %v2626_v13  ;;  %v2568_v11 = vcombine.high %v297_v0, %v301_v1  ;;  %v422_v13 = vld [vmem:[%s4154_s1 + $0x3f8] sm:$0xff]  ;;  %v2687_v24 = vcombine.low %v417_v8, %v421_v9 }
  0x56   : > { %v2689_v28 = vcombine.low %v418_v12, %v422_v13  ;;  %v370_v0 = vld [vmem:[%s4154_s1 + $0x258] sm:$0xff] }
  0x57   : > { %1138 = vmatmul.mubr.bf16.vlgmr.msra.gmra.mxu0 %v3460_v16  ;;  %1191 = vmatmul.mubr.bf16.vlgmr.msra.gmra.mxu1 %v3460_v16  ;;  %v374_v1 = vld [vmem:[%s4154_s1 + $0x278] sm:$0xff] }
  0x58   : > { %1212 = vmatpush1.bf16.msra.mxu0 %v2623_v19  ;;  %1265 = vmatpush1.bf16.msra.mxu1 %v2625_v20  ;;  %v2569_v19 = vcombine.low %v298_v4, %v302_v5  ;;  %v2688_v20 = vcombine.high %v417_v8, %v421_v9  ;;  %v2642_v5 = vcombine.high %v370_v0, %v374_v1  ;;  %v362_v8 = vld [vmem:[%s4154_s1 + $0x218] sm:$0xff] }
  0x59   : > { %1213 = vmatprep.subr.bf16.mxu0 %v2616_v21  ;;  %1266 = vmatprep.subr.bf16.mxu1 %v2618_v23  ;;  %v410_v21 = vld [vmem:[%s4154_s1 + $0x398] sm:$0xff]  ;;  %v2690_v23 = vcombine.high %v418_v12, %v422_v13 }
  0x5a   : > { %1147 = vmatprep.mubr.bf16.mxu0 %v3473_v26  ;;  %1200 = vmatprep.mubr.bf16.mxu1 %v3473_v26  ;;  %v2681_v36 = vcombine.low %v410_v21, %v414_v22  ;;  %v366_v9 = vld [vmem:[%s4154_s1 + $0x238] sm:$0xff] }
  0x5b   : > { %v2634_v13 = vcombine.high %v362_v8, %v366_v9 }
  0x5c   : > { %1214 = vmatpush1.bf16.msra.mxu0 %v2615_v29  ;;  %1267 = vmatpush1.bf16.msra.mxu1 %v2617_v31  ;;  %v2680_v29 = vcombine.high %v409_v17, %v413_v18  ;;  %v406_v31 = vld [vmem:[%s4154_s1 + $0x378] sm:$0xff] }
  0x5d   : > { %1215 = vmatprep.subr.bf16.mxu0 %v2608_v32  ;;  %1268 = vmatprep.subr.bf16.mxu1 %v2610_v33  ;;  %v2682_v32 = vcombine.high %v410_v21, %v414_v22  ;;  %v2679_v33 = vcombine.low %v409_v17, %v413_v18  ;;  %v2673_v43 = vcombine.low %v402_v30, %v406_v31  ;;  %v2871_v17 = vld [vmem:[%s4156_s3 + $0x74] ss:$8 sps:$4 sm:$0xff]   ;;  %v2877_v21 = vld [vmem:[%s4156_s3 + $0x64] ss:$8 sps:$4 sm:$0xff]  }
  0x5e   : > { %v2874_v18 = vld [vmem:[%s4156_s3 + $0x174] ss:$8 sps:$4 sm:$0xff]   ;;  %v2880_v22 = vld [vmem:[%s4156_s3 + $0x164] ss:$8 sps:$4 sm:$0xff]  }
  0x5f   : > { %1148 = vmatmul.mubr.bf16.gmra.mxu0 %v3495_v38  ;;  %1201 = vmatmul.mubr.bf16.gmra.mxu1 %v3495_v38 }
  0x60   : > { %1216 = vmatpush1.bf16.msra.mxu0 %v2607_v39  ;;  %1269 = vmatpush1.bf16.msra.mxu1 %v2609_v40  ;;  %v394_v39 = vld [vmem:[%s4154_s1 + $0x318] sm:$0xff] }
  0x61   : > { %1217 = vmatprep.subr.bf16.mxu0 %v2600_v41  ;;  %1270 = vmatprep.subr.bf16.mxu1 %v2602_v42  ;;  %v398_v40 = vld [vmem:[%s4154_s1 + $0x338] sm:$0xff]  ;;  %v2674_v41 = vcombine.high %v402_v30, %v406_v31  ;;  %v2671_v42 = vcombine.low %v401_v25, %v405_v27  ;;  %v2887_v30 = vld [vmem:[%s4156_s3 + $0x40] ss:$8 sps:$4 sm:$0xff]  }
  0x62   : > { %1243 = vmatprep.mubr.bf16.mxu0 %v3328_v58  ;;  %1296 = vmatprep.mubr.bf16.mxu1 %v3328_v58  ;;  %v310_v58 = vld [vmem:[%s4154_s1 + $0x78] sm:$0xff]  ;;  %v2666_v45 = vcombine.high %v394_v39, %v398_v40  ;;  %v2665_v51 = vcombine.low %v394_v39, %v398_v40  ;;  %v2890_v31 = vld [vmem:[%s4156_s3 + $0x140] ss:$8 sps:$4 sm:$0xff]  }
  0x63   : > { %v2578_v6 = vcombine.high %v306_v61, %v310_v58  ;;  %v2577_v10 = vcombine.low %v306_v61, %v310_v58  ;;  %v2650_v58 = vcombine.high %v378_v56, %v382_v57  ;;  %v2883_v25 = vld [vmem:[%s4156_s3 + $0x54] ss:$8 sps:$4 sm:$0xff]   ;;  %v2884_v27 = vld [vmem:[%s4156_s3 + $0x150] ss:$8 sps:$4 sm:$0xff]   ;;  %v2902_v39 = vld [vmem:[%s4156_s3 + $0x120] ss:$8 sps:$4 sm:$0xff]  }
  0x64   : > { %1218 = vmatpush1.bf16.msra.mxu0 %v2599_v47  ;;  %1271 = vmatpush1.bf16.msra.mxu1 %v2601_v48  ;;  %v389_v47 = vld [vmem:[%s4154_s1 + $0x2f0] sm:$0xff]  ;;  %v386_v48 = vld [vmem:[%s4154_s1 + $0x2d8] sm:$0xff] }
  0x65   : > { %1219 = vmatprep.subr.bf16.mxu0 %v2592_v49  ;;  %1272 = vmatprep.subr.bf16.mxu1 %v2594_v50  ;;  %v390_v49 = vld [vmem:[%s4154_s1 + $0x2f8] sm:$0xff]  ;;  %v2663_v50 = vcombine.low %v393_v34, %v397_v35  ;;  %v2656_v52 = vcombine.high %v385_v46, %v389_v47  ;;  %v2901_v35 = vld [vmem:[%s4156_s3 + $0x24] ss:$8 sps:$4 sm:$0xff]  }
  0x66   : > { %v2658_v53 = vcombine.high %v386_v48, %v390_v49  ;;  %v2896_v34 = vld [vmem:[%s4156_s3 + $0x130] ss:$8 sps:$4 sm:$0xff]   ;;  %v2907_v40 = vld [vmem:[%s4156_s3 + $0x14] ss:$8 sps:$4 sm:$0xff]  }
  0x68   : > { %1220 = vmatpush1.bf16.msra.mxu0 %v2591_v55  ;;  %1273 = vmatpush1.bf16.msra.mxu1 %v2593_v59  ;;  %v381_v55 = vld [vmem:[%s4154_s1 + $0x2b0] sm:$0xff]  ;;  %v2655_v59 = vcombine.low %v385_v46, %v389_v47  ;;  %v2911_v46 = vld [vmem:[%s4156_s3] ss:$8 sps:$4 sm:$0xff]  }
  0x69   : > { %1221 = vmatprep.subr.bf16.mxu0 %v2584_v60  ;;  %1274 = vmatprep.subr.bf16.mxu1 %v2586_v62  ;;  %v2657_v60 = vcombine.low %v386_v48, %v390_v49  ;;  %v2648_v61 = vcombine.high %v377_v54, %v381_v55  ;;  %v369_v62 = vld [vmem:[%s4154_s1 + $0x250] sm:$0xff]  ;;  %v2914_v47 = vld [vmem:[%s4156_s3 + $0x100] ss:$8 sps:$4 sm:$0xff]  }
  0x6a   : > { %v2919_v48 = vld [vmem:[%s4156_s3 + $0xf4] ss:$8 sps:$4 sm:$0xff]  }
  0x6b   : > { %v2922_v49 = vld [vmem:[%s4156_s3 + $0x1f4] ss:$8 sps:$4 sm:$0xff]  }
  0x6c   : > { %1222 = vmatpush1.bf16.msra.mxu0 %v2583_v63  ;;  %1275 = vmatpush1.bf16.msra.mxu1 %v2585_v2  ;;  %v373_v63 = vld [vmem:[%s4154_s1 + $0x270] sm:$0xff]  ;;  %v2647_v2 = vcombine.low %v377_v54, %v381_v55  ;;  %v2923_v54 = vld [vmem:[%s4156_s3 + $0xe0] ss:$8 sps:$4 sm:$0xff]  }
  0x6d   : > { %1223 = vmatprep.subr.bf16.mxu0 %v2576_v3  ;;  %1276 = vmatprep.subr.bf16.mxu1 %v2578_v6  ;;  %v2649_v3 = vcombine.low %v378_v56, %v382_v57  ;;  %v2640_v4 = vcombine.high %v369_v62, %v373_v63  ;;  %v361_v6 = vld [vmem:[%s4154_s1 + $0x210] sm:$0xff]  ;;  %v2926_v55 = vld [vmem:[%s4156_s3 + $0x1e0] ss:$8 sps:$4 sm:$0xff]  }
  0x6e   : > { %v2931_v56 = vld [vmem:[%s4156_s3 + $0xd4] ss:$8 sps:$4 sm:$0xff]  }
  0x6f   : > { %v2934_v57 = vld [vmem:[%s4156_s3 + $0x1d4] ss:$8 sps:$4 sm:$0xff]  }
  0x70   : > { %1224 = vmatpush1.bf16.msra.mxu0 %v2575_v7  ;;  %1277 = vmatpush1.bf16.msra.mxu1 %v2577_v10  ;;  %v365_v7 = vld [vmem:[%s4154_s1 + $0x230] sm:$0xff]  ;;  %v2639_v10 = vcombine.low %v369_v62, %v373_v63  ;;  %v2935_v62 = vld [vmem:[%s4156_s3 + $0xc0] ss:$8 sps:$4 sm:$0xff]  }
  0x71   : > { %1225 = vmatprep.subr.bf16.mxu0 %v2568_v11  ;;  %1278 = vmatprep.subr.bf16.mxu1 %v2570_v14  ;;  %v2641_v11 = vcombine.low %v370_v0, %v374_v1  ;;  %v2632_v12 = vcombine.high %v361_v6, %v365_v7  ;;  %v2631_v14 = vcombine.low %v361_v6, %v365_v7  ;;  %v2938_v63 = vld [vmem:[%s4156_s3 + $0x1c0] ss:$8 sps:$4 sm:$0xff]   ;;  %v2943_v0 = vld [vmem:[%s4156_s3 + $0xb4] ss:$8 sps:$4 sm:$0xff]  }
  0x72   : > { %v2946_v1 = vld [vmem:[%s4156_s3 + $0x1b4] ss:$8 sps:$4 sm:$0xff]   ;;  %v2947_v6 = vld [vmem:[%s4156_s3 + $0xa0] ss:$8 sps:$4 sm:$0xff]  }
  0x73   : > { %v2950_v7 = vld [vmem:[%s4156_s3 + $0x1a0] ss:$8 sps:$4 sm:$0xff]  }
  0x74   : > { %1226 = vmatpush1.bf16.msra.mxu0 %v2567_v15  ;;  %1279 = vmatpush1.bf16.msra.mxu1 %v2569_v19  ;;  %v2633_v15 = vcombine.low %v362_v8, %v366_v9  ;;  %v2869_v19 = vld [vmem:[%s4156_s3 + $0x70] ss:$8 sps:$4 sm:$0xff]   ;;  %v2955_v8 = vld [vmem:[%s4156_s3 + $0x94] ss:$8 sps:$4 sm:$0xff]  }
  0x75   : > { %1227 = vmatprep.subr.bf16.mxu0 %v2688_v20  ;;  %1280 = vmatprep.subr.bf16.mxu1 %v2690_v23  ;;  %v2872_v20 = vld [vmem:[%s4156_s3 + $0x170] ss:$8 sps:$4 sm:$0xff]   ;;  %v2875_v23 = vld [vmem:[%s4156_s3 + $0x60] ss:$8 sps:$4 sm:$0xff]   ;;  %v2958_v9 = vld [vmem:[%s4156_s3 + $0x194] ss:$8 sps:$4 sm:$0xff]  }
  0x78   : > { %1228 = vmatpush2.bf16.msra.mxu0 %v2687_v24  ;;  %1281 = vmatpush2.bf16.msra.mxu1 %v2689_v28  ;;  %v2878_v24 = vld [vmem:[%s4156_s3 + $0x160] ss:$8 sps:$4 sm:$0xff]   ;;  %v2889_v28 = vld [vmem:[%s4156_s3 + $0x44] ss:$8 sps:$4 sm:$0xff]  }
  0x79   : > { %1229 = vmatprep.subr.bf16.mxu0 %v2680_v29  ;;  %1282 = vmatprep.subr.bf16.mxu1 %v2682_v32  ;;  %v2892_v29 = vld [vmem:[%s4156_s3 + $0x144] ss:$8 sps:$4 sm:$0xff]   ;;  %v2895_v32 = vld [vmem:[%s4156_s3 + $0x34] ss:$8 sps:$4 sm:$0xff]  }
  0x7c   : > { %1230 = vmatpush2.bf16.msra.mxu0 %v2679_v33  ;;  %1283 = vmatpush2.bf16.msra.mxu1 %v2681_v36  ;;  %v2893_v33 = vld [vmem:[%s4156_s3 + $0x30] ss:$8 sps:$4 sm:$0xff]   ;;  %v2904_v36 = vld [vmem:[%s4156_s3 + $0x124] ss:$8 sps:$4 sm:$0xff]  }
  0x7d   : > { %1231 = vmatprep.subr.bf16.mxu0 %v2672_v37  ;;  %1284 = vmatprep.subr.bf16.mxu1 %v2674_v41  ;;  %v2899_v37 = vld [vmem:[%s4156_s3 + $0x20] ss:$8 sps:$4 sm:$0xff]   ;;  %v2910_v41 = vld [vmem:[%s4156_s3 + $0x114] ss:$8 sps:$4 sm:$0xff]  }
  0x80   : > { %1232 = vmatpush2.bf16.msra.mxu0 %v2671_v42  ;;  %1285 = vmatpush2.bf16.msra.mxu1 %v2673_v43  ;;  %v2905_v42 = vld [vmem:[%s4156_s3 + $0x10] ss:$8 sps:$4 sm:$0xff]  }
  0x81   : > { %1233 = vmatprep.subr.bf16.mxu0 %v2664_v44  ;;  %1286 = vmatprep.subr.bf16.mxu1 %v2666_v45  ;;  %v2908_v43 = vld [vmem:[%s4156_s3 + $0x110] ss:$8 sps:$4 sm:$0xff]   ;;  %v2913_v44 = vld [vmem:[%s4156_s3 + $0x4] ss:$8 sps:$4 sm:$0xff]  }
  0x82   : > { %v2916_v45 = vld [vmem:[%s4156_s3 + $0x104] ss:$8 sps:$4 sm:$0xff]  }
  0x84   : > { %1234 = vmatpush2.bf16.msra.mxu0 %v2663_v50  ;;  %1287 = vmatpush2.bf16.msra.mxu1 %v2665_v51  ;;  %v2917_v50 = vld [vmem:[%s4156_s3 + $0xf0] ss:$8 sps:$4 sm:$0xff]  }
  0x85   : > { %1235 = vmatprep.subr.bf16.mxu0 %v2656_v52  ;;  %1288 = vmatprep.subr.bf16.mxu1 %v2658_v53  ;;  %v2920_v51 = vld [vmem:[%s4156_s3 + $0x1f0] ss:$8 sps:$4 sm:$0xff]   ;;  %v2925_v52 = vld [vmem:[%s4156_s3 + $0xe4] ss:$8 sps:$4 sm:$0xff]  }
  0x86   : > { %v2928_v53 = vld [vmem:[%s4156_s3 + $0x1e4] ss:$8 sps:$4 sm:$0xff]  }
  0x88   : > { %1236 = vmatpush2.bf16.msra.mxu0 %v2655_v59  ;;  %1289 = vmatpush2.bf16.msra.mxu1 %v2657_v60  ;;  %v2929_v59 = vld [vmem:[%s4156_s3 + $0xd0] ss:$8 sps:$4 sm:$0xff]  }
  0x89   : > { %1237 = vmatprep.subr.bf16.mxu0 %v2648_v61  ;;  %1290 = vmatprep.subr.bf16.mxu1 %v2650_v58  ;;  %v2932_v60 = vld [vmem:[%s4156_s3 + $0x1d0] ss:$8 sps:$4 sm:$0xff]   ;;  %v2937_v61 = vld [vmem:[%s4156_s3 + $0xc4] ss:$8 sps:$4 sm:$0xff]  }
  0x8a   : > { %v2940_v58 = vld [vmem:[%s4156_s3 + $0x1c4] ss:$8 sps:$4 sm:$0xff]  }
  0x8c   : > { %1238 = vmatpush2.bf16.msra.mxu0 %v2647_v2  ;;  %1291 = vmatpush2.bf16.msra.mxu1 %v2649_v3  ;;  %v2941_v2 = vld [vmem:[%s4156_s3 + $0xb0] ss:$8 sps:$4 sm:$0xff]  }
  0x8d   : > { %1239 = vmatprep.subr.bf16.mxu0 %v2640_v4  ;;  %1292 = vmatprep.subr.bf16.mxu1 %v2642_v5  ;;  %v2944_v3 = vld [vmem:[%s4156_s3 + $0x1b0] ss:$8 sps:$4 sm:$0xff]   ;;  %v2949_v4 = vld [vmem:[%s4156_s3 + $0xa4] ss:$8 sps:$4 sm:$0xff]  }
  0x8e   : > { %v2952_v5 = vld [vmem:[%s4156_s3 + $0x1a4] ss:$8 sps:$4 sm:$0xff]  }
  0x90   : > { %1240 = vmatpush2.bf16.msra.mxu0 %v2639_v10  ;;  %1293 = vmatpush2.bf16.msra.mxu1 %v2641_v11  ;;  %v2953_v10 = vld [vmem:[%s4156_s3 + $0x90] ss:$8 sps:$4 sm:$0xff]  }
  0x91   : > { %1241 = vmatprep.subr.bf16.mxu0 %v2632_v12  ;;  %1294 = vmatprep.subr.bf16.mxu1 %v2634_v13  ;;  %v2956_v11 = vld [vmem:[%s4156_s3 + $0x190] ss:$8 sps:$4 sm:$0xff]   ;;  %v2961_v12 = vld [vmem:[%s4156_s3 + $0x84] ss:$8 sps:$4 sm:$0xff]  }
  0x92   : > { %v2964_v13 = vld [vmem:[%s4156_s3 + $0x184] ss:$8 sps:$4 sm:$0xff]  }
  0x94   : > { %1242 = vmatpush2.bf16.msra.mxu0 %v2631_v14  ;;  %1295 = vmatpush2.bf16.msra.mxu1 %v2633_v15  ;;  %v2959_v14 = vld [vmem:[%s4156_s3 + $0x80] ss:$8 sps:$4 sm:$0xff]  }
  0x95   : > { %2145 = vmatprep.subr.bf16.mxu0 %v2871_v17  ;;  %2198 = vmatprep.subr.bf16.mxu1 %v2874_v18  ;;  %v2962_v15 = vld [vmem:[%s4156_s3 + $0x180] ss:$8 sps:$4 sm:$0xff]   ;;  %v2967_v17 = vld [vmem:[%s4156_s3 + $0x274] ss:$8 sps:$4 sm:$0xff]  }
  0x96   : > { %v2970_v18 = vld [vmem:[%s4156_s3 + $0x374] ss:$8 sps:$4 sm:$0xff]  }
  0x97   : > { %1244 = vmatmul.mubr.bf16.vlgmr.msra.gmra.mxu0 %v3460_v16  ;;  %1297 = vmatmul.mubr.bf16.vlgmr.msra.gmra.mxu1 %v3460_v16  ;;  %v2886_v16 = vld [vmem:[%s4156_s3 + $0x154] ss:$8 sps:$4 sm:$0xff]  }
  0x98   : > { %1253 = vmatprep.mubr.bf16.mxu0 %v3473_v26  ;;  %1306 = vmatprep.mubr.bf16.mxu1 %v3473_v26  ;;  %v2881_v26 = vld [vmem:[%s4156_s3 + $0x50] ss:$8 sps:$4 sm:$0xff]  }
  0x99   : > { %2146 = vmatpush1.bf16.msra.mxu0 %v2869_v19  ;;  %2199 = vmatpush1.bf16.msra.mxu1 %v2872_v20  ;;  %v425_v19 = vlaneseq }
  0x9a   : > { %2147 = vmatprep.subr.bf16.mxu0 %v2877_v21  ;;  %2200 = vmatprep.subr.bf16.mxu1 %v2880_v22 }
  0x9b   : > { %v3850_v20 = vshrl.u32 %v425_v19, 7  ;;  %v2979_v19 = vld [vmem:[%s4156_s3 + $0x254] ss:$8 sps:$4 sm:$0xff]  }
  0x9d   : > { %2148 = vmatpush1.bf16.msra.mxu0 %v2875_v23  ;;  %2201 = vmatpush1.bf16.msra.mxu1 %v2878_v24  ;;  %v435_v21 = vsub.s32 2, %v3850_v20  ;;  %v3854_v22 = vsub.s32 1, %v3850_v20  ;;  %v3859_v23 = vld [vmem:[%s4155_s2] sm:$0xff]  ;;  %v3862_v24 = vsub.s32 0, %v3850_v20 }
  0x9e   : > { %2149 = vmatprep.subr.bf16.mxu0 %v2883_v25  ;;  %2202 = vmatprep.subr.bf16.mxu1 %v2886_v16  ;;  %v439_v25 = vsub.s32 3, %v3850_v20 }
  0x9f   : > { %1254 = vmatmul.mubr.bf16.gmra.mxu0 %v3495_v38  ;;  %1307 = vmatmul.mubr.bf16.gmra.mxu1 %v3495_v38  ;;  %v2898_v38 = vld [vmem:[%s4156_s3 + $0x134] ss:$8 sps:$4 sm:$0xff]  }
  0xa1   : > { %2150 = vmatpush1.bf16.msra.mxu0 %v2881_v26  ;;  %2203 = vmatpush1.bf16.msra.mxu1 %v2884_v27  ;;  %v436_v26 = vrot.slane %v3859_v23, %v435_v21 }
  0xa2   : > { %2151 = vmatprep.subr.bf16.mxu0 %v2889_v28  ;;  %2204 = vmatprep.subr.bf16.mxu1 %v2892_v29  ;;  %v432_v28 = vrot.slane %v3859_v23, %v3854_v22  ;;  %v428_v29 = vrot.slane %v3859_v23, %v3862_v24 }
  0xa5   : > { %2152 = vmatpush1.bf16.msra.mxu0 %v2887_v30  ;;  %2205 = vmatpush1.bf16.msra.mxu1 %v2890_v31  ;;  %v440_v31 = vrot.slane %v3859_v23, %v439_v25 }
  0xa6   : > { %2153 = vmatprep.subr.bf16.mxu0 %v2895_v32  ;;  %2206 = vmatprep.subr.bf16.mxu1 %v2898_v38 }
  0xa9   : > { %2154 = vmatpush1.bf16.msra.mxu0 %v2893_v33  ;;  %2207 = vmatpush1.bf16.msra.mxu1 %v2896_v34 }
  0xaa   : > { %2155 = vmatprep.subr.bf16.mxu0 %v2901_v35  ;;  %2208 = vmatprep.subr.bf16.mxu1 %v2904_v36 }
  0xad   : > { %2156 = vmatpush1.bf16.msra.mxu0 %v2899_v37  ;;  %2209 = vmatpush1.bf16.msra.mxu1 %v2902_v39 }
  0xae   : > { %2157 = vmatprep.subr.bf16.mxu0 %v2907_v40  ;;  %2210 = vmatprep.subr.bf16.mxu1 %v2910_v41 }
  0xb1   : > { %2158 = vmatpush1.bf16.msra.mxu0 %v2905_v42  ;;  %2211 = vmatpush1.bf16.msra.mxu1 %v2908_v43 }
  0xb2   : > { %2159 = vmatprep.subr.bf16.mxu0 %v2913_v44  ;;  %2212 = vmatprep.subr.bf16.mxu1 %v2916_v45 }
  0xb5   : > { %2160 = vmatpush1.bf16.msra.mxu0 %v2911_v46  ;;  %2213 = vmatpush1.bf16.msra.mxu1 %v2914_v47 }
  0xb6   : > { %2161 = vmatprep.subr.bf16.mxu0 %v2919_v48  ;;  %2214 = vmatprep.subr.bf16.mxu1 %v2922_v49 }
  0xb9   : > { %2162 = vmatpush2.bf16.msra.mxu0 %v2917_v50  ;;  %2215 = vmatpush2.bf16.msra.mxu1 %v2920_v51 }
  0xba   : > { %2163 = vmatprep.subr.bf16.mxu0 %v2925_v52  ;;  %2216 = vmatprep.subr.bf16.mxu1 %v2928_v53 }
  0xbd   : > { %2164 = vmatpush2.bf16.msra.mxu0 %v2923_v54  ;;  %2217 = vmatpush2.bf16.msra.mxu1 %v2926_v55 }
  0xbe   : > { %2165 = vmatprep.subr.bf16.mxu0 %v2931_v56  ;;  %2218 = vmatprep.subr.bf16.mxu1 %v2934_v57 }
  0xc1   : > { %2166 = vmatpush2.bf16.msra.mxu0 %v2929_v59  ;;  %2219 = vmatpush2.bf16.msra.mxu1 %v2932_v60  ;;  %v2965_v59 = vld [vmem:[%s4156_s3 + $0x270] ss:$8 sps:$4 sm:$0xff]  }
  0xc2   : > { %2167 = vmatprep.subr.bf16.mxu0 %v2937_v61  ;;  %2220 = vmatprep.subr.bf16.mxu1 %v2940_v58 }
  0xc5   : > { %2168 = vmatpush2.bf16.msra.mxu0 %v2935_v62  ;;  %2221 = vmatpush2.bf16.msra.mxu1 %v2938_v63 }
  0xc6   : > { %2169 = vmatprep.subr.bf16.mxu0 %v2943_v0  ;;  %2222 = vmatprep.subr.bf16.mxu1 %v2946_v1  ;;  %v2968_v0 = vld [vmem:[%s4156_s3 + $0x370] ss:$8 sps:$4 sm:$0xff]   ;;  %v2973_v1 = vld [vmem:[%s4156_s3 + $0x264] ss:$8 sps:$4 sm:$0xff]  }
  0xc9   : > { %2170 = vmatpush2.bf16.msra.mxu0 %v2941_v2  ;;  %2223 = vmatpush2.bf16.msra.mxu1 %v2944_v3 }
  0xca   : > { %2171 = vmatprep.subr.bf16.mxu0 %v2949_v4  ;;  %2224 = vmatprep.subr.bf16.mxu1 %v2952_v5  ;;  %v2976_v5 = vld [vmem:[%s4156_s3 + $0x364] ss:$8 sps:$4 sm:$0xff]  }
  0xcd   : > { %2172 = vmatpush2.bf16.msra.mxu0 %v2947_v6  ;;  %2225 = vmatpush2.bf16.msra.mxu1 %v2950_v7 }
  0xce   : > { %2173 = vmatprep.subr.bf16.mxu0 %v2955_v8  ;;  %2226 = vmatprep.subr.bf16.mxu1 %v2958_v9 }
  0xd1   : > { %2174 = vmatpush2.bf16.msra.mxu0 %v2953_v10  ;;  %2227 = vmatpush2.bf16.msra.mxu1 %v2956_v11  ;;  %v2971_v11 = vld [vmem:[%s4156_s3 + $0x260] ss:$8 sps:$4 sm:$0xff]  }
  0xd2   : > { %2175 = vmatprep.subr.bf16.mxu0 %v2961_v12  ;;  %2228 = vmatprep.subr.bf16.mxu1 %v2964_v13 }
  0xd5   : > { %2176 = vmatpush2.bf16.msra.mxu0 %v2959_v14  ;;  %2229 = vmatpush2.bf16.msra.mxu1 %v2962_v15 }
  0xd6   : > { %2251 = vmatprep.subr.bf16.mxu0 %v2967_v17  ;;  %2304 = vmatprep.subr.bf16.mxu1 %v2970_v18  ;;  %v2974_v18 = vld [vmem:[%s4156_s3 + $0x360] ss:$8 sps:$4 sm:$0xff]  }
 0x117   : > { %v1139_v16 = vpop.f32.mrf.mxu0  ;;  %v1192_v27 = vpop.f32.mrf.mxu1 }
 0x118   : > { %v1193_v33 = vadd.f32 %v1192_v27, %v436_v26  ;;  %v1140_v37 = vadd.f32 %v1139_v16, %v428_v29 }
 0x119   : > { %v1141_v30 = vpop.f32.mrf.mxu0  ;;  %v1194_v32 = vpop.f32.mrf.mxu1 }
 0x11a   : > { %v1142_v34 = vadd.f32 %v1141_v30, %v432_v28  ;;  %v1195_v39 = vadd.f32 %v1194_v32, %v440_v31  ;;  %v1319_v47 = vmax.f32 %v1193_v33, 0.0  ;;  %v1317_v52 = vmax.f32 %v1140_v37, 0.0  ;;  %v2977_v30 = vld [vmem:[%s4156_s3 + $0x250] ss:$8 sps:$4 sm:$0xff]   ;;  %v2985_v33 = vld [vmem:[%s4156_s3 + $0x244] ss:$8 sps:$4 sm:$0xff]  }
 0x11b   : > { %v1143_v38 = vpop.f32.mrf.mxu0  ;;  %v1196_v36 = vpop.f32.mrf.mxu1  ;;  %v2986_v37 = vld [vmem:[%s4156_s3 + $0x340] ss:$8 sps:$4 sm:$0xff]  }
 0x11c   : > { %v1144_v35 = vadd.f32 %v1143_v38, %v428_v29  ;;  %v1197_v40 = vadd.f32 %v1196_v36, %v436_v26  ;;  %v1318_v48 = vmax.f32 %v1142_v34, 0.0  ;;  %v1320_v53 = vmax.f32 %v1195_v39, 0.0  ;;  %v2983_v36 = vld [vmem:[%s4156_s3 + $0x240] ss:$8 sps:$4 sm:$0xff]   ;;  %v2991_v39 = vld [vmem:[%s4156_s3 + $0x234] ss:$8 sps:$4 sm:$0xff]  }
 0x11d   : > { %v1145_v41 = vpop.f32.mrf.mxu0  ;;  %v1198_v43 = vpop.f32.mrf.mxu1 }
 0x11e   : > { %v1146_v42 = vadd.f32 %v1145_v41, %v432_v28  ;;  %v1325_v44 = vmax.f32 %v1144_v35, 0.0  ;;  %v1199_v45 = vadd.f32 %v1198_v43, %v440_v31  ;;  %v1327_v49 = vmax.f32 %v1197_v40, 0.0  ;;  %v2988_v35 = vld [vmem:[%s4156_s3 + $0x344] ss:$8 sps:$4 sm:$0xff]   ;;  %v2994_v40 = vld [vmem:[%s4156_s3 + $0x334] ss:$8 sps:$4 sm:$0xff]  }
 0x11f   : > { %v1149_v46 = vpop.f32.mrf.mxu0  ;;  %v1202_v51 = vpop.f32.mrf.mxu1  ;;  %v2989_v41 = vld [vmem:[%s4156_s3 + $0x230] ss:$8 sps:$4 sm:$0xff]   ;;  %v2997_v43 = vld [vmem:[%s4156_s3 + $0x224] ss:$8 sps:$4 sm:$0xff]  }
 0x120   : > { %v1326_v50 = vmax.f32 %v1146_v42, 0.0  ;;  %v1328_v54 = vmax.f32 %v1199_v45, 0.0  ;;  %v1150_v55 = vadd.f32 %v1149_v46, %v428_v29  ;;  %v1203_v61 = vadd.f32 %v1202_v51, %v436_v26  ;;  %v2992_v42 = vld [vmem:[%s4156_s3 + $0x330] ss:$8 sps:$4 sm:$0xff]   ;;  %v2995_v45 = vld [vmem:[%s4156_s3 + $0x220] ss:$8 sps:$4 sm:$0xff]  }
 0x121   : > { %v1151_v56 = vpop.f32.mrf.mxu0  ;;  %v1204_v58 = vpop.f32.mrf.mxu1  ;;  %v1349_v62 = vpack.c.bf16 %v1325_v44, %v1317_v52  ;;  %v1351_v4 = vpack.c.bf16 %v1327_v49, %v1319_v47  ;;  %v3000_v44 = vld [vmem:[%s4156_s3 + $0x324] ss:$8 sps:$4 sm:$0xff]   ;;  %v2998_v46 = vld [vmem:[%s4156_s3 + $0x320] ss:$8 sps:$4 sm:$0xff]   ;;  %v3003_v47 = vld [vmem:[%s4156_s3 + $0x214] ss:$8 sps:$4 sm:$0xff]  }
 0x122   : > { %v1350_v57 = vpack.c.bf16 %v1326_v50, %v1318_v48  ;;  %v1152_v60 = vadd.f32 %v1151_v56, %v432_v28  ;;  %v1352_v63 = vpack.c.bf16 %v1328_v54, %v1320_v53  ;;  %v1205_v3 = vadd.f32 %v1204_v58, %v440_v31  ;;  %v3006_v48 = vld [vmem:[%s4156_s3 + $0x314] ss:$8 sps:$4 sm:$0xff]   ;;  %v3001_v49 = vld [vmem:[%s4156_s3 + $0x210] ss:$8 sps:$4 sm:$0xff]   ;;  %v3009_v51 = vld [vmem:[%s4156_s3 + $0x204] ss:$8 sps:$4 sm:$0xff]  }
 0x123   : > { %v1153_v2 = vpop.f32.mrf.mxu0  ;;  %v1206_v7 = vpop.f32.mrf.mxu1  ;;  %v1333_v8 = vmax.f32 %v1150_v55, 0.0  ;;  %v1335_v13 = vmax.f32 %v1203_v61, 0.0  ;;  %v3004_v50 = vld [vmem:[%s4156_s3 + $0x310] ss:$8 sps:$4 sm:$0xff]   ;;  %v3012_v52 = vld [vmem:[%s4156_s3 + $0x304] ss:$8 sps:$4 sm:$0xff]  }
 0x124   : > { %2177 = vmatprep.mubr.bf16.mxu0 %v1350_v57  ;;  %v1154_v6 = vadd.f32 %v1153_v2, %v428_v29  ;;  %2230 = vmatprep.mubr.bf16.mxu1 %v1352_v63  ;;  %v1207_v10 = vadd.f32 %v1206_v7, %v436_v26  ;;  %v1334_v12 = vmax.f32 %v1152_v60, 0.0  ;;  %v1336_v21 = vmax.f32 %v1205_v3, 0.0  ;;  %v2982_v26 = vld [vmem:[%s4156_s3 + $0x354] ss:$8 sps:$4 sm:$0xff]   ;;  %v3007_v53 = vld [vmem:[%s4156_s3 + $0x200] ss:$8 sps:$4 sm:$0xff]  }
 0x125   : > { %2178 = vmatmul.mubr.bf16.vlgmr.msra.gmra.mxu0 %v1349_v62  ;;  %v1155_v9 = vpop.f32.mrf.mxu0  ;;  %2231 = vmatmul.mubr.bf16.vlgmr.msra.gmra.mxu1 %v1351_v4  ;;  %v1208_v17 = vpop.f32.mrf.mxu1  ;;  %v3010_v54 = vld [vmem:[%s4156_s3 + $0x300] ss:$8 sps:$4 sm:$0xff]   ;;  %v3015_v55 = vld [vmem:[%s4156_s3 + $0x2f4] ss:$8 sps:$4 sm:$0xff]   ;;  %v3013_v57 = vld [vmem:[%s4156_s3 + $0x2f0] ss:$8 sps:$4 sm:$0xff]  }
 0x126   : > { %2252 = vmatpush1.bf16.msra.mxu0 %v2965_v59  ;;  %v1341_v14 = vmax.f32 %v1154_v6, 0.0  ;;  %v1156_v15 = vadd.f32 %v1155_v9, %v432_v28  ;;  %2305 = vmatpush1.bf16.msra.mxu1 %v2968_v0  ;;  %v1343_v25 = vmax.f32 %v1207_v10, 0.0  ;;  %v1209_v16 = vadd.f32 %v1208_v17, %v440_v31  ;;  %v2980_v31 = vld [vmem:[%s4156_s3 + $0x350] ss:$8 sps:$4 sm:$0xff]   ;;  %v3018_v56 = vld [vmem:[%s4156_s3 + $0x3f4] ss:$8 sps:$4 sm:$0xff]  }
 0x127   : > { %2253 = vmatprep.subr.bf16.mxu0 %v2973_v1  ;;  %2306 = vmatprep.subr.bf16.mxu1 %v2976_v5  ;;  %v3016_v59 = vld [vmem:[%s4156_s3 + $0x3f0] ss:$8 sps:$4 sm:$0xff]   ;;  %v3021_v60 = vld [vmem:[%s4156_s3 + $0x2e4] ss:$8 sps:$4 sm:$0xff]   ;;  %v3019_v58 = vld [vmem:[%s4156_s3 + $0x2e0] ss:$8 sps:$4 sm:$0xff]  }
 0x128   : > { %v1342_v27 = vmax.f32 %v1156_v15, 0.0  ;;  %v1357_v28 = vpack.c.bf16 %v1341_v14, %v1333_v8  ;;  %v1344_v29 = vmax.f32 %v1209_v16, 0.0  ;;  %v1359_v38 = vpack.c.bf16 %v1343_v25, %v1335_v13  ;;  %v3024_v61 = vld [vmem:[%s4156_s3 + $0x3e4] ss:$8 sps:$4 sm:$0xff]   ;;  %v3022_v62 = vld [vmem:[%s4156_s3 + $0x3e0] ss:$8 sps:$4 sm:$0xff]  }
 0x129   : > { %v3027_v63 = vld [vmem:[%s4156_s3 + $0x2d4] ss:$8 sps:$4 sm:$0xff]   ;;  %v3025_v1 = vld [vmem:[%s4156_s3 + $0x2d0] ss:$8 sps:$4 sm:$0xff]   ;;  %v3033_v3 = vld [vmem:[%s4156_s3 + $0x2c4] ss:$8 sps:$4 sm:$0xff]  }
 0x12a   : > { %2254 = vmatpush1.bf16.msra.mxu0 %v2971_v11  ;;  %v1358_v32 = vpack.c.bf16 %v1342_v27, %v1334_v12  ;;  %2307 = vmatpush1.bf16.msra.mxu1 %v2974_v18  ;;  %v1360_v34 = vpack.c.bf16 %v1344_v29, %v1336_v21  ;;  %v3030_v0 = vld [vmem:[%s4156_s3 + $0x3d4] ss:$8 sps:$4 sm:$0xff]   ;;  %v3028_v2 = vld [vmem:[%s4156_s3 + $0x3d0] ss:$8 sps:$4 sm:$0xff]   ;;  %v3036_v4 = vld [vmem:[%s4156_s3 + $0x3c4] ss:$8 sps:$4 sm:$0xff]  }
 0x12b   : > { %2255 = vmatprep.subr.bf16.mxu0 %v2979_v19  ;;  %2308 = vmatprep.subr.bf16.mxu1 %v2982_v26  ;;  %v3031_v5 = vld [vmem:[%s4156_s3 + $0x2c0] ss:$8 sps:$4 sm:$0xff]   ;;  %v3039_v7 = vld [vmem:[%s4156_s3 + $0x2b4] ss:$8 sps:$4 sm:$0xff]   ;;  %v3037_v9 = vld [vmem:[%s4156_s3 + $0x2b0] ss:$8 sps:$4 sm:$0xff]  }
 0x12c   : > { %2187 = vmatprep.mubr.bf16.mxu0 %v1358_v32  ;;  %2240 = vmatprep.mubr.bf16.mxu1 %v1360_v34  ;;  %v3034_v6 = vld [vmem:[%s4156_s3 + $0x3c0] ss:$8 sps:$4 sm:$0xff]   ;;  %v3042_v8 = vld [vmem:[%s4156_s3 + $0x3b4] ss:$8 sps:$4 sm:$0xff]   ;;  %v3040_v10 = vld [vmem:[%s4156_s3 + $0x3b0] ss:$8 sps:$4 sm:$0xff]  }
 0x12d   : > { %2188 = vmatmul.mubr.bf16.gmra.mxu0 %v1357_v28  ;;  %2241 = vmatmul.mubr.bf16.gmra.mxu1 %v1359_v38  ;;  %v3045_v11 = vld [vmem:[%s4156_s3 + $0x2a4] ss:$8 sps:$4 sm:$0xff]   ;;  %v447_v12 = vsub.s32 5, %v3850_v20  ;;  %v443_v14 = vsub.s32 4, %v3850_v20  ;;  %v455_v15 = vsub.s32 7, %v3850_v20  ;;  %v451_v17 = vsub.s32 6, %v3850_v20 }
 0x12e   : > { %2256 = vmatpush1.bf16.msra.mxu0 %v2977_v30  ;;  %2309 = vmatpush1.bf16.msra.mxu1 %v2980_v31  ;;  %v3048_v13 = vld [vmem:[%s4156_s3 + $0x3a4] ss:$8 sps:$4 sm:$0xff]   ;;  %v3043_v18 = vld [vmem:[%s4156_s3 + $0x2a0] ss:$8 sps:$4 sm:$0xff]   ;;  %v3051_v25 = vld [vmem:[%s4156_s3 + $0x294] ss:$8 sps:$4 sm:$0xff]  }
 0x12f   : > { %2257 = vmatprep.subr.bf16.mxu0 %v2985_v33  ;;  %2310 = vmatprep.subr.bf16.mxu1 %v2988_v35  ;;  %v3046_v21 = vld [vmem:[%s4156_s3 + $0x3a0] ss:$8 sps:$4 sm:$0xff]   ;;  %v4041_v26 = vrot.slane %v3859_v23, %v447_v12  ;;  %v3054_v20 = vld [vmem:[%s4156_s3 + $0x394] ss:$8 sps:$4 sm:$0xff]   ;;  %v444_v27 = vrot.slane %v3859_v23, %v443_v14  ;;  %v4048_v29 = vrot.slane %v3859_v23, %v455_v15  ;;  %v3049_v38 = vld [vmem:[%s4156_s3 + $0x290] ss:$8 sps:$4 sm:$0xff]  }
 0x130   : > { %v452_v30 = vrot.slane %v3859_v23, %v451_v17  ;;  %v3052_v33 = vld [vmem:[%s4156_s3 + $0x390] ss:$8 sps:$4 sm:$0xff]   ;;  %v3057_v34 = vld [vmem:[%s4156_s3 + $0x284] ss:$8 sps:$4 sm:$0xff]  }
 0x132   : > { %2258 = vmatpush1.bf16.msra.mxu0 %v2983_v36  ;;  %2311 = vmatpush1.bf16.msra.mxu1 %v2986_v37  ;;  %v3060_v37 = vld [vmem:[%s4156_s3 + $0x384] ss:$8 sps:$4 sm:$0xff]  }
 0x133   : > { %2259 = vmatprep.subr.bf16.mxu0 %v2991_v39  ;;  %2312 = vmatprep.subr.bf16.mxu1 %v2994_v40 }
 0x136   : > { %2260 = vmatpush1.bf16.msra.mxu0 %v2989_v41  ;;  %2313 = vmatpush1.bf16.msra.mxu1 %v2992_v42 }
 0x137   : > { %2261 = vmatprep.subr.bf16.mxu0 %v2997_v43  ;;  %2314 = vmatprep.subr.bf16.mxu1 %v3000_v44 }
 0x13a   : > { %2262 = vmatpush1.bf16.msra.mxu0 %v2995_v45  ;;  %2315 = vmatpush1.bf16.msra.mxu1 %v2998_v46  ;;  %v3055_v46 = vld [vmem:[%s4156_s3 + $0x280] ss:$8 sps:$4 sm:$0xff]  }
 0x13b   : > { %2263 = vmatprep.subr.bf16.mxu0 %v3003_v47  ;;  %2316 = vmatprep.subr.bf16.mxu1 %v3006_v48 }
 0x13e   : > { %2264 = vmatpush1.bf16.msra.mxu0 %v3001_v49  ;;  %2317 = vmatpush1.bf16.msra.mxu1 %v3004_v50  ;;  %v3058_v50 = vld [vmem:[%s4156_s3 + $0x380] ss:$8 sps:$4 sm:$0xff]  }
 0x13f   : > { %2265 = vmatprep.subr.bf16.mxu0 %v3009_v51  ;;  %2318 = vmatprep.subr.bf16.mxu1 %v3012_v52 }
 0x142   : > { %2266 = vmatpush1.bf16.msra.mxu0 %v3007_v53  ;;  %2319 = vmatpush1.bf16.msra.mxu1 %v3010_v54 }
 0x143   : > { %2267 = vmatprep.subr.bf16.mxu0 %v3015_v55  ;;  %2320 = vmatprep.subr.bf16.mxu1 %v3018_v56 }
 0x146   : > { %2268 = vmatpush2.bf16.msra.mxu0 %v3013_v57  ;;  %2321 = vmatpush2.bf16.msra.mxu1 %v3016_v59 }
 0x147   : > { %2269 = vmatprep.subr.bf16.mxu0 %v3021_v60  ;;  %2322 = vmatprep.subr.bf16.mxu1 %v3024_v61 }
 0x14a   : > { %2270 = vmatpush2.bf16.msra.mxu0 %v3019_v58  ;;  %2323 = vmatpush2.bf16.msra.mxu1 %v3022_v62 }
 0x14b   : > { %2271 = vmatprep.subr.bf16.mxu0 %v3027_v63  ;;  %2324 = vmatprep.subr.bf16.mxu1 %v3030_v0 }
 0x14e   : > { %2272 = vmatpush2.bf16.msra.mxu0 %v3025_v1  ;;  %2325 = vmatpush2.bf16.msra.mxu1 %v3028_v2 }
 0x14f   : > { %2273 = vmatprep.subr.bf16.mxu0 %v3033_v3  ;;  %2326 = vmatprep.subr.bf16.mxu1 %v3036_v4 }
 0x152   : > { %2274 = vmatpush2.bf16.msra.mxu0 %v3031_v5  ;;  %2327 = vmatpush2.bf16.msra.mxu1 %v3034_v6 }
 0x153   : > { %2275 = vmatprep.subr.bf16.mxu0 %v3039_v7  ;;  %2328 = vmatprep.subr.bf16.mxu1 %v3042_v8 }
 0x156   : > { %2276 = vmatpush2.bf16.msra.mxu0 %v3037_v9  ;;  %2329 = vmatpush2.bf16.msra.mxu1 %v3040_v10 }
 0x157   : > { %v1245_v19 = vpop.f32.mrf.mxu0  ;;  %2277 = vmatprep.subr.bf16.mxu0 %v3045_v11  ;;  %v1298_v16 = vpop.f32.mrf.mxu1  ;;  %2330 = vmatprep.subr.bf16.mxu1 %v3048_v13 }
 0x158   : > { %v1246_v39 = vadd.f32 %v1245_v19, %v444_v27  ;;  %v1299_v43 = vadd.f32 %v1298_v16, %v452_v30 }
 0x159   : > { %v1247_v28 = vpop.f32.mrf.mxu0  ;;  %v1300_v32 = vpop.f32.mrf.mxu1 }
 0x15a   : > { %2278 = vmatpush2.bf16.msra.mxu0 %v3043_v18  ;;  %2331 = vmatpush2.bf16.msra.mxu1 %v3046_v21  ;;  %v1248_v35 = vadd.f32 %v1247_v28, %v4041_v26  ;;  %v1301_v40 = vadd.f32 %v1300_v32, %v4048_v29  ;;  %v1321_v55 = vmax.f32 %v1246_v39, 0.0  ;;  %v1323_v60 = vmax.f32 %v1299_v43, 0.0 }
 0x15b   : > { %v1249_v31 = vpop.f32.mrf.mxu0  ;;  %2279 = vmatprep.subr.bf16.mxu0 %v3051_v25  ;;  %v1302_v36 = vpop.f32.mrf.mxu1  ;;  %2332 = vmatprep.subr.bf16.mxu1 %v3054_v20 }
 0x15c   : > { %v1250_v23 = vadd.f32 %v1249_v31, %v444_v27  ;;  %v1303_v41 = vadd.f32 %v1302_v36, %v452_v30  ;;  %v1322_v51 = vmax.f32 %v1248_v35, 0.0  ;;  %v1324_v56 = vmax.f32 %v1301_v40, 0.0  ;;  %v1493_v36 = vld [vmem:[%s4157_s4] sm:$0x3] }
 0x15d   : > { %v1251_v42 = vpop.f32.mrf.mxu0  ;;  %v1304_v45 = vpop.f32.mrf.mxu1  ;;  %v1498_v39 = vrot.slane %v1493_v36, %v3862_v24 }
 0x15e   : > { %v1252_v44 = vadd.f32 %v1251_v42, %v4041_v26  ;;  %2280 = vmatpush2.bf16.msra.mxu0 %v3049_v38  ;;  %v1329_v47 = vmax.f32 %v1250_v23, 0.0  ;;  %v1305_v48 = vadd.f32 %v1304_v45, %v4048_v29  ;;  %2333 = vmatpush2.bf16.msra.mxu1 %v3052_v33  ;;  %v1331_v52 = vmax.f32 %v1303_v41, 0.0 }
 0x15f   : > { %v1255_v49 = vpop.f32.mrf.mxu0  ;;  %2281 = vmatprep.subr.bf16.mxu0 %v3057_v34  ;;  %v1308_v54 = vpop.f32.mrf.mxu1  ;;  %2334 = vmatprep.subr.bf16.mxu1 %v3060_v37  ;;  %v1502_v41 = vrot.slane %v1493_v36, %v3854_v22 }
 0x160   : > { %v1330_v53 = vmax.f32 %v1252_v44, 0.0  ;;  %v1332_v57 = vmax.f32 %v1305_v48, 0.0  ;;  %v1353_v62 = vpack.c.bf16 %v1329_v47, %v1321_v55  ;;  %v1355_v1 = vpack.c.bf16 %v1331_v52, %v1323_v60 }
 0x161   : > { %v1257_v59 = vpop.f32.mrf.mxu0  ;;  %v1310_v58 = vpop.f32.mrf.mxu1  ;;  %v1256_v5 = vadd.f32 %v1255_v49, %v444_v27  ;;  %v1309_v9 = vadd.f32 %v1308_v54, %v452_v30 }
 0x162   : > { %v1354_v61 = vpack.c.bf16 %v1330_v53, %v1322_v51  ;;  %2282 = vmatpush2.bf16.msra.mxu0 %v3055_v46  ;;  %v1356_v63 = vpack.c.bf16 %v1332_v57, %v1324_v56  ;;  %2335 = vmatpush2.bf16.msra.mxu1 %v3058_v50  ;;  %v1258_v2 = vadd.f32 %v1257_v59, %v4041_v26 }
 0x163   : > { %v1259_v0 = vpop.f32.mrf.mxu0  ;;  %v1312_v4 = vpop.f32.mrf.mxu1  ;;  %v1311_v6 = vadd.f32 %v1310_v58, %v4048_v29  ;;  %v1337_v18 = vmax.f32 %v1256_v5, 0.0  ;;  %v1339_v25 = vmax.f32 %v1309_v9, 0.0  ;;  %v3069_v9 = vld [vmem:[%s3312_s23] sm:$0xff] }
 0x164   : > { %v1260_v3 = vadd.f32 %v1259_v0, %v444_v27  ;;  %2283 = vmatprep.mubr.bf16.mxu0 %v1354_v61  ;;  %v1313_v7 = vadd.f32 %v1312_v4, %v452_v30  ;;  %2336 = vmatprep.mubr.bf16.mxu1 %v1356_v63  ;;  %v1338_v14 = vmax.f32 %v1258_v2, 0.0 }
 0x165   : > { %v1261_v8 = vpop.f32.mrf.mxu0  ;;  %2284 = vmatmul.mubr.bf16.vlgmr.msra.gmra.mxu0 %v1353_v62  ;;  %v1314_v11 = vpop.f32.mrf.mxu1  ;;  %2337 = vmatmul.mubr.bf16.vlgmr.msra.gmra.mxu1 %v1355_v1  ;;  %v1340_v19 = vmax.f32 %v1311_v6, 0.0 }
 0x166   : > { %v1262_v10 = vadd.f32 %v1261_v8, %v4041_v26  ;;  %v1345_v12 = vmax.f32 %v1260_v3, 0.0  ;;  %v1315_v13 = vadd.f32 %v1314_v11, %v4048_v29  ;;  %v1347_v15 = vmax.f32 %v1313_v7, 0.0  ;;  %v3070_v11 = vld [vmem:[%s3312_s23 + $0x8] sm:$0xff] }
 0x168   : > { %v1346_v17 = vmax.f32 %v1262_v10, 0.0  ;;  %v1348_v21 = vmax.f32 %v1315_v13, 0.0  ;;  %v1361_v20 = vpack.c.bf16 %v1345_v12, %v1337_v18  ;;  %v1363_v28 = vpack.c.bf16 %v1347_v15, %v1339_v25 }
 0x16a   : > { %v1362_v16 = vpack.c.bf16 %v1346_v17, %v1338_v14  ;;  %v1364_v27 = vpack.c.bf16 %v1348_v21, %v1340_v19 }
 0x16c   : > { %2293 = vmatprep.mubr.bf16.mxu0 %v1362_v16  ;;  %2346 = vmatprep.mubr.bf16.mxu1 %v1364_v27 }
 0x16d   : > { %2294 = vmatmul.mubr.bf16.gmra.mxu0 %v1361_v20  ;;  %2347 = vmatmul.mubr.bf16.gmra.mxu1 %v1363_v28  ;;  %v3071_v20 = vld [vmem:[%s3312_s23 + $0x10] sm:$0xff]  ;;  %v3072_v28 = vld [vmem:[%s3312_s23 + $0x18] sm:$0xff] }
 0x1e5   : > { %v2179_v26 = vpop.f32.mrf.mxu0  ;;  %v2232_v30 = vpop.f32.mrf.mxu1 }
 0x1e6   : > { %v2180_v43 = vadd.f32 %v2179_v26, %v1498_v39 }
 0x1e7   : > { %v2181_v32 = vpop.f32.mrf.mxu0  ;;  %v2234_v38 = vpop.f32.mrf.mxu1 }
 0x1e8   : > { %v2182_v45 = vadd.f32 %v2181_v32, %v1502_v41  ;;  %v2233_v47 = vadd.f32 %v2232_v30, %v2180_v43 }
 0x1e9   : > { %v2183_v29 = vpop.f32.mrf.mxu0  ;;  %v2236_v31 = vpop.f32.mrf.mxu1 }
 0x1ea   : > { %v2184_v48 = vadd.f32 %v2183_v29, %v1498_v39  ;;  %v2235_v51 = vadd.f32 %v2234_v38, %v2182_v45 }
 0x1eb   : > { %v2185_v33 = vpop.f32.mrf.mxu0  ;;  %v2238_v34 = vpop.f32.mrf.mxu1 }
 0x1ec   : > { %v2186_v52 = vadd.f32 %v2185_v33, %v1502_v41  ;;  %v2237_v57 = vadd.f32 %v2236_v31, %v2184_v48 }
 0x1ed   : > { %v2189_v35 = vpop.f32.mrf.mxu0  ;;  %v2242_v23 = vpop.f32.mrf.mxu1 }
 0x1ee   : > { %v2190_v55 = vadd.f32 %v2189_v35, %v1498_v39  ;;  %v2239_v63 = vadd.f32 %v2238_v34, %v2186_v52 }
 0x1ef   : > { %v2191_v37 = vpop.f32.mrf.mxu0  ;;  %v2244_v40 = vpop.f32.mrf.mxu1 }
 0x1f0   : > { %v2192_v58 = vadd.f32 %v2191_v37, %v1502_v41  ;;  %v2243_v3 = vadd.f32 %v2242_v23, %v2190_v55 }
 0x1f1   : > { %v2193_v42 = vpop.f32.mrf.mxu0  ;;  %v2246_v44 = vpop.f32.mrf.mxu1 }
 0x1f2   : > { %v2194_v4 = vadd.f32 %v2193_v42, %v1498_v39  ;;  %v2245_v13 = vadd.f32 %v2244_v40, %v2192_v58  ;;  %v3073_v40 = vld [vmem:[%s3312_s23 + $0x20] sm:$0xff]  ;;  %v3074_v42 = vld [vmem:[%s3312_s23 + $0x28] sm:$0xff] }
 0x1f3   : > { %v2195_v46 = vpop.f32.mrf.mxu0  ;;  %v2248_v49 = vpop.f32.mrf.mxu1 }
 0x1f4   : > { %v2196_v15 = vadd.f32 %v2195_v46, %v1502_v41  ;;  %v2247_v25 = vadd.f32 %v2246_v44, %v2194_v4 }
 0x1f6   : > { %v2249_v31 = vadd.f32 %v2248_v49, %v2196_v15  ;;  %v3076_v49 = vld [vmem:[%s3312_s23 + $0x38] sm:$0xff] }
 0x225   : > { %v2285_v50 = vpop.f32.mrf.mxu0  ;;  %v2338_v54 = vpop.f32.mrf.mxu1 }
 0x226   : > { %v2286_v53 = vadd.f32 %v2285_v50, %v2233_v47  ;;  %v3075_v47 = vld [vmem:[%s3312_s23 + $0x30] sm:$0xff]  ;;  %s3081_s23 = sshll.u32 %s3139_s29, 4  ;;  %s3082_s23 = int_to_ptr.vmem [resolvable:$false] %s3081_s23 }
 0x227   : > { %v2287_v56 = vpop.f32.mrf.mxu0  ;;  %v2340_v61 = vpop.f32.mrf.mxu1  ;;  %s3083_s8 = scalar_lea.vmem %s3082_s23, 2048  ;;  %p3084_p0 = scmp.lt.s32.totalorder %s4109_s18, %s3082_s23 }
 0x228   : > { %v2339_v59 = vadd.f32 %v2338_v54, %v2286_v53  ;;  %v2288_v60 = vadd.f32 %v2287_v56, %v2235_v51  ;;  %p3085_p1 = scmp.lt.s32.totalorder %s3083_s8, %s3077_s22 }
 0x229   : > { %v2289_v62 = vpop.f32.mrf.mxu0  ;;  %v2342_v2 = vpop.f32.mrf.mxu1 }
 0x22a   : > { %v2341_v0 = vadd.f32 %v2340_v61, %v2288_v60  ;;  %v2290_v1 = vadd.f32 %v2289_v62, %v2237_v57  ;;  %v2357_v10 = vadd.f32 %v3069_v9, %v2339_v59  ;;  %p3086_p2 = por %p3085_p1, %p3084_p0 }
 0x22b   : > { %v2291_v5 = vpop.f32.mrf.mxu0  ;;  %v2344_v8 = vpop.f32.mrf.mxu1 }
 0x22c   : > { %v2343_v6 = vadd.f32 %v2342_v2, %v2290_v1  ;;  %v2292_v7 = vadd.f32 %v2291_v5, %v2239_v63  ;;  %v2358_v12 = vadd.f32 %v3070_v11, %v2341_v0  ;;  %p3087_p3 = pnand %p3086_p2, %p3080_p13 }
 0x22d   : > { %v2295_v14 = vpop.f32.mrf.mxu0  ;;  %v2348_v19 = vpop.f32.mrf.mxu1 }
 0x22e   : > { %v2345_v17 = vadd.f32 %v2344_v8, %v2292_v7  ;;  %v2296_v18 = vadd.f32 %v2295_v14, %v2243_v3  ;;  %v2365_v21 = vadd.f32 %v2358_v12, %v2357_v10  ;;  %v2359_v27 = vadd.f32 %v3071_v20, %v2343_v6 }
 0x22f   : > { %v2297_v16 = vpop.f32.mrf.mxu0  ;;  %v2350_v38 = vpop.f32.mrf.mxu1 }
 0x230   : > { %v2360_v26 = vadd.f32 %v3072_v28, %v2345_v17  ;;  %v2349_v30 = vadd.f32 %v2348_v19, %v2296_v18  ;;  %v2298_v32 = vadd.f32 %v2297_v16, %v2245_v13  ;;  %2366 = vadd.xlane.f32.xlu0 %v2365_v21 }
 0x231   : > { %v2299_v29 = vpop.f32.mrf.mxu0  ;;  %v2352_v35 = vpop.f32.mrf.mxu1 }
 0x232   : > { %v2351_v33 = vadd.f32 %v2350_v38, %v2298_v32  ;;  %v2300_v34 = vadd.f32 %v2299_v29, %v2247_v25  ;;  %v2368_v23 = vadd.f32 %v2360_v26, %v2359_v27  ;;  %v2361_v41 = vadd.f32 %v3073_v40, %v2349_v30  ;;  %v2430_v32 = vld [vmem:[%s4158_s5] sm:$0x3] }
 0x233   : > { %v2301_v36 = vpop.f32.mrf.mxu0  ;;  %v2354_v44 = vpop.f32.mrf.mxu1  ;;  %v2450_v29 = vld [vmem:[%s4159_s6] sm:$0x3] }
 0x234   : > { %v2353_v37 = vadd.f32 %v2352_v35, %v2300_v34  ;;  %v2302_v39 = vadd.f32 %v2301_v36, %v2249_v31  ;;  %2369 = vadd.xlane.f32.xlu0 %v2368_v23  ;;  %v2362_v43 = vadd.f32 %v3074_v42, %v2351_v33  ;;  %v2435_v31 = vrot.slane %v2430_v32, %v3862_v24 }
 0x235   : > { %v2439_v33 = vrot.slane %v2430_v32, %v3854_v22  ;;  %v2455_v35 = vrot.slane %v2450_v29, %v3862_v24  ;;  %v2459_v23 = vrot.slane %v2450_v29, %v3854_v22 }
 0x236   : > { %v2355_v45 = vadd.f32 %v2354_v44, %v2302_v39  ;;  %v2371_v46 = vadd.f32 %v2362_v43, %v2361_v41  ;;  %v2363_v48 = vadd.f32 %v3075_v47, %v2353_v37 }
 0x238   : > { %v2364_v50 = vadd.f32 %v3076_v49, %v2355_v45  ;;  %2372 = vadd.xlane.f32.xlu1 %v2371_v46 }
 0x23a   : > { %v2374_v51 = vadd.f32 %v2364_v50, %v2363_v48 }
 0x23c   : > { %2375 = vadd.xlane.f32.xlu1 %v2374_v51 }
 0x2b9   : > { %v2367_v52 = vpop.xlane.xlu0 %2366 }
 0x2ba   : > { %v2378_v53 = vmul.f32 0.00390625, %v2367_v52 }
 0x2bc   : > { %v2382_v54 = vsub.f32 %v2357_v10, %v2378_v53  ;;  %v2383_v55 = vsub.f32 %v2358_v12, %v2378_v53 }
 0x2bd   : > { %v2370_v56 = vpop.xlane.xlu0 %2369 }
 0x2be   : > { %v2379_v57 = vmul.f32 0.00390625, %v2370_v56  ;;  %v2390_v59 = vmul.f32 %v2382_v54, %v2382_v54  ;;  %v2391_v60 = vmul.f32 %v2383_v55, %v2383_v55 }
 0x2c0   : > { %v2384_v61 = vsub.f32 %v2359_v27, %v2379_v57  ;;  %v2385_v58 = vsub.f32 %v2360_v26, %v2379_v57  ;;  %v2398_v62 = vadd.f32 %v2391_v60, %v2390_v59 }
 0x2c1   : > { %v2373_v63 = vpop.xlane.xlu1 %2372 }
 0x2c2   : > { %v2380_v0 = vmul.f32 0.00390625, %v2373_v63  ;;  %2399 = vadd.xlane.f32.xlu0 %v2398_v62  ;;  %v2392_v1 = vmul.f32 %v2384_v61, %v2384_v61  ;;  %v2393_v2 = vmul.f32 %v2385_v58, %v2385_v58 }
 0x2c4   : > { %v2386_v3 = vsub.f32 %v2361_v41, %v2380_v0  ;;  %v2387_v4 = vsub.f32 %v2362_v43, %v2380_v0  ;;  %v2401_v5 = vadd.f32 %v2393_v2, %v2392_v1 }
 0x2c5   : > { %v2376_v6 = vpop.xlane.xlu1 %2375 }
 0x2c6   : > { %v2381_v7 = vmul.f32 0.00390625, %v2376_v6  ;;  %2402 = vadd.xlane.f32.xlu1 %v2401_v5  ;;  %v2394_v8 = vmul.f32 %v2386_v3, %v2386_v3  ;;  %v2395_v9 = vmul.f32 %v2387_v4, %v2387_v4 }
 0x2c8   : > { %v2388_v10 = vsub.f32 %v2363_v48, %v2381_v7  ;;  %v2389_v11 = vsub.f32 %v2364_v50, %v2381_v7  ;;  %v2404_v12 = vadd.f32 %v2395_v9, %v2394_v8 }
 0x2ca   : > { %2405 = vadd.xlane.f32.xlu0 %v2404_v12  ;;  %v2396_v13 = vmul.f32 %v2388_v10, %v2388_v10  ;;  %v2397_v14 = vmul.f32 %v2389_v11, %v2389_v11 }
 0x2cc   : > { %v2407_v15 = vadd.f32 %v2397_v14, %v2396_v13 }
 0x2ce   : > { %2408 = vadd.xlane.f32.xlu1 %v2407_v15 }
 0x34b   : > { %v2400_v17 = vpop.xlane.xlu0 %2399 }
 0x34c   : > { %v2410_v18 = vmul.f32 0.00390625, %v2400_v17 }
 0x34e   : > { %v2414_v19 = vadd.f32 1e-05, %v2410_v18 }
 0x34f   : > { %v2403_v21 = vpop.xlane.xlu1 %2402 }
 0x350   : > { %3061 = vrsqrt.f32 %v2414_v19  ;;  %v2411_v25 = vmul.f32 0.00390625, %v2403_v21 }
 0x352   : > { %v2415_v16 = vadd.f32 1e-05, %v2411_v25 }
 0x353   : > { %v2406_v20 = vpop.xlane.xlu0 %2405 }
 0x354   : > { %3063 = vrsqrt.f32 %v2415_v16  ;;  %v2412_v27 = vmul.f32 0.00390625, %v2406_v20 }
 0x356   : > { %v2416_v28 = vadd.f32 1e-05, %v2412_v27 }
 0x357   : > { %v2409_v26 = vpop.xlane.xlu1 %2408 }
 0x358   : > { %3065 = vrsqrt.f32 %v2416_v28  ;;  %v2413_v30 = vmul.f32 0.00390625, %v2409_v26 }
 0x35a   : > { %v2417_v38 = vadd.f32 1e-05, %v2413_v30 }
 0x35c   : > { %3067 = vrsqrt.f32 %v2417_v38 }
 0x35d   : > { %v3062_v34 = vpop.eup %3061 }
 0x35e   : > { %v2422_v36 = vmul.f32 %v3062_v34, %v2382_v54  ;;  %v2423_v37 = vmul.f32 %v3062_v34, %v2383_v55 }
 0x360   : > { %v2442_v39 = vmul.f32 %v2435_v31, %v2422_v36  ;;  %v2443_v40 = vmul.f32 %v2439_v33, %v2423_v37 }
 0x361   : > { %v3064_v41 = vpop.eup %3063 }
 0x362   : > { %v2462_v42 = vadd.f32 %v2455_v35, %v2442_v39  ;;  %v2463_v43 = vadd.f32 %v2459_v23, %v2443_v40  ;;  %v2424_v44 = vmul.f32 %v3064_v41, %v2384_v61  ;;  %v2425_v45 = vmul.f32 %v3064_v41, %v2385_v58 }
 0x364   : > { %2470 = vst [vmem:[%s274_s16] sm:$0xff] %v2462_v42  ;;  %2471 = vst [vmem:[%s274_s16 + $0x8] sm:$0xff] %v2463_v43  ;;  %v2444_v46 = vmul.f32 %v2435_v31, %v2424_v44  ;;  %v2445_v47 = vmul.f32 %v2439_v33, %v2425_v45 }
 0x365   : > { %v3066_v24 = vpop.eup %3065 }
 0x366   : > { %v2464_v48 = vadd.f32 %v2455_v35, %v2444_v46  ;;  %v2465_v22 = vadd.f32 %v2459_v23, %v2445_v47  ;;  %v2426_v49 = vmul.f32 %v3066_v24, %v2386_v3  ;;  %v2427_v50 = vmul.f32 %v3066_v24, %v2387_v4 }
 0x368   : > { %2472 = vst [vmem:[%s274_s16 + $0x10] sm:$0xff] %v2464_v48  ;;  %2473 = vst [vmem:[%s274_s16 + $0x18] sm:$0xff] %v2465_v22  ;;  %v2446_v51 = vmul.f32 %v2435_v31, %v2426_v49  ;;  %v2447_v52 = vmul.f32 %v2439_v33, %v2427_v50 }
 0x369   : > { %v3068_v53 = vpop.eup %3067 }
 0x36a   : > { %v2466_v54 = vadd.f32 %v2455_v35, %v2446_v51  ;;  %v2467_v55 = vadd.f32 %v2459_v23, %v2447_v52  ;;  %v2428_v56 = vmul.f32 %v3068_v53, %v2388_v10  ;;  %v2429_v57 = vmul.f32 %v3068_v53, %v2389_v11 }
 0x36c   : > { %2474 = vst [vmem:[%s274_s16 + $0x20] sm:$0xff] %v2466_v54  ;;  %2475 = vst [vmem:[%s274_s16 + $0x28] sm:$0xff] %v2467_v55  ;;  %v2448_v59 = vmul.f32 %v2435_v31, %v2428_v56  ;;  %v2449_v60 = vmul.f32 %v2439_v33, %v2429_v57 }
 0x36e   : > { %v2468_v61 = vadd.f32 %v2455_v35, %v2448_v59  ;;  %v2469_v58 = vadd.f32 %v2459_v23, %v2449_v60 }
 0x370   : > { %2476 = vst [vmem:[%s274_s16 + $0x30] sm:$0xff] %v2468_v61  ;;  %2477 = vst [vmem:[%s274_s16 + $0x38] sm:$0xff] %v2469_v58 }
 0x371   : > { %3090 = shalt.err (!%p3087_p3)
}
 0x372   : > { %s3091_s9 = scalar_lea.hbm %s4107_s21, 1024  ;;  %s3095_s15 = scalar_lea.hbm %s4160_s7, 2048 }
 0x373   : > { %p3092_p4 = scmp.ne.s32.totalorder %s4107_s21, %s3091_s9  ;;  %p3096_p9 = scmp.lt.s32.totalorder %s4107_s21, %s4160_s7 }
 0x374   : > { %p3097_p10 = scmp.lt.s32.totalorder %s3095_s15, %s3091_s9 }
 0x375   : > { %p3093_p7 = pnand %p3092_p4, %p3220_p5 }
 0x376   : > { %p3098_p11 = por %p3097_p10, %p3096_p9 }
 0x377   : > { %p3094_p8 = pneg %p3093_p7 }
 0x379   : > { %p3099_p12 = pnand %p3098_p11, %p3094_p8 }
 0x37b   : > { %3102 = shalt.err (!%p3099_p12)
}
 0x37c   : > { %s3140_s19 = smov 256   ;;  %s3141_s20 = smov 16  }
 0x37d   : > { %2828 = dma.vmem_to_hbm [thread:$0]  (%p3220_p5), %s4109_s18, 1024, %s4107_s21, %s4113_s28, %s3140_s19, %s3140_s19, %s3141_s20  }
 0x37e PF: > { %p2834_p13 = scmp.ge.s32.totalorder %s3137_s27, 2  ;;  %s2508_s22 = sand.u32 1, %s3125_s24  }
 0x37f   : > { %s2509_s29 = scalar_lea.sflag [#allocation3], %s2508_s22 }
 0x380   : > { %p2831_p0 = pnand %p2834_p13, %p3224_p6 }
 0x382   : > { %p2832_p1 = pneg %p2831_p0 }
 0x384   : > { %3120 = dma.done.wait (%p2832_p1), %s2509_s29, 1024  }
 0x385   : > { %3122 = vsyncadd (%p2832_p1), %s2509_s29, 4294966272  ;;  %p17_p2 = scmp.ge.s32.totalorder %s3207_s30, 4   ;;  %s4163_s24 = smov %s3129_s25 }
 0x386   : > { %s4164_s25 = smov %s3133_s26  ;;  %s4165_s26 = smov %s3218_s10 }
 0x387   : > { %s4166_s27 = smov %s3207_s30  ;;  %19 = sbr.rel (!%p17_p2) target bundleno = 3 (0x3), region = 83 }
 0x38c   :  { %2514 = vsyncpa [#allocation3], 1 }
 0x38d   :  { %2516 = vsyncpa [#allocation3 + $0x1], 1 }

</bundles_post_ra>
